<compile_context>
chip_gen: v7x
topology: tpu7x:2x2x1
jax: 0.10.0
libtpu: 0.0.40
codegen_flags: <defaults>
</compile_context>

<pallas_src>
import functools
import math

import jax
import jax.numpy as jnp
from jax import lax
from jax.experimental import pallas as pl
from jax.experimental.pallas import tpu as pltpu


def _convconv_kernel(x_ref, w1_ref, s1_ref, t1_ref, w2_ref, s2_ref, t2_ref,
                     out_ref, pad1_ref, col1_ref, pad2_ref, col2_ref, *, dims):
    (bt, H, W, Cin, Cmid, Cout, KH, KW, P,
     H1, W1, H2, W2, Hp, Wp, Hp1, Wp1) = dims
    f32, bf16 = jnp.float32, jnp.bfloat16
    Mi = bt * H1 * W1
    Mo = bt * H2 * W2

    # ---- StandardBlock 1: BN -> conv -> ReLU -------------------------------
    # Zero only the P-wide halo strips; the interior is fully rewritten below.
    # (Do NOT turn this into a program_id()==0 one-time init: with a "parallel"
    #  batch axis on a megacore chip, core 1 never executes step 0.)
    if P > 0:
        pad1_ref[:, 0:P, :, :] = jnp.zeros((bt, P, Wp, Cin), f32)
        pad1_ref[:, P + H:Hp, :, :] = jnp.zeros((bt, P, Wp, Cin), f32)
        pad1_ref[:, :, 0:P, :] = jnp.zeros((bt, Hp, P, Cin), f32)
        pad1_ref[:, :, P + W:Wp, :] = jnp.zeros((bt, Hp, P, Cin), f32)
    # BN1 before padding, so the zero halo matches PyTorch's zero padding.
    pad1_ref[:, P:P + H, P:P + W, :] = (
        x_ref[...].astype(f32) * s1_ref[...] + t1_ref[...])

    # im2col: one (Mi, KH*KW*Cin) patch matrix -> a single deep-K MXU matmul
    # instead of KH*KW shallow matmuls + accumulator adds.  The kh shift is a
    # leading-dim address change (free); the kw shift stays a sublane slice.
    # TODO(synk): realize the kw shift with pltpu.roll (XLU) to remove the
    # remaining sublane-misaligned slice relayouts flagged in the review.
    for kh in range(KH):
        for kw in range(KW):
            c0 = (kh * KW + kw) * Cin
            col1_ref[:, c0:c0 + Cin] = (
                pad1_ref[:, kh:kh + H1, kw:kw + W1, :]
                .reshape(Mi, Cin).astype(bf16))

    # Single-pass bf16 MXU matmul, f32 accumulation.
    h1 = jnp.dot(col1_ref[...], w1_ref[...], preferred_element_type=f32)
    h1 = jnp.maximum(h1, 0.0)                                    # ReLU (Mi, Cmid)

    # ---- StandardBlock 2: BN -> conv -> ReLU -------------------------------
    h1 = h1 * s2_ref[...] + t2_ref[...]                          # BN2 in f32
    if P > 0:
        pad2_ref[:, 0:P, :, :] = jnp.zeros((bt, P, Wp1, Cmid), f32)
        pad2_ref[:, P + H1:Hp1, :, :] = jnp.zeros((bt, P, Wp1, Cmid), f32)
        pad2_ref[:, :, 0:P, :] = jnp.zeros((bt, Hp1, P, Cmid), f32)
        pad2_ref[:, :, P + W1:Wp1, :] = jnp.zeros((bt, Hp1, P, Cmid), f32)
    pad2_ref[:, P:P + H1, P:P + W1, :] = h1.reshape(bt, H1, W1, Cmid)

    for kh in range(KH):
        for kw in range(KW):
            c0 = (kh * KW + kw) * Cmid
            col2_ref[:, c0:c0 + Cmid] = (
                pad2_ref[:, kh:kh + H2, kw:kw + W2, :]
                .reshape(Mo, Cmid).astype(bf16))

    y = jnp.dot(col2_ref[...], w2_ref[...], preferred_element_type=f32)
    y = jnp.maximum(y, 0.0)                                      # (Mo, Cout)

    # Lane-dense output: one XLU transpose per step gives (bt, Cout, H2*W2),
    # i.e. NCHW-flat with H2*W2 (=256 here) on the lane axis -> unmasked dense
    # stores, and no wrapper-side transpose on the way out.
    y = jnp.transpose(y.reshape(bt, H2 * W2, Cout), (0, 2, 1))
    out_ref[...] = y.astype(out_ref.dtype)


def _ceil_to(x, m):
    return ((x + m - 1) // m) * m


def _padded_bytes(shape, dtype):
    """Rough VMEM footprint of an array after (sublane, lane) tiling/padding."""
    dt = jnp.dtype(dtype)
    sub = 8 * (4 // dt.itemsize)
    *lead, s, l = shape
    lead_n = math.prod(lead) if lead else 1
    return lead_n * _ceil_to(max(s, 1), sub) * _ceil_to(max(l, 1), 128) * dt.itemsize


def conv_conv_block(x_nchw, params, *, kernel_size=3, stride=1, padding=1,
                    eps=1e-5, batch_block=None):
    """Pallas equivalent of ConvConvBlock.forward(x) (NCHW in, NCHW out)."""
    # TODO(synk): stride > 1 (strided im2col windows) is not implemented; the
    # CRNN configuration uses stride=1 with same padding.
    assert stride == 1, "kernel implements stride=1"

    B, Cin, H, W = x_nchw.shape
    w1 = params["conv1_w"]                       # (Cmid, Cin,  KH, KW)
    w2 = params["conv2_w"]                       # (Cout, Cmid, KH, KW)
    Cmid, Cout = w1.shape[0], w2.shape[0]
    KH = KW = kernel_size
    P = padding
    assert w1.shape == (Cmid, Cin, KH, KW)
    assert w2.shape == (Cout, Cmid, KH, KW)

    H1 = H + 2 * P - KH + 1
    W1 = W + 2 * P - KW + 1
    H2 = H1 + 2 * P - KH + 1
    W2 = W1 + 2 * P - KW + 1
    Hp, Wp = H + 2 * P, W + 2 * P
    Hp1, Wp1 = H1 + 2 * P, W1 + 2 * P

    # Batch blocking: amortize per-step overhead / DMA size, but keep >= 2 grid
    # steps when B >= 2 so both v7x TensorCores get work on the parallel axis.
    if batch_block is None:
        batch_block = max(1, min(8, B // 2))
    while B % batch_block:
        batch_block -= 1
    bt = batch_block

    f32, bf16 = jnp.float32, jnp.bfloat16

    def fold_bn(gamma, beta, mean, var):
        s = gamma.astype(f32) * lax.rsqrt(var.astype(f32) + eps)
        t = beta.astype(f32) - mean.astype(f32) * s
        return s.reshape(1, -1), t.reshape(1, -1)

    s1, t1 = fold_bn(params["bn1_gamma"], params["bn1_beta"],
                     params["bn1_mean"], params["bn1_var"])
    s2, t2 = fold_bn(params["bn2_gamma"], params["bn2_beta"],
                     params["bn2_mean"], params["bn2_var"])

    # (Cout, Cin, KH, KW) -> (KH*KW*Cin, Cout) im2col weights; bf16 MXU operands.
    w1_k = jnp.transpose(w1, (2, 3, 1, 0)).reshape(KH * KW * Cin, Cmid).astype(bf16)
    w2_k = jnp.transpose(w2, (2, 3, 1, 0)).reshape(KH * KW * Cmid, Cout).astype(bf16)

    # NCHW -> NHWC so channels sit on the lane axis inside the kernel.
    x = jnp.transpose(x_nchw, (0, 2, 3, 1))

    dims = (bt, H, W, Cin, Cmid, Cout, KH, KW, P,
            H1, W1, H2, W2, Hp, Wp, Hp1, Wp1)
    kernel = functools.partial(_convconv_kernel, dims=dims)

    # VMEM budget from the real lane-padded footprint (re-derived so the chosen
    # batch_block also fits v7x's 64 MiB VMEM, not just v5e/v6e's 128 MiB).
    scratch_bytes = (
        _padded_bytes((bt, Hp, Wp, Cin), f32)
        + _padded_bytes((bt * H1 * W1, KH * KW * Cin), bf16)
        + _padded_bytes((bt, Hp1, Wp1, Cmid), f32)
        + _padded_bytes((bt * H2 * W2, KH * KW * Cmid), bf16))
    io_bytes = 2 * (
        _padded_bytes((bt, H, W, Cin), x.dtype)
        + _padded_bytes((bt, Cout, H2 * W2), x_nchw.dtype)
        + _padded_bytes((KH * KW * Cin, Cmid), bf16)
        + _padded_bytes((KH * KW * Cmid, Cout), bf16)
        + 2 * _padded_bytes((1, Cin), f32)
        + 2 * _padded_bytes((1, Cmid), f32))
    est = scratch_bytes + io_bytes
    assert 2 * est <= 64 * 2 ** 20, (
        "batch_block too large for v7x's 64 MiB VMEM; reduce it")
    vmem_limit = int(min(max(2 * est, 16 * 2 ** 20), 64 * 2 ** 20))

    flops = 2 * B * (H1 * W1 * KH * KW * Cin * Cmid
                     + H2 * W2 * KH * KW * Cmid * Cout)
    bytes_accessed = int(
        x.size * jnp.dtype(x.dtype).itemsize
        + (w1_k.size + w2_k.size) * 2
        + (s1.size + t1.size + s2.size + t2.size) * 4
        + B * Cout * H2 * W2 * jnp.dtype(x_nchw.dtype).itemsize)

    out_flat = pl.pallas_call(
        kernel,
        out_shape=jax.ShapeDtypeStruct((B, Cout, H2 * W2), x_nchw.dtype),
        grid_spec=pltpu.PrefetchScalarGridSpec(
            num_scalar_prefetch=0,
            grid=(B // bt,),
            in_specs=[
                pl.BlockSpec((bt, H, W, Cin), lambda b: (b, 0, 0, 0)),
                pl.BlockSpec((KH * KW * Cin, Cmid), lambda b: (0, 0)),
                pl.BlockSpec((1, Cin), lambda b: (0, 0)),
                pl.BlockSpec((1, Cin), lambda b: (0, 0)),
                pl.BlockSpec((KH * KW * Cmid, Cout), lambda b: (0, 0)),
                pl.BlockSpec((1, Cmid), lambda b: (0, 0)),
                pl.BlockSpec((1, Cmid), lambda b: (0, 0)),
            ],
            # NCHW-flat output block: last dim H2*W2 (256 for 16x16 inputs) is
            # lane-dense -> unmasked stores; wrapper only reshapes.
            out_specs=pl.BlockSpec((bt, Cout, H2 * W2), lambda b: (b, 0, 0)),
            scratch_shapes=[
                pltpu.VMEM((bt, Hp, Wp, Cin), f32),                # padded BN1(x)
                pltpu.VMEM((bt * H1 * W1, KH * KW * Cin), bf16),   # im2col conv1
                pltpu.VMEM((bt, Hp1, Wp1, Cmid), f32),             # padded BN2(h1)
                pltpu.VMEM((bt * H2 * W2, KH * KW * Cmid), bf16),  # im2col conv2
            ],
        ),
        compiler_params=pltpu.CompilerParams(
            dimension_semantics=("parallel",),
            vmem_limit_bytes=vmem_limit,
        ),
        cost_estimate=pl.CostEstimate(flops=flops, transcendentals=0,
                                      bytes_accessed=bytes_accessed),
    )(x, w1_k, s1, t1, w2_k, s2, t2)

    return out_flat.reshape(B, Cout, H2, W2)      # already NCHW


def _reference(x_nchw, params, *, stride, padding, eps,
               operand_dtype=jnp.float32, precision=lax.Precision.HIGHEST):
    """Plain-JAX reference matching the PyTorch module (inference-mode BN).

    operand_dtype=bf16 reproduces the kernel's single-pass bf16 operand rounding
    (with f32 accumulation) exactly, for a tight structural check.
    """
    def std_block(x_nhwc, w, gamma, beta, mean, var):
        s = gamma * lax.rsqrt(var + eps)
        xn = x_nhwc * s + (beta - mean * s)
        w_hwio = jnp.transpose(w, (2, 3, 1, 0))
        y = lax.conv_general_dilated(
            xn.astype(operand_dtype), w_hwio.astype(operand_dtype),
            window_strides=(stride, stride),
            padding=((padding, padding), (padding, padding)),
            dimension_numbers=("NHWC", "HWIO", "NHWC"),
            preferred_element_type=jnp.float32,
            precision=precision)
        return jnp.maximum(y, 0.0)

    x = jnp.transpose(x_nchw, (0, 2, 3, 1))
    x = std_block(x, params["conv1_w"], params["bn1_gamma"], params["bn1_beta"],
                  params["bn1_mean"], params["bn1_var"])
    x = std_block(x, params["conv2_w"], params["bn2_gamma"], params["bn2_beta"],
                  params["bn2_mean"], params["bn2_var"])
    return jnp.transpose(x, (0, 3, 1, 2))


if __name__ == "__main__":
    key = jax.random.PRNGKey(0)
    ks = jax.random.split(key, 11)

    B, Cin, H, W = 2, 4, 16, 16
    Cout, k = 32, 3

    x = jax.random.normal(ks[0], (B, Cin, H, W), dtype=jnp.float32)
    params = {
        "conv1_w": 0.2 * jax.random.normal(ks[1], (Cout, Cin, k, k), jnp.float32),
        "bn1_gamma": 1.0 + 0.1 * jax.random.normal(ks[2], (Cin,), jnp.float32),
        "bn1_beta": 0.1 * jax.random.normal(ks[3], (Cin,), jnp.float32),
        "bn1_mean": 0.1 * jax.random.normal(ks[4], (Cin,), jnp.float32),
        "bn1_var": 0.5 + jax.nn.softplus(jax.random.normal(ks[5], (Cin,), jnp.float32)),
        "conv2_w": 0.1 * jax.random.normal(ks[6], (Cout, Cout, k, k), jnp.float32),
        "bn2_gamma": 1.0 + 0.1 * jax.random.normal(ks[7], (Cout,), jnp.float32),
        "bn2_beta": 0.1 * jax.random.normal(ks[8], (Cout,), jnp.float32),
        "bn2_mean": 0.1 * jax.random.normal(ks[9], (Cout,), jnp.float32),
        "bn2_var": 0.5 + jax.nn.softplus(jax.random.normal(ks[10], (Cout,), jnp.float32)),
    }

    out = conv_conv_block(x, params, kernel_size=k, stride=1, padding=1)
    out = jax.block_until_ready(out)

    # Structural check: reference with the kernel's bf16 operand rounding and
    # f32 accumulation -> differences come only from summation order.
    ref_matched = _reference(x, params, stride=1, padding=1, eps=1e-5,
                             operand_dtype=jnp.bfloat16,
                             precision=lax.Precision.DEFAULT)
    # Fidelity check vs the full-f32 (PyTorch-numerics) reference; error is
    # bounded by the single-pass bf16 MXU choice made per the perf review.
    ref_f32 = _reference(x, params, stride=1, padding=1, eps=1e-5)

    assert out.shape == ref_f32.shape == (B, Cout, H, W), (out.shape, ref_f32.shape)
    err_matched = float(jnp.max(jnp.abs(out - ref_matched)))
    err_f32 = float(jnp.max(jnp.abs(out - ref_f32)))
    assert err_matched < 1e-2, f"matched-precision max abs err {err_matched}"
    assert err_f32 < 1e-1, f"f32-reference max abs err {err_f32}"

    print("KERNEL_OK")
</pallas_src>

<mosaic_0001>
module attributes {stable_mosaic.version = 11 : i64} {
  func.func @_convconv_kernel(%arg0: i32, %arg1: memref<1x16x16x4xf32, #tpu.memory_space<vmem>>, %arg2: memref<36x32xbf16, #tpu.memory_space<vmem>>, %arg3: memref<1x4xf32, #tpu.memory_space<vmem>>, %arg4: memref<1x4xf32, #tpu.memory_space<vmem>>, %arg5: memref<288x32xbf16, #tpu.memory_space<vmem>>, %arg6: memref<1x32xf32, #tpu.memory_space<vmem>>, %arg7: memref<1x32xf32, #tpu.memory_space<vmem>>, %arg8: memref<1x32x256xf32, #tpu.memory_space<vmem>>, %arg9: memref<1x18x18x4xf32, #tpu.memory_space<vmem>>, %arg10: memref<256x36xbf16, #tpu.memory_space<vmem>>, %arg11: memref<1x18x18x32xf32, #tpu.memory_space<vmem>>, %arg12: memref<256x288xbf16, #tpu.memory_space<vmem>>) attributes {dimension_semantics = [#tpu.dimension_semantics<parallel>], iteration_bounds = array<i64: 2>, scalar_prefetch = 0 : i64, scratch_operands = 4 : i64, tpu.core_type = #tpu.core_type<tc>, window_params = [{transform_indices = @transform_0, window_bounds = array<i64: 1, 16, 16, 4>}, {pipeline_mode = #tpu.pipeline_mode<synchronous>, transform_indices = @transform_1, window_bounds = array<i64: 36, 32>}, {pipeline_mode = #tpu.pipeline_mode<synchronous>, transform_indices = @transform_2, window_bounds = array<i64: 1, 4>}, {pipeline_mode = #tpu.pipeline_mode<synchronous>, transform_indices = @transform_3, window_bounds = array<i64: 1, 4>}, {pipeline_mode = #tpu.pipeline_mode<synchronous>, transform_indices = @transform_4, window_bounds = array<i64: 288, 32>}, {pipeline_mode = #tpu.pipeline_mode<synchronous>, transform_indices = @transform_5, window_bounds = array<i64: 1, 32>}, {pipeline_mode = #tpu.pipeline_mode<synchronous>, transform_indices = @transform_6, window_bounds = array<i64: 1, 32>}, {transform_indices = @transform_7, window_bounds = array<i64: 1, 32, 256>}]} {
    %cst = arith.constant 0.000000e+00 : f32
    %0 = vector.broadcast %cst : f32 to vector<1x1x18x4xf32>
    %c0 = arith.constant 0 : index
    %c0_0 = arith.constant 0 : index
    %c0_1 = arith.constant 0 : index
    %c0_2 = arith.constant 0 : index
    %1 = vector.load %arg9[%c0, %c0_0, %c0_1, %c0_2] : memref<1x18x18x4xf32, #tpu.memory_space<vmem>>, vector<1x1x18x4xf32>
    tpu.vector_store %arg9[%c0, %c0_0, %c0_1, %c0_2], %0 {strides = array<i32>} : memref<1x18x18x4xf32, #tpu.memory_space<vmem>>, vector<1x1x18x4xf32>,
    %cst_3 = arith.constant 0.000000e+00 : f32
    %2 = vector.broadcast %cst_3 : f32 to vector<1x1x18x4xf32>
    %c0_4 = arith.constant 0 : index
    %c17 = arith.constant 17 : index
    %c0_5 = arith.constant 0 : index
    %c0_6 = arith.constant 0 : index
    %3 = vector.load %arg9[%c0_4, %c17, %c0_5, %c0_6] : memref<1x18x18x4xf32, #tpu.memory_space<vmem>>, vector<1x1x18x4xf32>
    tpu.vector_store %arg9[%c0_4, %c17, %c0_5, %c0_6], %2 {strides = array<i32>} : memref<1x18x18x4xf32, #tpu.memory_space<vmem>>, vector<1x1x18x4xf32>,
    %cst_7 = arith.constant 0.000000e+00 : f32
    %4 = vector.broadcast %cst_7 : f32 to vector<1x18x1x4xf32>
    %c0_8 = arith.constant 0 : index
    %c0_9 = arith.constant 0 : index
    %c0_10 = arith.constant 0 : index
    %c0_11 = arith.constant 0 : index
    %5 = vector.load %arg9[%c0_8, %c0_9, %c0_10, %c0_11] : memref<1x18x18x4xf32, #tpu.memory_space<vmem>>, vector<1x18x1x4xf32>
    tpu.vector_store %arg9[%c0_8, %c0_9, %c0_10, %c0_11], %4 {strides = array<i32>} : memref<1x18x18x4xf32, #tpu.memory_space<vmem>>, vector<1x18x1x4xf32>,
    %cst_12 = arith.constant 0.000000e+00 : f32
    %6 = vector.broadcast %cst_12 : f32 to vector<1x18x1x4xf32>
    %c0_13 = arith.constant 0 : index
    %c0_14 = arith.constant 0 : index
    %c17_15 = arith.constant 17 : index
    %c0_16 = arith.constant 0 : index
    %7 = vector.load %arg9[%c0_13, %c0_14, %c17_15, %c0_16] : memref<1x18x18x4xf32, #tpu.memory_space<vmem>>, vector<1x18x1x4xf32>
    tpu.vector_store %arg9[%c0_13, %c0_14, %c17_15, %c0_16], %6 {strides = array<i32>} : memref<1x18x18x4xf32, #tpu.memory_space<vmem>>, vector<1x18x1x4xf32>,
    %c0_17 = arith.constant 0 : index
    %c0_18 = arith.constant 0 : index
    %c0_19 = arith.constant 0 : index
    %c0_20 = arith.constant 0 : index
    %8 = vector.load %arg1[%c0_17, %c0_18, %c0_19, %c0_20] : memref<1x16x16x4xf32, #tpu.memory_space<vmem>>, vector<1x16x16x4xf32>
    %c0_21 = arith.constant 0 : index
    %c0_22 = arith.constant 0 : index
    %9 = vector.load %arg3[%c0_21, %c0_22] : memref<1x4xf32, #tpu.memory_space<vmem>>, vector<1x4xf32>
    %10 = vector.shape_cast %9 : vector<1x4xf32> to vector<1x1x1x4xf32>
    %11 = vector.broadcast %10 : vector<1x1x1x4xf32> to vector<1x16x16x4xf32>
    %12 = arith.mulf %8, %11 : vector<1x16x16x4xf32>
    %c0_23 = arith.constant 0 : index
    %c0_24 = arith.constant 0 : index
    %13 = vector.load %arg4[%c0_23, %c0_24] : memref<1x4xf32, #tpu.memory_space<vmem>>, vector<1x4xf32>
    %14 = vector.shape_cast %13 : vector<1x4xf32> to vector<1x1x1x4xf32>
    %15 = vector.broadcast %14 : vector<1x1x1x4xf32> to vector<1x16x16x4xf32>
    %16 = arith.addf %12, %15 : vector<1x16x16x4xf32>
    %c0_25 = arith.constant 0 : index
    %c1 = arith.constant 1 : index
    %c1_26 = arith.constant 1 : index
    %c0_27 = arith.constant 0 : index
    %17 = vector.load %arg9[%c0_25, %c1, %c1_26, %c0_27] : memref<1x18x18x4xf32, #tpu.memory_space<vmem>>, vector<1x16x16x4xf32>
    tpu.vector_store %arg9[%c0_25, %c1, %c1_26, %c0_27], %16 {strides = array<i32>} : memref<1x18x18x4xf32, #tpu.memory_space<vmem>>, vector<1x16x16x4xf32>,
    %c0_28 = arith.constant 0 : index
    %c0_29 = arith.constant 0 : index
    %c0_30 = arith.constant 0 : index
    %c0_31 = arith.constant 0 : index
    %18 = vector.load %arg9[%c0_28, %c0_29, %c0_30, %c0_31] : memref<1x18x18x4xf32, #tpu.memory_space<vmem>>, vector<1x16x16x4xf32>
    %19 = vector.shape_cast %18 : vector<1x16x16x4xf32> to vector<256x4xf32>
    %20 = arith.truncf %19 : vector<256x4xf32> to vector<256x4xbf16>
    %c0_32 = arith.constant 0 : index
    %c0_33 = arith.constant 0 : index
    %21 = vector.load %arg10[%c0_32, %c0_33] : memref<256x36xbf16, #tpu.memory_space<vmem>>, vector<256x4xbf16>
    tpu.vector_store %arg10[%c0_32, %c0_33], %20 {strides = array<i32>} : memref<256x36xbf16, #tpu.memory_space<vmem>>, vector<256x4xbf16>,
    %c0_34 = arith.constant 0 : index
    %c0_35 = arith.constant 0 : index
    %c1_36 = arith.constant 1 : index
    %c0_37 = arith.constant 0 : index
    %22 = vector.load %arg9[%c0_34, %c0_35, %c1_36, %c0_37] : memref<1x18x18x4xf32, #tpu.memory_space<vmem>>, vector<1x16x16x4xf32>
    %23 = vector.shape_cast %22 : vector<1x16x16x4xf32> to vector<256x4xf32>
    %24 = arith.truncf %23 : vector<256x4xf32> to vector<256x4xbf16>
    %c0_38 = arith.constant 0 : index
    %c4 = arith.constant 4 : index
    %25 = vector.load %arg10[%c0_38, %c4] : memref<256x36xbf16, #tpu.memory_space<vmem>>, vector<256x4xbf16>
    tpu.vector_store %arg10[%c0_38, %c4], %24 {strides = array<i32>} : memref<256x36xbf16, #tpu.memory_space<vmem>>, vector<256x4xbf16>,
    %c0_39 = arith.constant 0 : index
    %c0_40 = arith.constant 0 : index
    %c2 = arith.constant 2 : index
    %c0_41 = arith.constant 0 : index
    %26 = vector.load %arg9[%c0_39, %c0_40, %c2, %c0_41] : memref<1x18x18x4xf32, #tpu.memory_space<vmem>>, vector<1x16x16x4xf32>
    %27 = vector.shape_cast %26 : vector<1x16x16x4xf32> to vector<256x4xf32>
    %28 = arith.truncf %27 : vector<256x4xf32> to vector<256x4xbf16>
    %c0_42 = arith.constant 0 : index
    %c8 = arith.constant 8 : index
    %29 = vector.load %arg10[%c0_42, %c8] : memref<256x36xbf16, #tpu.memory_space<vmem>>, vector<256x4xbf16>
    tpu.vector_store %arg10[%c0_42, %c8], %28 {strides = array<i32>} : memref<256x36xbf16, #tpu.memory_space<vmem>>, vector<256x4xbf16>,
    %c0_43 = arith.constant 0 : index
    %c1_44 = arith.constant 1 : index
    %c0_45 = arith.constant 0 : index
    %c0_46 = arith.constant 0 : index
    %30 = vector.load %arg9[%c0_43, %c1_44, %c0_45, %c0_46] : memref<1x18x18x4xf32, #tpu.memory_space<vmem>>, vector<1x16x16x4xf32>
    %31 = vector.shape_cast %30 : vector<1x16x16x4xf32> to vector<256x4xf32>
    %32 = arith.truncf %31 : vector<256x4xf32> to vector<256x4xbf16>
    %c0_47 = arith.constant 0 : index
    %c12 = arith.constant 12 : index
    %33 = vector.load %arg10[%c0_47, %c12] : memref<256x36xbf16, #tpu.memory_space<vmem>>, vector<256x4xbf16>
    tpu.vector_store %arg10[%c0_47, %c12], %32 {strides = array<i32>} : memref<256x36xbf16, #tpu.memory_space<vmem>>, vector<256x4xbf16>,
    %c0_48 = arith.constant 0 : index
    %c1_49 = arith.constant 1 : index
    %c1_50 = arith.constant 1 : index
    %c0_51 = arith.constant 0 : index
    %34 = vector.load %arg9[%c0_48, %c1_49, %c1_50, %c0_51] : memref<1x18x18x4xf32, #tpu.memory_space<vmem>>, vector<1x16x16x4xf32>
    %35 = vector.shape_cast %34 : vector<1x16x16x4xf32> to vector<256x4xf32>
    %36 = arith.truncf %35 : vector<256x4xf32> to vector<256x4xbf16>
    %c0_52 = arith.constant 0 : index
    %c16 = arith.constant 16 : index
    %37 = vector.load %arg10[%c0_52, %c16] : memref<256x36xbf16, #tpu.memory_space<vmem>>, vector<256x4xbf16>
    tpu.vector_store %arg10[%c0_52, %c16], %36 {strides = array<i32>} : memref<256x36xbf16, #tpu.memory_space<vmem>>, vector<256x4xbf16>,
    %c0_53 = arith.constant 0 : index
    %c1_54 = arith.constant 1 : index
    %c2_55 = arith.constant 2 : index
    %c0_56 = arith.constant 0 : index
    %38 = vector.load %arg9[%c0_53, %c1_54, %c2_55, %c0_56] : memref<1x18x18x4xf32, #tpu.memory_space<vmem>>, vector<1x16x16x4xf32>
    %39 = vector.shape_cast %38 : vector<1x16x16x4xf32> to vector<256x4xf32>
    %40 = arith.truncf %39 : vector<256x4xf32> to vector<256x4xbf16>
    %c0_57 = arith.constant 0 : index
    %c20 = arith.constant 20 : index
    %41 = vector.load %arg10[%c0_57, %c20] : memref<256x36xbf16, #tpu.memory_space<vmem>>, vector<256x4xbf16>
    tpu.vector_store %arg10[%c0_57, %c20], %40 {strides = array<i32>} : memref<256x36xbf16, #tpu.memory_space<vmem>>, vector<256x4xbf16>,
    %c0_58 = arith.constant 0 : index
    %c2_59 = arith.constant 2 : index
    %c0_60 = arith.constant 0 : index
    %c0_61 = arith.constant 0 : index
    %42 = vector.load %arg9[%c0_58, %c2_59, %c0_60, %c0_61] : memref<1x18x18x4xf32, #tpu.memory_space<vmem>>, vector<1x16x16x4xf32>
    %43 = vector.shape_cast %42 : vector<1x16x16x4xf32> to vector<256x4xf32>
    %44 = arith.truncf %43 : vector<256x4xf32> to vector<256x4xbf16>
    %c0_62 = arith.constant 0 : index
    %c24 = arith.constant 24 : index
    %45 = vector.load %arg10[%c0_62, %c24] : memref<256x36xbf16, #tpu.memory_space<vmem>>, vector<256x4xbf16>
    tpu.vector_store %arg10[%c0_62, %c24], %44 {strides = array<i32>} : memref<256x36xbf16, #tpu.memory_space<vmem>>, vector<256x4xbf16>,
    %c0_63 = arith.constant 0 : index
    %c2_64 = arith.constant 2 : index
    %c1_65 = arith.constant 1 : index
    %c0_66 = arith.constant 0 : index
    %46 = vector.load %arg9[%c0_63, %c2_64, %c1_65, %c0_66] : memref<1x18x18x4xf32, #tpu.memory_space<vmem>>, vector<1x16x16x4xf32>
    %47 = vector.shape_cast %46 : vector<1x16x16x4xf32> to vector<256x4xf32>
    %48 = arith.truncf %47 : vector<256x4xf32> to vector<256x4xbf16>
    %c0_67 = arith.constant 0 : index
    %c28 = arith.constant 28 : index
    %49 = vector.load %arg10[%c0_67, %c28] : memref<256x36xbf16, #tpu.memory_space<vmem>>, vector<256x4xbf16>
    tpu.vector_store %arg10[%c0_67, %c28], %48 {strides = array<i32>} : memref<256x36xbf16, #tpu.memory_space<vmem>>, vector<256x4xbf16>,
    %c0_68 = arith.constant 0 : index
    %c2_69 = arith.constant 2 : index
    %c2_70 = arith.constant 2 : index
    %c0_71 = arith.constant 0 : index
    %50 = vector.load %arg9[%c0_68, %c2_69, %c2_70, %c0_71] : memref<1x18x18x4xf32, #tpu.memory_space<vmem>>, vector<1x16x16x4xf32>
    %51 = vector.shape_cast %50 : vector<1x16x16x4xf32> to vector<256x4xf32>
    %52 = arith.truncf %51 : vector<256x4xf32> to vector<256x4xbf16>
    %c0_72 = arith.constant 0 : index
    %c32 = arith.constant 32 : index
    %53 = vector.load %arg10[%c0_72, %c32] : memref<256x36xbf16, #tpu.memory_space<vmem>>, vector<256x4xbf16>
    tpu.vector_store %arg10[%c0_72, %c32], %52 {strides = array<i32>} : memref<256x36xbf16, #tpu.memory_space<vmem>>, vector<256x4xbf16>,
    %c0_73 = arith.constant 0 : index
    %c0_74 = arith.constant 0 : index
    %54 = vector.load %arg10[%c0_73, %c0_74] : memref<256x36xbf16, #tpu.memory_space<vmem>>, vector<256x36xbf16>
    %c0_75 = arith.constant 0 : index
    %c0_76 = arith.constant 0 : index
    %55 = vector.load %arg2[%c0_75, %c0_76] : memref<36x32xbf16, #tpu.memory_space<vmem>>, vector<36x32xbf16>
    %cst_77 = arith.constant dense<0.000000e+00> : vector<256x32xf32>
    %56 = tpu.matmul %54, %55, %cst_77 {dimension_numbers = #tpu.dot_dimension_numbers<[1], [0], [0], [1], [0, 0, 1, 1], [], []>} : vector<256x36xbf16>, vector<36x32xbf16>, vector<256x32xf32> -> vector<256x32xf32>
    %cst_78 = arith.constant 0.000000e+00 : f32
    %57 = vector.broadcast %cst_78 : f32 to vector<256x32xf32>
    %58 = arith.maximumf %56, %57 : vector<256x32xf32>
    %c0_79 = arith.constant 0 : index
    %c0_80 = arith.constant 0 : index
    %59 = vector.load %arg6[%c0_79, %c0_80] : memref<1x32xf32, #tpu.memory_space<vmem>>, vector<1x32xf32>
    %60 = vector.broadcast %59 : vector<1x32xf32> to vector<256x32xf32>
    %61 = arith.mulf %58, %60 : vector<256x32xf32>
    %c0_81 = arith.constant 0 : index
    %c0_82 = arith.constant 0 : index
    %62 = vector.load %arg7[%c0_81, %c0_82] : memref<1x32xf32, #tpu.memory_space<vmem>>, vector<1x32xf32>
    %63 = vector.broadcast %62 : vector<1x32xf32> to vector<256x32xf32>
    %64 = arith.addf %61, %63 : vector<256x32xf32>
    %cst_83 = arith.constant 0.000000e+00 : f32
    %65 = vector.broadcast %cst_83 : f32 to vector<1x1x18x32xf32>
    %c0_84 = arith.constant 0 : index
    %c0_85 = arith.constant 0 : index
    %c0_86 = arith.constant 0 : index
    %c0_87 = arith.constant 0 : index
    %66 = vector.load %arg11[%c0_84, %c0_85, %c0_86, %c0_87] : memref<1x18x18x32xf32, #tpu.memory_space<vmem>>, vector<1x1x18x32xf32>
    tpu.vector_store %arg11[%c0_84, %c0_85, %c0_86, %c0_87], %65 {strides = array<i32>} : memref<1x18x18x32xf32, #tpu.memory_space<vmem>>, vector<1x1x18x32xf32>,
    %cst_88 = arith.constant 0.000000e+00 : f32
    %67 = vector.broadcast %cst_88 : f32 to vector<1x1x18x32xf32>
    %c0_89 = arith.constant 0 : index
    %c17_90 = arith.constant 17 : index
    %c0_91 = arith.constant 0 : index
    %c0_92 = arith.constant 0 : index
    %68 = vector.load %arg11[%c0_89, %c17_90, %c0_91, %c0_92] : memref<1x18x18x32xf32, #tpu.memory_space<vmem>>, vector<1x1x18x32xf32>
    tpu.vector_store %arg11[%c0_89, %c17_90, %c0_91, %c0_92], %67 {strides = array<i32>} : memref<1x18x18x32xf32, #tpu.memory_space<vmem>>, vector<1x1x18x32xf32>,
    %cst_93 = arith.constant 0.000000e+00 : f32
    %69 = vector.broadcast %cst_93 : f32 to vector<1x18x1x32xf32>
    %c0_94 = arith.constant 0 : index
    %c0_95 = arith.constant 0 : index
    %c0_96 = arith.constant 0 : index
    %c0_97 = arith.constant 0 : index
    %70 = vector.load %arg11[%c0_94, %c0_95, %c0_96, %c0_97] : memref<1x18x18x32xf32, #tpu.memory_space<vmem>>, vector<1x18x1x32xf32>
    tpu.vector_store %arg11[%c0_94, %c0_95, %c0_96, %c0_97], %69 {strides = array<i32>} : memref<1x18x18x32xf32, #tpu.memory_space<vmem>>, vector<1x18x1x32xf32>,
    %cst_98 = arith.constant 0.000000e+00 : f32
    %71 = vector.broadcast %cst_98 : f32 to vector<1x18x1x32xf32>
    %c0_99 = arith.constant 0 : index
    %c0_100 = arith.constant 0 : index
    %c17_101 = arith.constant 17 : index
    %c0_102 = arith.constant 0 : index
    %72 = vector.load %arg11[%c0_99, %c0_100, %c17_101, %c0_102] : memref<1x18x18x32xf32, #tpu.memory_space<vmem>>, vector<1x18x1x32xf32>
    tpu.vector_store %arg11[%c0_99, %c0_100, %c17_101, %c0_102], %71 {strides = array<i32>} : memref<1x18x18x32xf32, #tpu.memory_space<vmem>>, vector<1x18x1x32xf32>,
    %73 = vector.shape_cast %64 : vector<256x32xf32> to vector<1x16x16x32xf32>
    %c0_103 = arith.constant 0 : index
    %c1_104 = arith.constant 1 : index
    %c1_105 = arith.constant 1 : index
    %c0_106 = arith.constant 0 : index
    %74 = vector.load %arg11[%c0_103, %c1_104, %c1_105, %c0_106] : memref<1x18x18x32xf32, #tpu.memory_space<vmem>>, vector<1x16x16x32xf32>
    tpu.vector_store %arg11[%c0_103, %c1_104, %c1_105, %c0_106], %73 {strides = array<i32>} : memref<1x18x18x32xf32, #tpu.memory_space<vmem>>, vector<1x16x16x32xf32>,
    %c0_107 = arith.constant 0 : index
    %c0_108 = arith.constant 0 : index
    %c0_109 = arith.constant 0 : index
    %c0_110 = arith.constant 0 : index
    %75 = vector.load %arg11[%c0_107, %c0_108, %c0_109, %c0_110] : memref<1x18x18x32xf32, #tpu.memory_space<vmem>>, vector<1x16x16x32xf32>
    %76 = vector.shape_cast %75 : vector<1x16x16x32xf32> to vector<256x32xf32>
    %77 = arith.truncf %76 : vector<256x32xf32> to vector<256x32xbf16>
    %c0_111 = arith.constant 0 : index
    %c0_112 = arith.constant 0 : index
    %78 = vector.load %arg12[%c0_111, %c0_112] : memref<256x288xbf16, #tpu.memory_space<vmem>>, vector<256x32xbf16>
    tpu.vector_store %arg12[%c0_111, %c0_112], %77 {strides = array<i32>} : memref<256x288xbf16, #tpu.memory_space<vmem>>, vector<256x32xbf16>,
    %c0_113 = arith.constant 0 : index
    %c0_114 = arith.constant 0 : index
    %c1_115 = arith.constant 1 : index
    %c0_116 = arith.constant 0 : index
    %79 = vector.load %arg11[%c0_113, %c0_114, %c1_115, %c0_116] : memref<1x18x18x32xf32, #tpu.memory_space<vmem>>, vector<1x16x16x32xf32>
    %80 = vector.shape_cast %79 : vector<1x16x16x32xf32> to vector<256x32xf32>
    %81 = arith.truncf %80 : vector<256x32xf32> to vector<256x32xbf16>
    %c0_117 = arith.constant 0 : index
    %c32_118 = arith.constant 32 : index
    %82 = vector.load %arg12[%c0_117, %c32_118] : memref<256x288xbf16, #tpu.memory_space<vmem>>, vector<256x32xbf16>
    tpu.vector_store %arg12[%c0_117, %c32_118], %81 {strides = array<i32>} : memref<256x288xbf16, #tpu.memory_space<vmem>>, vector<256x32xbf16>,
    %c0_119 = arith.constant 0 : index
    %c0_120 = arith.constant 0 : index
    %c2_121 = arith.constant 2 : index
    %c0_122 = arith.constant 0 : index
    %83 = vector.load %arg11[%c0_119, %c0_120, %c2_121, %c0_122] : memref<1x18x18x32xf32, #tpu.memory_space<vmem>>, vector<1x16x16x32xf32>
    %84 = vector.shape_cast %83 : vector<1x16x16x32xf32> to vector<256x32xf32>
    %85 = arith.truncf %84 : vector<256x32xf32> to vector<256x32xbf16>
    %c0_123 = arith.constant 0 : index
    %c64 = arith.constant 64 : index
    %86 = vector.load %arg12[%c0_123, %c64] : memref<256x288xbf16, #tpu.memory_space<vmem>>, vector<256x32xbf16>
    tpu.vector_store %arg12[%c0_123, %c64], %85 {strides = array<i32>} : memref<256x288xbf16, #tpu.memory_space<vmem>>, vector<256x32xbf16>,
    %c0_124 = arith.constant 0 : index
    %c1_125 = arith.constant 1 : index
    %c0_126 = arith.constant 0 : index
    %c0_127 = arith.constant 0 : index
    %87 = vector.load %arg11[%c0_124, %c1_125, %c0_126, %c0_127] : memref<1x18x18x32xf32, #tpu.memory_space<vmem>>, vector<1x16x16x32xf32>
    %88 = vector.shape_cast %87 : vector<1x16x16x32xf32> to vector<256x32xf32>
    %89 = arith.truncf %88 : vector<256x32xf32> to vector<256x32xbf16>
    %c0_128 = arith.constant 0 : index
    %c96 = arith.constant 96 : index
    %90 = vector.load %arg12[%c0_128, %c96] : memref<256x288xbf16, #tpu.memory_space<vmem>>, vector<256x32xbf16>
    tpu.vector_store %arg12[%c0_128, %c96], %89 {strides = array<i32>} : memref<256x288xbf16, #tpu.memory_space<vmem>>, vector<256x32xbf16>,
    %c0_129 = arith.constant 0 : index
    %c1_130 = arith.constant 1 : index
    %c1_131 = arith.constant 1 : index
    %c0_132 = arith.constant 0 : index
    %91 = vector.load %arg11[%c0_129, %c1_130, %c1_131, %c0_132] : memref<1x18x18x32xf32, #tpu.memory_space<vmem>>, vector<1x16x16x32xf32>
    %92 = vector.shape_cast %91 : vector<1x16x16x32xf32> to vector<256x32xf32>
    %93 = arith.truncf %92 : vector<256x32xf32> to vector<256x32xbf16>
    %c0_133 = arith.constant 0 : index
    %c128 = arith.constant 128 : index
    %94 = vector.load %arg12[%c0_133, %c128] : memref<256x288xbf16, #tpu.memory_space<vmem>>, vector<256x32xbf16>
    tpu.vector_store %arg12[%c0_133, %c128], %93 {strides = array<i32>} : memref<256x288xbf16, #tpu.memory_space<vmem>>, vector<256x32xbf16>,
    %c0_134 = arith.constant 0 : index
    %c1_135 = arith.constant 1 : index
    %c2_136 = arith.constant 2 : index
    %c0_137 = arith.constant 0 : index
    %95 = vector.load %arg11[%c0_134, %c1_135, %c2_136, %c0_137] : memref<1x18x18x32xf32, #tpu.memory_space<vmem>>, vector<1x16x16x32xf32>
    %96 = vector.shape_cast %95 : vector<1x16x16x32xf32> to vector<256x32xf32>
    %97 = arith.truncf %96 : vector<256x32xf32> to vector<256x32xbf16>
    %c0_138 = arith.constant 0 : index
    %c160 = arith.constant 160 : index
    %98 = vector.load %arg12[%c0_138, %c160] : memref<256x288xbf16, #tpu.memory_space<vmem>>, vector<256x32xbf16>
    tpu.vector_store %arg12[%c0_138, %c160], %97 {strides = array<i32>} : memref<256x288xbf16, #tpu.memory_space<vmem>>, vector<256x32xbf16>,
    %c0_139 = arith.constant 0 : index
    %c2_140 = arith.constant 2 : index
    %c0_141 = arith.constant 0 : index
    %c0_142 = arith.constant 0 : index
    %99 = vector.load %arg11[%c0_139, %c2_140, %c0_141, %c0_142] : memref<1x18x18x32xf32, #tpu.memory_space<vmem>>, vector<1x16x16x32xf32>
    %100 = vector.shape_cast %99 : vector<1x16x16x32xf32> to vector<256x32xf32>
    %101 = arith.truncf %100 : vector<256x32xf32> to vector<256x32xbf16>
    %c0_143 = arith.constant 0 : index
    %c192 = arith.constant 192 : index
    %102 = vector.load %arg12[%c0_143, %c192] : memref<256x288xbf16, #tpu.memory_space<vmem>>, vector<256x32xbf16>
    tpu.vector_store %arg12[%c0_143, %c192], %101 {strides = array<i32>} : memref<256x288xbf16, #tpu.memory_space<vmem>>, vector<256x32xbf16>,
    %c0_144 = arith.constant 0 : index
    %c2_145 = arith.constant 2 : index
    %c1_146 = arith.constant 1 : index
    %c0_147 = arith.constant 0 : index
    %103 = vector.load %arg11[%c0_144, %c2_145, %c1_146, %c0_147] : memref<1x18x18x32xf32, #tpu.memory_space<vmem>>, vector<1x16x16x32xf32>
    %104 = vector.shape_cast %103 : vector<1x16x16x32xf32> to vector<256x32xf32>
    %105 = arith.truncf %104 : vector<256x32xf32> to vector<256x32xbf16>
    %c0_148 = arith.constant 0 : index
    %c224 = arith.constant 224 : index
    %106 = vector.load %arg12[%c0_148, %c224] : memref<256x288xbf16, #tpu.memory_space<vmem>>, vector<256x32xbf16>
    tpu.vector_store %arg12[%c0_148, %c224], %105 {strides = array<i32>} : memref<256x288xbf16, #tpu.memory_space<vmem>>, vector<256x32xbf16>,
    %c0_149 = arith.constant 0 : index
    %c2_150 = arith.constant 2 : index
    %c2_151 = arith.constant 2 : index
    %c0_152 = arith.constant 0 : index
    %107 = vector.load %arg11[%c0_149, %c2_150, %c2_151, %c0_152] : memref<1x18x18x32xf32, #tpu.memory_space<vmem>>, vector<1x16x16x32xf32>
    %108 = vector.shape_cast %107 : vector<1x16x16x32xf32> to vector<256x32xf32>
    %109 = arith.truncf %108 : vector<256x32xf32> to vector<256x32xbf16>
    %c0_153 = arith.constant 0 : index
    %c256 = arith.constant 256 : index
    %110 = vector.load %arg12[%c0_153, %c256] : memref<256x288xbf16, #tpu.memory_space<vmem>>, vector<256x32xbf16>
    tpu.vector_store %arg12[%c0_153, %c256], %109 {strides = array<i32>} : memref<256x288xbf16, #tpu.memory_space<vmem>>, vector<256x32xbf16>,
    %c0_154 = arith.constant 0 : index
    %c0_155 = arith.constant 0 : index
    %111 = vector.load %arg12[%c0_154, %c0_155] : memref<256x288xbf16, #tpu.memory_space<vmem>>, vector<256x288xbf16>
    %c0_156 = arith.constant 0 : index
    %c0_157 = arith.constant 0 : index
    %112 = vector.load %arg5[%c0_156, %c0_157] : memref<288x32xbf16, #tpu.memory_space<vmem>>, vector<288x32xbf16>
    %cst_158 = arith.constant dense<0.000000e+00> : vector<256x32xf32>
    %113 = tpu.matmul %111, %112, %cst_158 {dimension_numbers = #tpu.dot_dimension_numbers<[1], [0], [0], [1], [0, 0, 1, 1], [], []>} : vector<256x288xbf16>, vector<288x32xbf16>, vector<256x32xf32> -> vector<256x32xf32>
    %cst_159 = arith.constant 0.000000e+00 : f32
    %114 = vector.broadcast %cst_159 : f32 to vector<256x32xf32>
    %115 = arith.maximumf %113, %114 : vector<256x32xf32>
    %116 = vector.shape_cast %115 : vector<256x32xf32> to vector<1x256x32xf32>
    %117 = tpu.transpose %116, [0, 2, 1] : vector<1x256x32xf32> -> vector<1x32x256xf32>
    %c0_160 = arith.constant 0 : index
    %c0_161 = arith.constant 0 : index
    %c0_162 = arith.constant 0 : index
    %118 = vector.load %arg8[%c0_160, %c0_161, %c0_162] : memref<1x32x256xf32, #tpu.memory_space<vmem>>, vector<1x32x256xf32>
    tpu.vector_store %arg8[%c0_160, %c0_161, %c0_162], %117 {strides = array<i32>} : memref<1x32x256xf32, #tpu.memory_space<vmem>>, vector<1x32x256xf32>,
    return
  }
  func.func @transform_0(%arg0: i32) -> (i32, i32, i32, i32) {
    %c0_i32 = arith.constant 0 : i32
    %c0_i32_0 = arith.constant 0 : i32
    %c0_i32_1 = arith.constant 0 : i32
    %c0_i32_2 = arith.constant 0 : i32
    return %arg0, %c0_i32, %c0_i32_0, %c0_i32_1 : i32, i32, i32, i32
  }
  func.func @transform_1(%arg0: i32) -> (i32, i32) {
    %c0_i32 = arith.constant 0 : i32
    %c0_i32_0 = arith.constant 0 : i32
    %c0_i32_1 = arith.constant 0 : i32
    return %c0_i32, %c0_i32_0 : i32, i32
  }
  func.func @transform_2(%arg0: i32) -> (i32, i32) {
    %c0_i32 = arith.constant 0 : i32
    %c0_i32_0 = arith.constant 0 : i32
    %c0_i32_1 = arith.constant 0 : i32
    return %c0_i32, %c0_i32_0 : i32, i32
  }
  func.func @transform_3(%arg0: i32) -> (i32, i32) {
    %c0_i32 = arith.constant 0 : i32
    %c0_i32_0 = arith.constant 0 : i32
    %c0_i32_1 = arith.constant 0 : i32
    return %c0_i32, %c0_i32_0 : i32, i32
  }
  func.func @transform_4(%arg0: i32) -> (i32, i32) {
    %c0_i32 = arith.constant 0 : i32
    %c0_i32_0 = arith.constant 0 : i32
    %c0_i32_1 = arith.constant 0 : i32
    return %c0_i32, %c0_i32_0 : i32, i32
  }
  func.func @transform_5(%arg0: i32) -> (i32, i32) {
    %c0_i32 = arith.constant 0 : i32
    %c0_i32_0 = arith.constant 0 : i32
    %c0_i32_1 = arith.constant 0 : i32
    return %c0_i32, %c0_i32_0 : i32, i32
  }
  func.func @transform_6(%arg0: i32) -> (i32, i32) {
    %c0_i32 = arith.constant 0 : i32
    %c0_i32_0 = arith.constant 0 : i32
    %c0_i32_1 = arith.constant 0 : i32
    return %c0_i32, %c0_i32_0 : i32, i32
  }
  func.func @transform_7(%arg0: i32) -> (i32, i32, i32) {
    %c0_i32 = arith.constant 0 : i32
    %c0_i32_0 = arith.constant 0 : i32
    %c0_i32_1 = arith.constant 0 : i32
    return %arg0, %c0_i32, %c0_i32_0 : i32, i32, i32
  }
}

</mosaic_0001>

<bundles_post_ra>
// kernel: tpu_custom_call.1
= control target key start
LH: loop header
LB: loop body
LE: loop exit
PB: predicated region body
PF: predicated region fallthrough
CT: control target
= control target key end

     0   :  { %12 = vsyncpa [#allocation7], 0  ;;  %s5548_s0 = inlined_call_operand.vmem [shape: f32[2,16,16,4], index: 0, kind: input, shape index: {}]   ;;  %s5549_s1 = inlined_call_operand.vmem [shape: bf16[36,32], index: 1, kind: input, shape index: {}]   ;;  %s5550_s2 = inlined_call_operand.vmem [shape: f32[1,4], index: 2, kind: input, shape index: {}]   ;;  %s5551_s3 = inlined_call_operand.vmem [shape: f32[1,4], index: 3, kind: input, shape index: {}]   ;;  %s5552_s4 = inlined_call_operand.vmem [shape: bf16[288,32], index: 4, kind: input, shape index: {}]   ;;  %s5553_s5 = inlined_call_operand.vmem [shape: f32[1,32], index: 5, kind: input, shape index: {}]   ;;  %s5554_s6 = inlined_call_operand.vmem [shape: f32[1,32], index: 6, kind: input, shape index: {}]   ;;  %s5555_s7 = inlined_call_operand.hbm [shape: f32[2,32,256], index: 7, kind: output, shape index: {}]  }
   0x1   :  { %14 = vsyncpa [#allocation7 + $0x1], 0  ;;  %s4211_s24 = smov 0   ;;  %s4213_s25 = smov 0  }
   0x2   :  { %s4215_s26 = smov 0   ;;  %s4217_s27 = smov 0  }
   0x3 LB: > { %s4232_s28 = sadd.s32 4294967295, %s4156_s27   ;;  %s3709_s29 = sadd.s32 4294967294, %s4156_s27   ;;  %s4156_s27 = sphi %s4217_s27, %s5561_s27   ;;  %s4152_s26 = sphi %s4215_s26, %s5560_s26   ;;  %s4148_s25 = sphi %s4213_s25, %s5559_s25   ;;  %s4144_s24 = sphi %s4211_s24, %s5558_s24  }
   0x4   : > { %s4236_s30 = sadd.s32 1, %s4156_s27   ;;  %s179_s8 = sadd.s32 1, %s4152_s26 }
   0x5   : > { %s176_s9 = ssub.s32 %s4156_s27, %s4236_s30  ;;  %p189_p0 = scmp.ne.s32.totalorder %s4152_s26, %s4148_s25 }
   0x6   : > { %p177_p1 = scmp.eq.s32.totalorder %s176_s9, 0  ;;  %p190_p2 = scmp.eq.s32.totalorder %s4232_s28, 1 }
   0x7   : > { %p195_p3 = scmp.ne.s32.totalorder %s4148_s25, %s4144_s24  ;;  %p196_p4 = scmp.eq.s32.totalorder %s3709_s29, 1 }
   0x8   : > { %s4247_s10 = scalar_select %p177_p1, %s4152_s26, %s179_s8  }
   0x9   : > { %p4249_p5 = por %p190_p2, %p189_p0  ;;  %p4253_p6 = por %p196_p4, %p195_p3 }
   0xa   : > { %p3712_p7 = scmp.ge.s32.totalorder %s4156_s27, 1  ;;  %p240_p8 = scmp.lt.s32.totalorder %s4156_s27, 3 }
   0xc   : > { %p241_p9 = pnand %p3712_p7, %p240_p8 }
   0xd   : > { %vm278_vm0 = vcmask (!%p241_p9), 31744   ;;  %vm281_vm1 = vcmask (!%p241_p9), 25600   ;;  %vm287_vm2 = vcmask (!%p241_p9), 24576   ;;  %v4158_v0 = vmov (!%p241_p9), 0.0   ;;  %p272_p10 = scmp.lt.s32.totalorder (!%p241_p9), %s4232_s28, 1  ;;  %s4159_s22 = smov (!%p241_p9), 4  }
   0xe   : > { %244 = sbr.rel (%p241_p9) target bundleno = 1121 (0x461), region = 48  ;;  %279 = vst.msk [vmem:[#allocation2] sm:$0xff] (!%p241_p9), %vm278_vm0, %v4158_v0  ;;  %280 = vst.msk [vmem:[#allocation2 + $0x8] sm:$0xff] (!%p241_p9), %vm278_vm0, %v4158_v0  ;;  %v4346_v1 = vld [vmem:[%s5550_s2] ss:$0 sm:$0xff] (!%p241_p9)  ;;  %s4160_s23 = smov (!%p241_p9), 8  }
   0xf   : > { %282 = vst.msk [vmem:[#allocation2 + $0x10] sm:$0x3] (!%p241_p9), %vm281_vm1, %v4158_v0  ;;  %286 = vst.msk [vmem:[#allocation2 + $0x1a8] sm:$0x3] (!%p241_p9), %vm281_vm1, %v4158_v0  ;;  %v4351_v2 = vld [vmem:[%s5551_s3] ss:$0 sm:$0xff] (!%p241_p9) }
  0x10   : > { %284 = vst.msk [vmem:[#allocation2 + $0x198] sm:$0xff] (!%p241_p9), %vm278_vm0, %v4158_v0  ;;  %285 = vst.msk [vmem:[#allocation2 + $0x1a0] sm:$0xff] (!%p241_p9), %vm278_vm0, %v4158_v0  ;;  %s4161_s29 = smov (!%p241_p9), 12   ;;  %s4162_s8 = smov (!%p241_p9), 16   ;;  %vm1649_vm3 = vcmask (!%p241_p9), 1041408   ;;  %vm643_vm4 = vcmask (!%p241_p9), 64544  }
  0x11   : > { %289 = vst.msk [vmem:[#allocation2 + $0x18] sm:$0x1] (!%p241_p9), %vm287_vm2, %v4158_v0  ;;  %290 = vst.msk [vmem:[#allocation2 + $0x30] sm:$0x1] (!%p241_p9), %vm287_vm2, %v4158_v0  ;;  %s4163_s9 = smov (!%p241_p9), 20   ;;  %s4165_s20 = smov (!%p241_p9), 28  }
  0x12   : > { %291 = vst.msk [vmem:[#allocation2 + $0x48] sm:$0x1] (!%p241_p9), %vm287_vm2, %v4158_v0  ;;  %292 = vst.msk [vmem:[#allocation2 + $0x60] sm:$0x1] (!%p241_p9), %vm287_vm2, %v4158_v0  ;;  %s4166_s14 = smov (!%p241_p9), 32   ;;  %vm772_vm5 = vcmask (!%p241_p9), 97344  }
  0x13   : > { %293 = vst.msk [vmem:[#allocation2 + $0x78] sm:$0x1] (!%p241_p9), %vm287_vm2, %v4158_v0  ;;  %294 = vst.msk [vmem:[#allocation2 + $0x90] sm:$0x1] (!%p241_p9), %vm287_vm2, %v4158_v0  ;;  %vm901_vm6 = vcmask (!%p241_p9), 130144   ;;  %vm1030_vm7 = vcmask (!%p241_p9), 162944  }
  0x14   : > { %295 = vst.msk [vmem:[#allocation2 + $0xa8] sm:$0x1] (!%p241_p9), %vm287_vm2, %v4158_v0  ;;  %296 = vst.msk [vmem:[#allocation2 + $0xc0] sm:$0x1] (!%p241_p9), %vm287_vm2, %v4158_v0  ;;  %vm1159_vm8 = vcmask (!%p241_p9), 195744   ;;  %vm1289_vm9 = vcmask (!%p241_p9), 228544  }
  0x15   : > { %297 = vst.msk [vmem:[#allocation2 + $0xd8] sm:$0x1] %vm287_vm2, %v4158_v0  ;;  %298 = vst.msk [vmem:[#allocation2 + $0xf0] sm:$0x1] %vm287_vm2, %v4158_v0  ;;  %s273_s13 = scalar_select %p272_p10, %s4232_s28, 1  ;;  %v531_v6 = vld [vmem:[#allocation2 + $0x1] sm:$0xff] }
  0x16   : > { %299 = vst.msk [vmem:[#allocation2 + $0x108] sm:$0x1] %vm287_vm2, %v4158_v0  ;;  %300 = vst.msk [vmem:[#allocation2 + $0x120] sm:$0x1] %vm287_vm2, %v4158_v0  ;;  %v532_v7 = vld [vmem:[#allocation2 + $0x9] sm:$0xff]  ;;  %vm1418_vm10 = vcmask 261344  }
  0x17   : > { %301 = vst.msk [vmem:[#allocation2 + $0x138] sm:$0x1] %vm287_vm2, %v4158_v0  ;;  %302 = vst.msk [vmem:[#allocation2 + $0x150] sm:$0x1] %vm287_vm2, %v4158_v0  ;;  %s3778_s16 = sshll.u32 %s273_s13, 8  ;;  %v660_v8 = vld [vmem:[#allocation2 + $0x2] sm:$0xff]  ;;  %v563_v12 = vpack.c.bf16 %v532_v7, %v531_v6 }
  0x18   : > { %303 = vst.msk [vmem:[#allocation2 + $0x168] sm:$0x1] %vm287_vm2, %v4158_v0  ;;  %304 = vst.msk [vmem:[#allocation2 + $0x180] sm:$0x1] %vm287_vm2, %v4158_v0  ;;  %s4356_s21 = scalar_lea.vmem %s5548_s0, %s3778_s16  ;;  %v468_v43 = vld [vmem:[#allocation2 + $0x8] sm:$0xff]  ;;  %s4164_s13 = smov 24  }
  0x19   : > { %307 = vst.msk [vmem:[#allocation2 + $0x29] sm:$0x1] %vm287_vm2, %v4158_v0  ;;  %308 = vst.msk [vmem:[#allocation2 + $0x41] sm:$0x1] %vm287_vm2, %v4158_v0  ;;  %v324_v3 = vld [vmem:[%s4356_s21] sm:$0xff]  ;;  %v325_v4 = vld [vmem:[%s4356_s21 + $0x8] sm:$0xff]  ;;  %595 = vrot.lane.b32.xlu0 %v563_v12, %s4159_s22 }
  0x1a   : > { %309 = vst.msk [vmem:[#allocation2 + $0x59] sm:$0x1] %vm287_vm2, %v4158_v0  ;;  %310 = vst.msk [vmem:[#allocation2 + $0x71] sm:$0x1] %vm287_vm2, %v4158_v0  ;;  %v326_v5 = vld [vmem:[%s4356_s21 + $0x10] sm:$0xff]  ;;  %v363_v9 = vmul.f32 %v4346_v1, %v324_v3  ;;  %v364_v10 = vmul.f32 %v4346_v1, %v325_v4  ;;  %v327_v14 = vld [vmem:[%s4356_s21 + $0x18] sm:$0xff] }
  0x1b   : > { %311 = vst.msk [vmem:[#allocation2 + $0x89] sm:$0x1] %vm287_vm2, %v4158_v0  ;;  %312 = vst.msk [vmem:[#allocation2 + $0xa1] sm:$0x1] %vm287_vm2, %v4158_v0  ;;  %v365_v11 = vmul.f32 %v4346_v1, %v326_v5  ;;  %v328_v15 = vld [vmem:[%s4356_s21 + $0x20] sm:$0xff]  ;;  %v366_v19 = vmul.f32 %v4346_v1, %v327_v14  ;;  %v329_v20 = vld [vmem:[%s4356_s21 + $0x28] sm:$0xff] }
  0x1c   : > { %313 = vst.msk [vmem:[#allocation2 + $0xb9] sm:$0x1] %vm287_vm2, %v4158_v0  ;;  %314 = vst.msk [vmem:[#allocation2 + $0xd1] sm:$0x1] %vm287_vm2, %v4158_v0  ;;  %v402_v17 = vadd.f32 %v4351_v2, %v363_v9  ;;  %v403_v18 = vadd.f32 %v4351_v2, %v364_v10  ;;  %v330_v21 = vld [vmem:[%s4356_s21 + $0x30] sm:$0xff]  ;;  %v331_v22 = vld [vmem:[%s4356_s21 + $0x38] sm:$0xff]  ;;  %v367_v24 = vmul.f32 %v4346_v1, %v328_v15 }
  0x1d   : > { %315 = vst.msk [vmem:[#allocation2 + $0xe9] sm:$0x1] %vm287_vm2, %v4158_v0  ;;  %316 = vst.msk [vmem:[#allocation2 + $0x101] sm:$0x1] %vm287_vm2, %v4158_v0  ;;  %v404_v23 = vadd.f32 %v4351_v2, %v365_v11  ;;  %v368_v25 = vmul.f32 %v4346_v1, %v329_v20  ;;  %v369_v26 = vmul.f32 %v4346_v1, %v330_v21  ;;  %v332_v27 = vld [vmem:[%s4356_s21 + $0x40] sm:$0xff]  ;;  %v333_v28 = vld [vmem:[%s4356_s21 + $0x48] sm:$0xff] }
  0x1e   : > { %317 = vst.msk [vmem:[#allocation2 + $0x119] sm:$0x1] %vm287_vm2, %v4158_v0  ;;  %318 = vst.msk [vmem:[#allocation2 + $0x131] sm:$0x1] %vm287_vm2, %v4158_v0  ;;  %v334_v29 = vld [vmem:[%s4356_s21 + $0x50] sm:$0xff]  ;;  %v405_v30 = vadd.f32 %v4351_v2, %v366_v19  ;;  %v370_v31 = vmul.f32 %v4346_v1, %v331_v22  ;;  %v371_v32 = vmul.f32 %v4346_v1, %v332_v27  ;;  %v335_v34 = vld [vmem:[%s4356_s21 + $0x58] sm:$0xff] }
  0x1f   : > { %319 = vst.msk [vmem:[#allocation2 + $0x149] sm:$0x1] %vm287_vm2, %v4158_v0  ;;  %320 = vst.msk [vmem:[#allocation2 + $0x161] sm:$0x1] %vm287_vm2, %v4158_v0  ;;  %v372_v33 = vmul.f32 %v4346_v1, %v333_v28  ;;  %v336_v35 = vld [vmem:[%s4356_s21 + $0x60] sm:$0xff]  ;;  %v337_v36 = vld [vmem:[%s4356_s21 + $0x68] sm:$0xff]  ;;  %v406_v37 = vadd.f32 %v4351_v2, %v367_v24  ;;  %v407_v38 = vadd.f32 %v4351_v2, %v368_v25 }
  0x20   : > { %321 = vst.msk [vmem:[#allocation2 + $0x179] sm:$0x1] %vm287_vm2, %v4158_v0  ;;  %322 = vst.msk [vmem:[#allocation2 + $0x191] sm:$0x1] %vm287_vm2, %v4158_v0  ;;  %v408_v39 = vadd.f32 %v4351_v2, %v369_v26  ;;  %v373_v40 = vmul.f32 %v4346_v1, %v334_v29  ;;  %v338_v41 = vld [vmem:[%s4356_s21 + $0x70] sm:$0xff]  ;;  %v339_v42 = vld [vmem:[%s4356_s21 + $0x78] sm:$0xff]  ;;  %v409_v44 = vadd.f32 %v4351_v2, %v370_v31 }
  0x21   : > { %323 = vst.msk [vmem:[#allocation2 + $0x1a9] sm:$0x1] %vm287_vm2, %v4158_v0  ;;  %288 = vst.msk [vmem:[#allocation2] sm:$0x1] %vm287_vm2, %v4158_v0  ;;  %v410_v45 = vadd.f32 %v4351_v2, %v371_v32  ;;  %v411_v46 = vadd.f32 %v4351_v2, %v372_v33  ;;  %v374_v47 = vmul.f32 %v4346_v1, %v335_v34  ;;  %v340_v49 = vld [vmem:[%s4356_s21 + $0x80] sm:$0xff]  ;;  %v341_v50 = vld [vmem:[%s4356_s21 + $0x88] sm:$0xff] }
  0x22   : > { %306 = vst.msk [vmem:[#allocation2 + $0x11] sm:$0x1] %vm287_vm2, %v4158_v0  ;;  %305 = vst.msk [vmem:[#allocation2 + $0x198] sm:$0x1] %vm287_vm2, %v4158_v0  ;;  %v412_v51 = vadd.f32 %v4351_v2, %v373_v40  ;;  %v375_v52 = vmul.f32 %v4346_v1, %v336_v35  ;;  %v376_v53 = vmul.f32 %v4346_v1, %v337_v36  ;;  %v342_v55 = vld [vmem:[%s4356_s21 + $0x90] sm:$0xff]  ;;  %v343_v56 = vld [vmem:[%s4356_s21 + $0x98] sm:$0xff] }
  0x23   : > { %435 = vst.msk [vmem:[#allocation2 + $0x19] sm:$0xff] %vm278_vm0, %v402_v17  ;;  %436 = vst.msk [vmem:[#allocation2 + $0x21] sm:$0xff] %vm278_vm0, %v403_v18  ;;  %v377_v54 = vmul.f32 %v4346_v1, %v338_v41  ;;  %v413_v57 = vadd.f32 %v4351_v2, %v374_v47  ;;  %v378_v58 = vmul.f32 %v4346_v1, %v339_v42  ;;  %vm1547_vm11 = vcmask 294144   ;;  %s4168_s17 = smov 96  }
  0x24   : > { %437 = vst.msk [vmem:[#allocation2 + $0x31] sm:$0xff] %vm278_vm0, %v404_v23  ;;  %438 = vst.msk [vmem:[#allocation2 + $0x39] sm:$0xff] %vm278_vm0, %v405_v30  ;;  %v379_v60 = vmul.f32 %v4346_v1, %v340_v49  ;;  %v414_v61 = vadd.f32 %v4351_v2, %v375_v52  ;;  %v415_v62 = vadd.f32 %v4351_v2, %v376_v53  ;;  %v4071_v52 = vld [vmem:[%s5549_s1] sm:$0xff]   ;;  %vm1600_vm12 = vcmask 293888  }
  0x25   : > { %439 = vst.msk [vmem:[#allocation2 + $0x49] sm:$0xff] %vm278_vm0, %v406_v37  ;;  %440 = vst.msk [vmem:[#allocation2 + $0x51] sm:$0xff] %vm278_vm0, %v407_v38  ;;  %v416_v63 = vadd.f32 %v4351_v2, %v377_v54  ;;  %v380_v3 = vmul.f32 %v4346_v1, %v341_v50  ;;  %v417_v4 = vadd.f32 %v4351_v2, %v378_v58  ;;  %v4072_v54 = vld [vmem:[%s5549_s1 + $0x8] sm:$0xff]   ;;  %3929 = vmatprep.subr.bf16.mxu0 %v4071_v52  ;;  %v4073_v58 = vld [vmem:[%s5549_s1 + $0x10] ss:$0 sps:$4 sm:$0x33]  }
  0x26   : > { %441 = vst.msk [vmem:[#allocation2 + $0x61] sm:$0xff] %vm278_vm0, %v408_v39  ;;  %442 = vst.msk [vmem:[#allocation2 + $0x69] sm:$0xff] %vm278_vm0, %v409_v44  ;;  %v418_v5 = vadd.f32 %v4351_v2, %v379_v60  ;;  %v381_v10 = vmul.f32 %v4346_v1, %v342_v55  ;;  %v382_v11 = vmul.f32 %v4346_v1, %v343_v56  ;;  %v344_v55 = vld [vmem:[%s4356_s21 + $0xa0] sm:$0xff]  ;;  %v345_v56 = vld [vmem:[%s4356_s21 + $0xa8] sm:$0xff]  ;;  %3930 = vmatpush3.bf16.msra.mxu0 %v4071_v52  ;;  %vm1924_vm13 = vcmask 261120  }
  0x27   : > { %443 = vst.msk [vmem:[#allocation2 + $0x79] sm:$0xff] %vm278_vm0, %v410_v45  ;;  %444 = vst.msk [vmem:[#allocation2 + $0x81] sm:$0xff] %vm278_vm0, %v411_v46  ;;  %v419_v9 = vadd.f32 %v4351_v2, %v380_v3  ;;  %v384_v60 = vmul.f32 %v4346_v1, %v345_v56  ;;  %3931 = vmatprep.subr.bf16.mxu0 %v4072_v54  ;;  %v1651_v3 = vsel %vm1649_vm3, %v4073_v58, 0  ;;  %v352_v52 = vld [vmem:[%s4356_s21 + $0xe0] sm:$0xff]  ;;  %vm1927_vm14 = vcmask 254976  }
  0x28   : > { %v467_v48 = vld [vmem:[#allocation2] sm:$0xff]  ;;  %445 = vst.msk [vmem:[#allocation2 + $0x91] sm:$0xff] %vm278_vm0, %v412_v51  ;;  %446 = vst.msk [vmem:[#allocation2 + $0x99] sm:$0xff] %vm278_vm0, %v413_v57  ;;  %v420_v20 = vadd.f32 %v4351_v2, %v381_v10  ;;  %v421_v21 = vadd.f32 %v4351_v2, %v382_v11  ;;  %v383_v57 = vmul.f32 %v4346_v1, %v344_v55  ;;  %vm1933_vm15 = vcmask 253952  }
  0x29   : > { %v661_v13 = vld [vmem:[#allocation2 + $0xa] sm:$0xff]  ;;  %v499_v59 = vpack.c.bf16 %v468_v43, %v467_v48  ;;  %447 = vst.msk [vmem:[#allocation2 + $0xa9] sm:$0xff] %vm278_vm0, %v414_v61  ;;  %448 = vst.msk [vmem:[#allocation2 + $0xb1] sm:$0xff] %vm278_vm0, %v415_v62  ;;  %v391_v55 = vmul.f32 %v4346_v1, %v352_v52  ;;  %vm2308_vm1 = vcmask 785920   ;;  %vm2437_vm2 = vcmask 1048320  }
  0x2a   : > { %v692_v16 = vpack.c.bf16 %v661_v13, %v660_v8  ;;  %v533_v6 = vld [vmem:[#allocation2 + $0x19] sm:$0xff]  ;;  %v534_v7 = vld [vmem:[#allocation2 + $0x21] sm:$0xff]  ;;  %449 = vst.msk [vmem:[#allocation2 + $0xc1] sm:$0xff] %vm278_vm0, %v416_v63  ;;  %450 = vst.msk [vmem:[#allocation2 + $0xc9] sm:$0xff] %vm278_vm0, %v417_v4  ;;  %v422_v62 = vadd.f32 %v4351_v2, %v383_v57  ;;  %v423_v63 = vadd.f32 %v4351_v2, %v384_v60  ;;  %3932 = vmatpush3.bf16.msra.mxu0 %v4072_v54 }
  0x2b   : > { %515 = vst.msk [vmem:[#allocation3] sm:$0xff] %vm278_vm0, %v499_v59  ;;  %v662_v8 = vld [vmem:[#allocation2 + $0x1a] sm:$0xff]  ;;  %v564_v12 = vpack.c.bf16 %v534_v7, %v533_v6  ;;  %v663_v13 = vld [vmem:[#allocation2 + $0x22] sm:$0xff]  ;;  %451 = vst.msk [vmem:[#allocation2 + $0xd9] sm:$0xff] %vm278_vm0, %v418_v5  ;;  %4019 = vmatprep.subr.msk.bf16.mxu0 %vm1649_vm3, %v4073_v58 }
  0x2c   : > { %724 = vrot.lane.b32.xlu1 %v692_v16, %s4160_s23  ;;  %v789_v14 = vld [vmem:[#allocation2 + $0x18] sm:$0xff]  ;;  %v790_v15 = vld [vmem:[#allocation2 + $0x20] sm:$0xff]  ;;  %v693_v16 = vpack.c.bf16 %v663_v13, %v662_v8  ;;  %v791_v18 = vld [vmem:[#allocation2 + $0x30] sm:$0xff]  ;;  %452 = vst.msk [vmem:[#allocation2 + $0xe1] sm:$0xff] %vm278_vm0, %v419_v9 }
  0x2d   : > { %v821_v17 = vpack.c.bf16 %v790_v15, %v789_v14  ;;  %v792_v19 = vld [vmem:[#allocation2 + $0x38] sm:$0xff]  ;;  %597 = vrot.lane.b32.xlu0 %v564_v12, %s4159_s22  ;;  %v1179_v23 = vld [vmem:[#allocation2 + $0x48] sm:$0xff]  ;;  %v1180_v24 = vld [vmem:[#allocation2 + $0x50] sm:$0xff]  ;;  %453 = vst.msk [vmem:[#allocation2 + $0xf1] sm:$0xff] %vm278_vm0, %v420_v20 }
  0x2e   : > { %v822_v22 = vpack.c.bf16 %v792_v19, %v791_v18  ;;  %454 = vst.msk [vmem:[#allocation2 + $0xf9] sm:$0xff] %vm278_vm0, %v421_v21  ;;  %v920_v25 = vld [vmem:[#allocation2 + $0x31] sm:$0xff]  ;;  %v921_v26 = vld [vmem:[#allocation2 + $0x39] sm:$0xff]  ;;  %v4444_v27 = vpack.c.bf16 %v1180_v24, %v1179_v23  ;;  %v796_v29 = vld [vmem:[#allocation2 + $0x68] sm:$0xff]  ;;  %3934 = vmatpush3.bf16.msra.mxu0 %v1651_v3 }
  0x2f   : > { %516 = vst.msk [vmem:[#allocation3 + $0x8] sm:$0xff] %vm278_vm0, %v821_v17  ;;  %v795_v28 = vld [vmem:[#allocation2 + $0x60] sm:$0xff]  ;;  %v4453_v31 = vpack.c.bf16 %v921_v26, %v920_v25  ;;  %v1183_v32 = vld [vmem:[#allocation2 + $0x78] sm:$0xff]  ;;  %v799_v37 = vld [vmem:[#allocation2 + $0x90] sm:$0xff] }
  0x30   : > { %726 = vrot.lane.b32.xlu1 %v693_v16, %s4160_s23  ;;  %517 = vst.msk [vmem:[#allocation3 + $0x10] sm:$0xff] %vm278_vm0, %v822_v22  ;;  %v4448_v30 = vpack.c.bf16 %v796_v29, %v795_v28  ;;  %518 = vst.msk [vmem:[#allocation3 + $0x18] sm:$0xff] %vm278_vm0, %v4444_v27  ;;  %v1184_v33 = vld [vmem:[#allocation2 + $0x80] sm:$0xff]  ;;  %v1049_v34 = vld [vmem:[#allocation2 + $0x32] sm:$0xff] }
  0x31   : > { %853 = vrot.lane.b32.xlu0 %v821_v17, %s4161_s29  ;;  %v1050_v35 = vld [vmem:[#allocation2 + $0x3a] sm:$0xff]  ;;  %v4455_v36 = vpack.c.bf16 %v1184_v33, %v1183_v32  ;;  %v1187_v41 = vld [vmem:[#allocation2 + $0xa8] sm:$0xff]  ;;  %v1188_v42 = vld [vmem:[#allocation2 + $0xb0] sm:$0xff]  ;;  %455 = vst.msk [vmem:[#allocation2 + $0x109] sm:$0xff] %vm278_vm0, %v422_v62 }
  0x32   : > { %519 = vst.msk [vmem:[#allocation3 + $0x20] sm:$0xff] %vm278_vm0, %v4448_v30  ;;  %v800_v38 = vld [vmem:[#allocation2 + $0x98] sm:$0xff]  ;;  %v4466_v40 = vpack.c.bf16 %v1050_v35, %v1049_v34  ;;  %v4468_v43 = vpack.c.bf16 %v1188_v42, %v1187_v41  ;;  %v1308_v46 = vld [vmem:[#allocation2 + $0x49] sm:$0xff]  ;;  %456 = vst.msk [vmem:[#allocation2 + $0x111] sm:$0xff] %vm278_vm0, %v423_v63 }
  0x33   : > { %v4460_v39 = vpack.c.bf16 %v800_v38, %v799_v37  ;;  %520 = vst.msk [vmem:[#allocation3 + $0x28] sm:$0xff] %vm278_vm0, %v4455_v36  ;;  %v1191_v44 = vld [vmem:[#allocation2 + $0xd8] sm:$0xff]  ;;  %v1192_v45 = vld [vmem:[#allocation2 + $0xe0] sm:$0xff]  ;;  %v1437_v59 = vld [vmem:[#allocation2 + $0x4a] sm:$0xff] }
  0x34   : > { %855 = vrot.lane.b32.xlu1 %v822_v22, %s4161_s29  ;;  %522 = vst.msk [vmem:[#allocation3 + $0x38] sm:$0xff] %vm278_vm0, %v4468_v43  ;;  %v1309_v47 = vld [vmem:[#allocation2 + $0x51] sm:$0xff]  ;;  %v4477_v48 = vpack.c.bf16 %v1192_v45, %v1191_v44  ;;  %v924_v14 = vld [vmem:[#allocation2 + $0x61] sm:$0xff]  ;;  %v925_v15 = vld [vmem:[#allocation2 + $0x69] sm:$0xff] }
  0x35   : > { %982 = vrot.lane.b32.xlu0 %v564_v12, %s4162_s8  ;;  %521 = vst.msk [vmem:[#allocation3 + $0x30] sm:$0xff] %vm278_vm0, %v4460_v39  ;;  %v807_v49 = vld [vmem:[#allocation2 + $0xf0] sm:$0xff]  ;;  %v808_v50 = vld [vmem:[#allocation2 + $0xf8] sm:$0xff]  ;;  %v4489_v53 = vpack.c.bf16 %v1309_v47, %v1308_v46  ;;  %v348_v18 = vld [vmem:[%s4356_s21 + $0xc0] sm:$0xff]  ;;  %v953_v23 = vpack.c.bf16 %v925_v15, %v924_v14 }
  0x36   : > { %v4480_v51 = vpack.c.bf16 %v808_v50, %v807_v49  ;;  %524 = vst.msk [vmem:[#allocation3 + $0x48] sm:$0xff] %vm278_vm0, %v4477_v48  ;;  %v1438_v61 = vld [vmem:[#allocation2 + $0x52] sm:$0xff]  ;;  %v349_v20 = vld [vmem:[%s4356_s21 + $0xc8] sm:$0xff]  ;;  %v387_v21 = vmul.f32 %v4346_v1, %v348_v18  ;;  %v1441_v37 = vld [vmem:[#allocation2 + $0x7a] sm:$0xff] }
  0x37   : > { %v346_v4 = vld [vmem:[%s4356_s21 + $0xb0] sm:$0xff]  ;;  %v347_v5 = vld [vmem:[%s4356_s21 + $0xb8] sm:$0xff]  ;;  %v1468_v8 = vpack.c.bf16 %v1438_v61, %v1437_v59  ;;  %v1053_v25 = vld [vmem:[#allocation2 + $0x62] sm:$0xff]  ;;  %v430_v59 = vadd.f32 %v4351_v2, %v391_v55  ;;  %1925 = vst.msk [vmem:[#allocation4] sm:$0xff] %vm1924_vm13, %v4158_v0 }
  0x38   : > { %984 = vrot.lane.b32.xlu1 %v4453_v31, %s4162_s8  ;;  %525 = vst.msk [vmem:[#allocation3 + $0x50] sm:$0xff] %vm278_vm0, %v4480_v51  ;;  %v385_v6 = vmul.f32 %v4346_v1, %v346_v4  ;;  %v386_v7 = vmul.f32 %v4346_v1, %v347_v5  ;;  %v1195_v11 = vld [vmem:[#allocation2 + $0x108] sm:$0xff]  ;;  %v426_v24 = vadd.f32 %v4351_v2, %v387_v21  ;;  %v1312_v29 = vld [vmem:[#allocation2 + $0x79] sm:$0xff]  ;;  %v350_v41 = vld [vmem:[%s4356_s21 + $0xd0] sm:$0xff] }
  0x39   : > { %1111 = vrot.lane.b32.xlu0 %v693_v16, %s4163_s9  ;;  %v1196_v12 = vld [vmem:[#allocation2 + $0x110] sm:$0xff]  ;;  %v1442_v38 = vld [vmem:[#allocation2 + $0x82] sm:$0xff]  ;;  %v351_v42 = vld [vmem:[%s4356_s21 + $0xd8] sm:$0xff]  ;;  %463 = vst.msk [vmem:[#allocation2 + $0x169] sm:$0xff] %vm278_vm0, %v430_v59 }
  0x3a   : > { %v424_v9 = vadd.f32 %v4351_v2, %v385_v6  ;;  %v425_v10 = vadd.f32 %v4351_v2, %v386_v7  ;;  %v4528_v13 = vpack.c.bf16 %v1196_v12, %v1195_v11  ;;  %v1054_v26 = vld [vmem:[#allocation2 + $0x6a] sm:$0xff]  ;;  %459 = vst.msk [vmem:[#allocation2 + $0x139] sm:$0xff] %vm278_vm0, %v426_v24  ;;  %v390_v44 = vmul.f32 %v4346_v1, %v351_v42  ;;  %v929_v49 = vld [vmem:[#allocation2 + $0x99] sm:$0xff] }
  0x3b   : > { %v928_v47 = vld [vmem:[#allocation2 + $0x91] sm:$0xff]  ;;  %v1058_v62 = vld [vmem:[#allocation2 + $0x9a] sm:$0xff]  ;;  %v1316_v63 = vld [vmem:[#allocation2 + $0xa9] sm:$0xff]  ;;  %1926 = vst.msk [vmem:[#allocation4 + $0x8] sm:$0xff] %vm1924_vm13, %v4158_v0 }
  0x3c   : > { %1113 = vrot.lane.b32.xlu1 %v4466_v40, %s4163_s9  ;;  %457 = vst.msk [vmem:[#allocation2 + $0x121] sm:$0xff] %vm278_vm0, %v424_v9  ;;  %458 = vst.msk [vmem:[#allocation2 + $0x129] sm:$0xff] %vm278_vm0, %v425_v10  ;;  %v429_v46 = vadd.f32 %v4351_v2, %v390_v44  ;;  %v955_v58 = vpack.c.bf16 %v929_v49, %v928_v47  ;;  %v1057_v61 = vld [vmem:[#allocation2 + $0x92] sm:$0xff]  ;;  %v804_v18 = vld [vmem:[#allocation2 + $0xc8] sm:$0xff] }
  0x3d   : > { %1241 = vrot.lane.b32.xlu0 %v822_v22, %s4164_s13  ;;  %526 = vst.msk [vmem:[#allocation3 + $0x58] sm:$0xff] %vm278_vm0, %v4528_v13  ;;  %v388_v22 = vmul.f32 %v4346_v1, %v349_v20  ;;  %v1317_v3 = vld [vmem:[#allocation2 + $0xb1] sm:$0xff]  ;;  %v932_v20 = vld [vmem:[#allocation2 + $0xc1] sm:$0xff]  ;;  %v933_v21 = vld [vmem:[#allocation2 + $0xc9] sm:$0xff] }
  0x3e   : > { %462 = vst.msk [vmem:[#allocation2 + $0x159] sm:$0xff] %vm278_vm0, %v429_v46  ;;  %v1343_v7 = vpack.c.bf16 %v1317_v3, %v1316_v63  ;;  %v1446_v9 = vld [vmem:[#allocation2 + $0xb2] sm:$0xff] }
  0x3f   : > { %v427_v28 = vadd.f32 %v4351_v2, %v388_v22  ;;  %v354_v11 = vld [vmem:[%s4356_s21 + $0xf0] sm:$0xff]  ;;  %v355_v12 = vld [vmem:[%s4356_s21 + $0xf8] sm:$0xff]  ;;  %v1061_v22 = vld [vmem:[#allocation2 + $0xc2] sm:$0xff]  ;;  %1930 = vst.msk [vmem:[#allocation4 + $0x198] sm:$0xff] %vm1924_vm13, %v4158_v0 }
  0x40   : > { %1243 = vrot.lane.b32.xlu1 %v4444_v27, %s4164_s13  ;;  %v1203_v4 = vld [vmem:[#allocation2 + $0x168] sm:$0xff]  ;;  %v393_v14 = vmul.f32 %v4346_v1, %v354_v11  ;;  %v936_v49 = vld [vmem:[#allocation2 + $0xf1] sm:$0xff]  ;;  %1931 = vst.msk [vmem:[#allocation4 + $0x1a0] sm:$0xff] %vm1924_vm13, %v4158_v0 }
  0x41   : > { %1370 = vrot.lane.b32.xlu0 %v4453_v31, %s4165_s20  ;;  %460 = vst.msk [vmem:[#allocation2 + $0x141] sm:$0xff] %vm278_vm0, %v427_v28  ;;  %v1199_v32 = vld [vmem:[#allocation2 + $0x138] sm:$0xff]  ;;  %v483_v28 = vld [vmem:[#allocation2 + $0xc0] sm:$0xff] }
  0x42   : > { %v432_v15 = vadd.f32 %v4351_v2, %v393_v14  ;;  %v1065_v55 = vld [vmem:[#allocation2 + $0xf2] sm:$0xff]  ;;  %1928 = vst.msk [vmem:[#allocation4 + $0x10] sm:$0x3] %vm1927_vm14, %v4158_v0  ;;  %1932 = vst.msk [vmem:[#allocation4 + $0x1a8] sm:$0x3] %vm1927_vm14, %v4158_v0 }
  0x43   : > { %v811_v16 = vld [vmem:[#allocation2 + $0x120] sm:$0xff]  ;;  %v812_v17 = vld [vmem:[#allocation2 + $0x128] sm:$0xff]  ;;  %1952 = vst.msk [vmem:[#allocation4 + $0x11] sm:$0x1] %vm1933_vm15, %v4158_v0  ;;  %1934 = vst.msk [vmem:[#allocation4] sm:$0x1] %vm1933_vm15, %v4158_v0 }
  0x44   : > { %1372 = vrot.lane.b32.xlu1 %v4489_v53, %s4165_s20  ;;  %v4536_v19 = vpack.c.bf16 %v812_v17, %v811_v16  ;;  %465 = vst.msk [vmem:[#allocation2 + $0x181] sm:$0xff] %vm278_vm0, %v432_v15  ;;  %v803_v17 = vld [vmem:[#allocation2 + $0xc0] sm:$0xff] }
  0x45   : > { %1499 = vrot.lane.b32.xlu0 %v4466_v40, %s4166_s14  ;;  %1935 = vst.msk [vmem:[#allocation4 + $0x18] sm:$0x1] %vm1933_vm15, %v4158_v0  ;;  %1936 = vst.msk [vmem:[#allocation4 + $0x30] sm:$0x1] %vm1933_vm15, %v4158_v0 }
  0x46   : > { %527 = vst.msk [vmem:[#allocation3 + $0x60] sm:$0xff] %vm278_vm0, %v4536_v19 }
  0x47   : > { %1937 = vst.msk [vmem:[#allocation4 + $0x48] sm:$0x1] %vm1933_vm15, %v4158_v0  ;;  %1938 = vst.msk [vmem:[#allocation4 + $0x60] sm:$0x1] %vm1933_vm15, %v4158_v0 }
  0x48   : > { %599 = vrot.lane.b32.xlu1 %v4453_v31, %s4159_s22  ;;  %v1313_v31 = vld [vmem:[#allocation2 + $0x81] sm:$0xff]  ;;  %1939 = vst.msk [vmem:[#allocation4 + $0x78] sm:$0x1] %vm1933_vm15, %v4158_v0  ;;  %1940 = vst.msk [vmem:[#allocation4 + $0x90] sm:$0x1] %vm1933_vm15, %v4158_v0 }
  0x49   : > { %1501 = vrot.lane.b32.xlu0 %v1468_v8, %s4166_s14  ;;  %v1200_v33 = vld [vmem:[#allocation2 + $0x140] sm:$0xff]  ;;  %v1341_v35 = vpack.c.bf16 %v1313_v31, %v1312_v29  ;;  %1941 = vst.msk [vmem:[#allocation4 + $0xa8] sm:$0x1] %vm1933_vm15, %v4158_v0  ;;  %1942 = vst.msk [vmem:[#allocation4 + $0xc0] sm:$0x1] %vm1933_vm15, %v4158_v0 }
  0x4a   : > { %v4558_v34 = vpack.c.bf16 %v1200_v33, %v1199_v32  ;;  %v1320_v29 = vld [vmem:[#allocation2 + $0xd9] sm:$0xff]  ;;  %v1321_v31 = vld [vmem:[#allocation2 + $0xe1] sm:$0xff]  ;;  %1943 = vst.msk [vmem:[#allocation4 + $0xd8] sm:$0x1] %vm1933_vm15, %v4158_v0  ;;  %1944 = vst.msk [vmem:[#allocation4 + $0xf0] sm:$0x1] %vm1933_vm15, %v4158_v0 }
  0x4b   : > { %v1345_v32 = vpack.c.bf16 %v1321_v31, %v1320_v29  ;;  %1945 = vst.msk [vmem:[#allocation4 + $0x108] sm:$0x1] %vm1933_vm15, %v4158_v0  ;;  %1946 = vst.msk [vmem:[#allocation4 + $0x120] sm:$0x1] %vm1933_vm15, %v4158_v0 }
  0x4c   : > { %601 = vrot.lane.b32.xlu1 %v4489_v53, %s4159_s22  ;;  %528 = vst.msk [vmem:[#allocation3 + $0x68] sm:$0xff] %vm278_vm0, %v4558_v34 }
  0x4d   : > { %728 = vrot.lane.b32.xlu0 %v4466_v40, %s4160_s23  ;;  %v1470_v40 = vpack.c.bf16 %v1442_v38, %v1441_v37  ;;  %v1450_v37 = vld [vmem:[#allocation2 + $0xe2] sm:$0xff]  ;;  %1947 = vst.msk [vmem:[#allocation4 + $0x138] sm:$0x1] %vm1933_vm15, %v4158_v0  ;;  %1948 = vst.msk [vmem:[#allocation4 + $0x150] sm:$0x1] %vm1933_vm15, %v4158_v0 }
  0x4e   : > { %1949 = vst.msk [vmem:[#allocation4 + $0x168] sm:$0x1] %vm1933_vm15, %v4158_v0  ;;  %1950 = vst.msk [vmem:[#allocation4 + $0x180] sm:$0x1] %vm1933_vm15, %v4158_v0 }
  0x4f   : > { %1951 = vst.msk [vmem:[#allocation4 + $0x198] sm:$0x1] %vm1933_vm15, %v4158_v0  ;;  %1953 = vst.msk [vmem:[#allocation4 + $0x29] sm:$0x1] %vm1933_vm15, %v4158_v0 }
  0x50   : > { %730 = vrot.lane.b32.xlu1 %v1468_v8, %s4160_s23  ;;  %1954 = vst.msk [vmem:[#allocation4 + $0x41] sm:$0x1] %vm1933_vm15, %v4158_v0  ;;  %1955 = vst.msk [vmem:[#allocation4 + $0x59] sm:$0x1] %vm1933_vm15, %v4158_v0 }
  0x51   : > { %857 = vrot.lane.b32.xlu0 %v4444_v27, %s4161_s29  ;;  %v1082_v27 = vpack.c.bf16 %v1054_v26, %v1053_v25  ;;  %1956 = vst.msk [vmem:[#allocation4 + $0x71] sm:$0x1] %vm1933_vm15, %v4158_v0  ;;  %1957 = vst.msk [vmem:[#allocation4 + $0x89] sm:$0x1] %vm1933_vm15, %v4158_v0 }
  0x52   : > { %1958 = vst.msk [vmem:[#allocation4 + $0xa1] sm:$0x1] %vm1933_vm15, %v4158_v0  ;;  %1959 = vst.msk [vmem:[#allocation4 + $0xb9] sm:$0x1] %vm1933_vm15, %v4158_v0 }
  0x53   : > { %1960 = vst.msk [vmem:[#allocation4 + $0xd1] sm:$0x1] %vm1933_vm15, %v4158_v0  ;;  %1961 = vst.msk [vmem:[#allocation4 + $0xe9] sm:$0x1] %vm1933_vm15, %v4158_v0 }
  0x54   : > { %859 = vrot.lane.b32.xlu1 %v4448_v30, %s4161_s29  ;;  %1962 = vst.msk [vmem:[#allocation4 + $0x101] sm:$0x1] %vm1933_vm15, %v4158_v0  ;;  %1963 = vst.msk [vmem:[#allocation4 + $0x119] sm:$0x1] %vm1933_vm15, %v4158_v0 }
  0x55   : > { %986 = vrot.lane.b32.xlu0 %v4489_v53, %s4162_s8  ;;  %v353_v53 = vld [vmem:[%s4356_s21 + $0xe8] sm:$0xff]  ;;  %1964 = vst.msk [vmem:[#allocation4 + $0x131] sm:$0x1] %vm1933_vm15, %v4158_v0  ;;  %1965 = vst.msk [vmem:[#allocation4 + $0x149] sm:$0x1] %vm1933_vm15, %v4158_v0  ;;  %s4167_s21 = smov 64  }
  0x56   : > { %v392_v56 = vmul.f32 %v4346_v1, %v353_v53  ;;  %1966 = vst.msk [vmem:[#allocation4 + $0x161] sm:$0x1] %vm1933_vm15, %v4158_v0  ;;  %1967 = vst.msk [vmem:[#allocation4 + $0x179] sm:$0x1] %vm1933_vm15, %v4158_v0 }
  0x57   : > { %1968 = vst.msk [vmem:[#allocation4 + $0x191] sm:$0x1] %vm1933_vm15, %v4158_v0  ;;  %1969 = vst.msk [vmem:[#allocation4 + $0x1a9] sm:$0x1] %vm1933_vm15, %v4158_v0 }
  0x58   : > { %988 = vrot.lane.b32.xlu1 %v953_v23, %s4162_s8  ;;  %v431_v60 = vadd.f32 %v4351_v2, %v392_v56  ;;  %v1066_v56 = vld [vmem:[#allocation2 + $0xfa] sm:$0xff] }
  0x59   : > { %1115 = vrot.lane.b32.xlu0 %v1468_v8, %s4163_s9  ;;  %v1445_v8 = vld [vmem:[#allocation2 + $0xaa] sm:$0xff]  ;;  %v1088_v59 = vpack.c.bf16 %v1066_v56, %v1065_v55  ;;  %v1074_v56 = vld [vmem:[#allocation2 + $0x15a] sm:$0xff] }
  0x5a   : > { %464 = vst.msk [vmem:[#allocation2 + $0x171] sm:$0xff] %vm278_vm0, %v431_v60  ;;  %v1472_v10 = vpack.c.bf16 %v1446_v9, %v1445_v8  ;;  %v1454_v8 = vld [vmem:[#allocation2 + $0x112] sm:$0xff] }
  0x5c   : > { %1117 = vrot.lane.b32.xlu1 %v1082_v27, %s4163_s9 }
  0x5d   : > { %1245 = vrot.lane.b32.xlu0 %v4448_v30, %s4164_s13  ;;  %v389_v30 = vmul.f32 %v4346_v1, %v350_v41 }
  0x5f   : > { %v428_v45 = vadd.f32 %v4351_v2, %v389_v30 }
  0x60   : > { %1247 = vrot.lane.b32.xlu1 %v4455_v36, %s4164_s13 }
  0x61   : > { %1374 = vrot.lane.b32.xlu0 %v953_v23, %s4165_s20  ;;  %461 = vst.msk [vmem:[#allocation2 + $0x151] sm:$0xff] %vm278_vm0, %v428_v45  ;;  %v1204_v5 = vld [vmem:[#allocation2 + $0x170] sm:$0xff] }
  0x62   : > { %v4600_v6 = vpack.c.bf16 %v1204_v5, %v1203_v4 }
  0x64   : > { %1376 = vrot.lane.b32.xlu1 %v1341_v35, %s4165_s20  ;;  %530 = vst.msk [vmem:[#allocation3 + $0x78] sm:$0xff] %vm278_vm0, %v4600_v6 }
  0x65   : > { %1503 = vrot.lane.b32.xlu0 %v1082_v27, %s4166_s14 }
  0x68   : > { %1505 = vrot.lane.b32.xlu1 %v1470_v40, %s4166_s14  ;;  %v815_v50 = vld [vmem:[#allocation2 + $0x150] sm:$0xff]  ;;  %v816_v54 = vld [vmem:[#allocation2 + $0x158] sm:$0xff] }
  0x69   : > { %603 = vrot.lane.b32.xlu0 %v953_v23, %s4159_s22  ;;  %v4586_v57 = vpack.c.bf16 %v816_v54, %v815_v50  ;;  %v1062_v23 = vld [vmem:[#allocation2 + $0xca] sm:$0xff]  ;;  %v937_v50 = vld [vmem:[#allocation2 + $0xf9] sm:$0xff] }
  0x6a   : > { %v1086_v26 = vpack.c.bf16 %v1062_v23, %v1061_v22  ;;  %v959_v53 = vpack.c.bf16 %v937_v50, %v936_v49  ;;  %v1069_v22 = vld [vmem:[#allocation2 + $0x122] sm:$0xff]  ;;  %v1070_v23 = vld [vmem:[#allocation2 + $0x12a] sm:$0xff]  ;;  %v945_v50 = vld [vmem:[#allocation2 + $0x159] sm:$0xff] }
  0x6b   : > { %529 = vst.msk [vmem:[#allocation3 + $0x70] sm:$0xff] %vm278_vm0, %v4586_v57  ;;  %v944_v49 = vld [vmem:[#allocation2 + $0x151] sm:$0xff] }
  0x6c   : > { %605 = vrot.lane.b32.xlu1 %v1341_v35, %s4159_s22  ;;  %v1073_v55 = vld [vmem:[#allocation2 + $0x152] sm:$0xff] }
  0x6d   : > { %732 = vrot.lane.b32.xlu0 %v1082_v27, %s4160_s23 }
  0x70   : > { %734 = vrot.lane.b32.xlu1 %v1470_v40, %s4160_s23 }
  0x71   : > { %861 = vrot.lane.b32.xlu0 %v4455_v36, %s4161_s29  ;;  %v1084_v36 = vpack.c.bf16 %v1058_v62, %v1057_v61  ;;  %v1324_v62 = vld [vmem:[#allocation2 + $0x109] sm:$0xff] }
  0x74   : > { %863 = vrot.lane.b32.xlu1 %v4460_v39, %s4161_s29 }
  0x75   : > { %990 = vrot.lane.b32.xlu0 %v1341_v35, %s4162_s8  ;;  %v1449_v35 = vld [vmem:[#allocation2 + $0xda] sm:$0xff] }
  0x78   : > { %992 = vrot.lane.b32.xlu1 %v955_v58, %s4162_s8 }
  0x79   : > { %1119 = vrot.lane.b32.xlu0 %v1470_v40, %s4163_s9  ;;  %v1474_v40 = vpack.c.bf16 %v1450_v37, %v1449_v35  ;;  %v1457_v35 = vld [vmem:[#allocation2 + $0x13a] sm:$0xff]  ;;  %v1458_v37 = vld [vmem:[#allocation2 + $0x142] sm:$0xff] }
  0x7c   : > { %1121 = vrot.lane.b32.xlu1 %v1084_v36, %s4163_s9 }
  0x7d   : > { %1249 = vrot.lane.b32.xlu0 %v4460_v39, %s4164_s13  ;;  %v394_v39 = vmul.f32 %v4346_v1, %v355_v12  ;;  %v828_v1 = vpack.c.bf16 %v804_v18, %v803_v17  ;;  %v940_v18 = vld [vmem:[#allocation2 + $0x121] sm:$0xff] }
  0x7f   : > { %v433_v16 = vadd.f32 %v4351_v2, %v394_v39  ;;  %v957_v2 = vpack.c.bf16 %v933_v21, %v932_v20 }
  0x80   : > { %1251 = vrot.lane.b32.xlu1 %v4468_v43, %s4164_s13 }
  0x81   : > { %1378 = vrot.lane.b32.xlu0 %v955_v58, %s4165_s20  ;;  %466 = vst.msk [vmem:[#allocation2 + $0x189] sm:$0xff] %vm278_vm0, %v433_v16 }
  0x84   : > { %1380 = vrot.lane.b32.xlu1 %v1343_v7, %s4165_s20 }
  0x85   : > { %1507 = vrot.lane.b32.xlu0 %v1084_v36, %s4166_s14 }
  0x88   : > { %1509 = vrot.lane.b32.xlu1 %v1472_v10, %s4166_s14 }
  0x89   : > { %607 = vrot.lane.b32.xlu0 %v955_v58, %s4159_s22 }
  0x8b   : > { %v596_v24 = vpop.permute.xlu0 %595 }
  0x8c   : > { %609 = vrot.lane.b32.xlu1 %v1343_v7, %s4159_s22  ;;  %644 = vst.msk [vmem:[#allocation3] sm:$0xff] %vm643_vm4, %v596_v24 }
  0x8d   : > { %736 = vrot.lane.b32.xlu0 %v1084_v36, %s4160_s23  ;;  %v1325_v36 = vld [vmem:[#allocation2 + $0x111] sm:$0xff] }
  0x8e   : > { %v1347_v3 = vpack.c.bf16 %v1325_v36, %v1324_v62  ;;  %v1333_v62 = vld [vmem:[#allocation2 + $0x171] sm:$0xff] }
  0x90   : > { %738 = vrot.lane.b32.xlu1 %v1472_v10, %s4160_s23 }
  0x91   : > { %865 = vrot.lane.b32.xlu0 %v4468_v43, %s4161_s29  ;;  %v484_v43 = vld [vmem:[#allocation2 + $0xc8] sm:$0xff] }
  0x92   : > { %v507_v27 = vpack.c.bf16 %v484_v43, %v483_v28  ;;  %v1328_v43 = vld [vmem:[#allocation2 + $0x139] sm:$0xff] }
  0x94   : > { %867 = vrot.lane.b32.xlu1 %v828_v1, %s4161_s29  ;;  %523 = vst.msk [vmem:[#allocation3 + $0x40] sm:$0xff] %vm278_vm0, %v507_v27  ;;  %v1329_v27 = vld [vmem:[#allocation2 + $0x141] sm:$0xff]  ;;  %vm2179_vm0 = vcmask 523520  }
  0x95   : > { %994 = vrot.lane.b32.xlu0 %v1343_v7, %s4162_s8  ;;  %v1453_v7 = vld [vmem:[#allocation2 + $0x10a] sm:$0xff]  ;;  %v1349_v31 = vpack.c.bf16 %v1329_v27, %v1328_v43 }
  0x98   : > { %996 = vrot.lane.b32.xlu1 %v957_v2, %s4162_s8 }
  0x99   : > { %1123 = vrot.lane.b32.xlu0 %v1472_v10, %s4163_s9 }
  0x9c   : > { %1125 = vrot.lane.b32.xlu1 %v1086_v26, %s4163_s9 }
  0x9d   : > { %1253 = vrot.lane.b32.xlu0 %v828_v1, %s4164_s13  ;;  %v941_v1 = vld [vmem:[#allocation2 + $0x129] sm:$0xff] }
  0x9e   : > { %v725_v25 = vpop.permute.xlu1 %724  ;;  %v961_v21 = vpack.c.bf16 %v941_v1, %v940_v18  ;;  %v948_v1 = vld [vmem:[#allocation2 + $0x181] sm:$0xff] }
  0x9f   : > { %773 = vst.msk [vmem:[#allocation3] sm:$0xff] %vm772_vm5, %v725_v25  ;;  %v598_v33 = vpop.permute.xlu0 %597  ;;  %v1090_v25 = vpack.c.bf16 %v1070_v23, %v1069_v22  ;;  %v1077_v23 = vld [vmem:[#allocation2 + $0x182] sm:$0xff] }
  0xa0   : > { %1255 = vrot.lane.b32.xlu1 %v4477_v48, %s4164_s13  ;;  %645 = vst.msk [vmem:[#allocation3 + $0x8] sm:$0xff] %vm643_vm4, %v598_v33 }
  0xa1   : > { %1382 = vrot.lane.b32.xlu0 %v957_v2, %s4165_s20 }
  0xa2   : > { %v727_v38 = vpop.permute.xlu1 %726 }
  0xa3   : > { %774 = vst.msk [vmem:[#allocation3 + $0x8] sm:$0xff] %vm772_vm5, %v727_v38  ;;  %v854_v41 = vpop.permute.xlu0 %853 }
  0xa4   : > { %1384 = vrot.lane.b32.xlu1 %v1345_v32, %s4165_s20  ;;  %902 = vst.msk [vmem:[#allocation3] sm:$0xff] %vm901_vm6, %v854_v41 }
  0xa5   : > { %1511 = vrot.lane.b32.xlu0 %v1086_v26, %s4166_s14 }
  0xa6   : > { %v856_v42 = vpop.permute.xlu1 %855 }
  0xa7   : > { %903 = vst.msk [vmem:[#allocation3 + $0x8] sm:$0xff] %vm901_vm6, %v856_v42  ;;  %v983_v30 = vpop.permute.xlu0 %982 }
  0xa8   : > { %1513 = vrot.lane.b32.xlu1 %v1474_v40, %s4166_s14  ;;  %1031 = vst.msk [vmem:[#allocation3] sm:$0xff] %vm1030_vm7, %v983_v30 }
  0xa9   : > { %611 = vrot.lane.b32.xlu0 %v957_v2, %s4159_s22 }
  0xaa   : > { %v985_v44 = vpop.permute.xlu1 %984 }
  0xab   : > { %1032 = vst.msk [vmem:[#allocation3 + $0x8] sm:$0xff] %vm1030_vm7, %v985_v44  ;;  %v1112_v45 = vpop.permute.xlu0 %1111 }
  0xac   : > { %613 = vrot.lane.b32.xlu1 %v1345_v32, %s4159_s22  ;;  %1160 = vst.msk [vmem:[#allocation3] sm:$0xff] %vm1159_vm8, %v1112_v45 }
  0xad   : > { %740 = vrot.lane.b32.xlu0 %v1086_v26, %s4160_s23 }
  0xae   : > { %v1114_v46 = vpop.permute.xlu1 %1113 }
  0xaf   : > { %1161 = vst.msk [vmem:[#allocation3 + $0x8] sm:$0xff] %vm1159_vm8, %v1114_v46  ;;  %v1242_v47 = vpop.permute.xlu0 %1241 }
  0xb0   : > { %742 = vrot.lane.b32.xlu1 %v1474_v40, %s4160_s23  ;;  %1290 = vst.msk [vmem:[#allocation3] sm:$0xff] %vm1289_vm9, %v1242_v47 }
  0xb1   : > { %869 = vrot.lane.b32.xlu0 %v4477_v48, %s4161_s29 }
  0xb2   : > { %v1244_v52 = vpop.permute.xlu1 %1243 }
  0xb3   : > { %1291 = vst.msk [vmem:[#allocation3 + $0x8] sm:$0xff] %vm1289_vm9, %v1244_v52  ;;  %v1371_v54 = vpop.permute.xlu0 %1370 }
  0xb4   : > { %871 = vrot.lane.b32.xlu1 %v4480_v51, %s4161_s29  ;;  %1419 = vst.msk [vmem:[#allocation3] sm:$0xff] %vm1418_vm10, %v1371_v54 }
  0xb5   : > { %998 = vrot.lane.b32.xlu0 %v1345_v32, %s4162_s8 }
  0xb6   : > { %v1373_v58 = vpop.permute.xlu1 %1372 }
  0xb7   : > { %1420 = vst.msk [vmem:[#allocation3 + $0x8] sm:$0xff] %vm1418_vm10, %v1373_v58  ;;  %v1500_v48 = vpop.permute.xlu0 %1499 }
  0xb8   : > { %1000 = vrot.lane.b32.xlu1 %v959_v53, %s4162_s8  ;;  %1548 = vst.msk [vmem:[#allocation3] sm:$0xff] %vm1547_vm11, %v1500_v48 }
  0xb9   : > { %1127 = vrot.lane.b32.xlu0 %v1474_v40, %s4163_s9 }
  0xba   : > { %v600_v60 = vpop.permute.xlu1 %599 }
  0xbb   : > { %646 = vst.msk [vmem:[#allocation3 + $0x10] sm:$0xff] %vm643_vm4, %v600_v60  ;;  %v1502_v61 = vpop.permute.xlu0 %1501 }
  0xbc   : > { %1129 = vrot.lane.b32.xlu1 %v1088_v59, %s4163_s9  ;;  %1549 = vst.msk [vmem:[#allocation3 + $0x8] sm:$0xff] %vm1547_vm11, %v1502_v61  ;;  %v1332_v61 = vld [vmem:[#allocation2 + $0x169] sm:$0xff] }
  0xbd   : > { %1257 = vrot.lane.b32.xlu0 %v4480_v51, %s4164_s13  ;;  %v1476_v51 = vpack.c.bf16 %v1454_v8, %v1453_v7  ;;  %v1462_v7 = vld [vmem:[#allocation2 + $0x172] sm:$0xff] }
  0xbe   : > { %v602_v63 = vpop.permute.xlu1 %601 }
  0xbf   : > { %647 = vst.msk [vmem:[#allocation3 + $0x18] sm:$0xff] %vm643_vm4, %v602_v63  ;;  %v729_v4 = vpop.permute.xlu0 %728  ;;  %v1564_v5 = vld [vmem:[#allocation3] sm:$0xff]  ;;  %v1351_v63 = vpack.c.bf16 %v1333_v62, %v1332_v61 }
  0xc0   : > { %1259 = vrot.lane.b32.xlu1 %v4528_v13, %s4164_s13  ;;  %775 = vst.msk [vmem:[#allocation3 + $0x10] sm:$0xff] %vm772_vm5, %v729_v4  ;;  %3935 = vmatprep.mubr.msk.bf16.mxu0 %vm1600_vm12, %v1564_v5  ;;  %v1461_v5 = vld [vmem:[#allocation2 + $0x16a] sm:$0xff] }
  0xc1   : > { %1386 = vrot.lane.b32.xlu0 %v959_v53, %s4165_s20 }
  0xc2   : > { %v731_v9 = vpop.permute.xlu1 %730 }
  0xc3   : > { %776 = vst.msk [vmem:[#allocation3 + $0x18] sm:$0xff] %vm772_vm5, %v731_v9  ;;  %v858_v10 = vpop.permute.xlu0 %857  ;;  %v1565_v11 = vld [vmem:[#allocation3 + $0x8] sm:$0xff] }
  0xc4   : > { %1388 = vrot.lane.b32.xlu1 %v1347_v3, %s4165_s20  ;;  %904 = vst.msk [vmem:[#allocation3 + $0x10] sm:$0xff] %vm901_vm6, %v858_v10  ;;  %3936 = vmatmul.mubr.msk.bf16.vlgmr.msra.gmra.mrb[0].mxu0 %vm1600_vm12, %v1565_v11 }
  0xc5   : > { %1515 = vrot.lane.b32.xlu0 %v1088_v59, %s4166_s14 }
  0xc6   : > { %v860_v12 = vpop.permute.xlu1 %859 }
  0xc7   : > { %905 = vst.msk [vmem:[#allocation3 + $0x18] sm:$0xff] %vm901_vm6, %v860_v12  ;;  %v987_v14 = vpop.permute.xlu0 %986 }
  0xc8   : > { %1517 = vrot.lane.b32.xlu1 %v1476_v51, %s4166_s14  ;;  %1033 = vst.msk [vmem:[#allocation3 + $0x10] sm:$0xff] %vm1030_vm7, %v987_v14 }
  0xc9   : > { %615 = vrot.lane.b32.xlu0 %v959_v53, %s4159_s22  ;;  %v963_v53 = vpack.c.bf16 %v945_v50, %v944_v49  ;;  %v2196_v50 = vld [vmem:[#allocation4 + $0x2] sm:$0xff] }
  0xca   : > { %v989_v39 = vpop.permute.xlu1 %988 }
  0xcb   : > { %1034 = vst.msk [vmem:[#allocation3 + $0x18] sm:$0xff] %vm1030_vm7, %v989_v39  ;;  %v1116_v15 = vpop.permute.xlu0 %1115  ;;  %v819_v39 = vld [vmem:[#allocation2 + $0x180] sm:$0xff] }
  0xcc   : > { %617 = vrot.lane.b32.xlu1 %v1347_v3, %s4159_s22  ;;  %1162 = vst.msk [vmem:[#allocation3 + $0x10] sm:$0xff] %vm1159_vm8, %v1116_v15  ;;  %v820_v15 = vld [vmem:[#allocation2 + $0x188] sm:$0xff] }
  0xcd   : > { %744 = vrot.lane.b32.xlu0 %v1088_v59, %s4160_s23  ;;  %v1092_v59 = vpack.c.bf16 %v1074_v56, %v1073_v55 }
  0xce   : > { %v1118_v16 = vpop.permute.xlu1 %1117 }
  0xcf   : > { %1163 = vst.msk [vmem:[#allocation3 + $0x18] sm:$0xff] %vm1159_vm8, %v1118_v16  ;;  %v1246_v17 = vpop.permute.xlu0 %1245 }
  0xd0   : > { %746 = vrot.lane.b32.xlu1 %v1476_v51, %s4160_s23  ;;  %1292 = vst.msk [vmem:[#allocation3 + $0x10] sm:$0xff] %vm1289_vm9, %v1246_v17  ;;  %v4767_v17 = vpack.c.bf16 %v820_v15, %v819_v39 }
  0xd1   : > { %873 = vrot.lane.b32.xlu0 %v4528_v13, %s4161_s29 }
  0xd2   : > { %v1248_v20 = vpop.permute.xlu1 %1247 }
  0xd3   : > { %1293 = vst.msk [vmem:[#allocation3 + $0x18] sm:$0xff] %vm1289_vm9, %v1248_v20  ;;  %v1375_v2 = vpop.permute.xlu0 %1374  ;;  %v949_v20 = vld [vmem:[#allocation2 + $0x189] sm:$0xff] }
  0xd4   : > { %875 = vrot.lane.b32.xlu1 %v4536_v19, %s4161_s29  ;;  %1421 = vst.msk [vmem:[#allocation3 + $0x10] sm:$0xff] %vm1418_vm10, %v1375_v2  ;;  %v4775_v2 = vpack.c.bf16 %v949_v20, %v948_v1 }
  0xd5   : > { %1002 = vrot.lane.b32.xlu0 %v1347_v3, %s4162_s8 }
  0xd6   : > { %v1377_v24 = vpop.permute.xlu1 %1376 }
  0xd7   : > { %1422 = vst.msk [vmem:[#allocation3 + $0x18] sm:$0xff] %vm1418_vm10, %v1377_v24  ;;  %v1504_v26 = vpop.permute.xlu0 %1503  ;;  %v1078_v24 = vld [vmem:[#allocation2 + $0x18a] sm:$0xff] }
  0xd8   : > { %1004 = vrot.lane.b32.xlu1 %v961_v21, %s4162_s8  ;;  %1550 = vst.msk [vmem:[#allocation3 + $0x10] sm:$0xff] %vm1547_vm11, %v1504_v26  ;;  %v4782_v26 = vpack.c.bf16 %v1078_v24, %v1077_v23 }
  0xd9   : > { %1131 = vrot.lane.b32.xlu0 %v1476_v51, %s4163_s9 }
  0xda   : > { %v1506_v13 = vpop.permute.xlu1 %1505 }
  0xdb   : > { %1551 = vst.msk [vmem:[#allocation3 + $0x18] sm:$0xff] %vm1547_vm11, %v1506_v13  ;;  %v604_v28 = vpop.permute.xlu0 %603  ;;  %v1207_v13 = vld [vmem:[#allocation2 + $0x198] sm:$0xff] }
  0xdc   : > { %1133 = vrot.lane.b32.xlu1 %v1090_v25, %s4163_s9  ;;  %648 = vst.msk [vmem:[#allocation3 + $0x20] sm:$0xff] %vm643_vm4, %v604_v28  ;;  %v1208_v28 = vld [vmem:[#allocation2 + $0x1a0] sm:$0xff] }
  0xdd   : > { %1261 = vrot.lane.b32.xlu0 %v4536_v19, %s4164_s13  ;;  %v1478_v19 = vpack.c.bf16 %v1458_v37, %v1457_v35  ;;  %v1224_v27 = vpack.c.bf16 %v1208_v28, %v1207_v13 }
  0xde   : > { %v606_v29 = vpop.permute.xlu1 %605 }
  0xdf   : > { %649 = vst.msk [vmem:[#allocation3 + $0x28] sm:$0xff] %vm643_vm4, %v606_v29  ;;  %v733_v32 = vpop.permute.xlu0 %732  ;;  %v1566_v33 = vld [vmem:[#allocation3 + $0x10] sm:$0xff] }
  0xe0   : > { %1263 = vrot.lane.b32.xlu1 %v4558_v34, %s4164_s13  ;;  %777 = vst.msk [vmem:[#allocation3 + $0x20] sm:$0xff] %vm772_vm5, %v733_v32  ;;  %3939 = vmatprep.mubr.msk.bf16.mxu0 %vm1600_vm12, %v1566_v33  ;;  %v1337_v32 = vld [vmem:[#allocation2 + $0x1a1] sm:$0xff] }
  0xe1   : > { %1390 = vrot.lane.b32.xlu0 %v961_v21, %s4165_s20 }
  0xe2   : > { %v735_v38 = vpop.permute.xlu1 %734  ;;  %v1567_v40 = vld [vmem:[#allocation3 + $0x18] sm:$0xff] }
  0xe3   : > { %778 = vst.msk [vmem:[#allocation3 + $0x28] sm:$0xff] %vm772_vm5, %v735_v38  ;;  %3940 = vmatmul.mubr.msk.bf16.gmra.mrb[4].mxu0 %vm1600_vm12, %v1567_v40  ;;  %v862_v41 = vpop.permute.xlu0 %861  ;;  %v1465_v40 = vld [vmem:[#allocation2 + $0x19a] sm:$0xff] }
  0xe4   : > { %1392 = vrot.lane.b32.xlu1 %v1349_v31, %s4165_s20  ;;  %906 = vst.msk [vmem:[#allocation3 + $0x20] sm:$0xff] %vm901_vm6, %v862_v41 }
  0xe5   : > { %1519 = vrot.lane.b32.xlu0 %v1090_v25, %s4166_s14 }
  0xe6   : > { %v864_v42 = vpop.permute.xlu1 %863 }
  0xe7   : > { %907 = vst.msk [vmem:[#allocation3 + $0x28] sm:$0xff] %vm901_vm6, %v864_v42  ;;  %v991_v30 = vpop.permute.xlu0 %990 }
  0xe8   : > { %1521 = vrot.lane.b32.xlu1 %v1478_v19, %s4166_s14  ;;  %1035 = vst.msk [vmem:[#allocation3 + $0x20] sm:$0xff] %vm1030_vm7, %v991_v30 }
  0xe9   : > { %619 = vrot.lane.b32.xlu0 %v961_v21, %s4159_s22 }
  0xea   : > { %v993_v44 = vpop.permute.xlu1 %992 }
  0xeb   : > { %1036 = vst.msk [vmem:[#allocation3 + $0x28] sm:$0xff] %vm1030_vm7, %v993_v44  ;;  %v1120_v45 = vpop.permute.xlu0 %1119  ;;  %v2067_v44 = vld [vmem:[#allocation4 + $0x1] sm:$0xff] }
  0xec   : > { %621 = vrot.lane.b32.xlu1 %v1349_v31, %s4159_s22  ;;  %1164 = vst.msk [vmem:[#allocation3 + $0x20] sm:$0xff] %vm1159_vm8, %v1120_v45  ;;  %v2068_v45 = vld [vmem:[#allocation4 + $0x9] sm:$0xff] }
  0xed   : > { %748 = vrot.lane.b32.xlu0 %v1090_v25, %s4160_s23 }
  0xee   : > { %v1122_v46 = vpop.permute.xlu1 %1121 }
  0xef   : > { %1165 = vst.msk [vmem:[#allocation3 + $0x28] sm:$0xff] %vm1159_vm8, %v1122_v46  ;;  %v1250_v47 = vpop.permute.xlu0 %1249 }
  0xf0   : > { %750 = vrot.lane.b32.xlu1 %v1478_v19, %s4160_s23  ;;  %1294 = vst.msk [vmem:[#allocation3 + $0x20] sm:$0xff] %vm1289_vm9, %v1250_v47  ;;  %v2099_v47 = vpack.c.bf16 %v2068_v45, %v2067_v44 }
  0xf1   : > { %877 = vrot.lane.b32.xlu0 %v4558_v34, %s4161_s29 }
  0xf2   : > { %v1252_v52 = vpop.permute.xlu1 %1251 }
  0xf3   : > { %1295 = vst.msk [vmem:[#allocation3 + $0x28] sm:$0xff] %vm1289_vm9, %v1252_v52  ;;  %v1379_v54 = vpop.permute.xlu0 %1378  ;;  %v2197_v52 = vld [vmem:[#allocation4 + $0xa] sm:$0xff] }
  0xf4   : > { %879 = vrot.lane.b32.xlu1 %v4586_v57, %s4161_s29  ;;  %1423 = vst.msk [vmem:[#allocation3 + $0x20] sm:$0xff] %vm1418_vm10, %v1379_v54  ;;  %v2228_v54 = vpack.c.bf16 %v2197_v52, %v2196_v50  ;;  %v2004_v50 = vld [vmem:[#allocation4 + $0x8] sm:$0xff] }
  0xf5   : > { %1006 = vrot.lane.b32.xlu0 %v1349_v31, %s4162_s8  ;;  %v1336_v31 = vld [vmem:[#allocation2 + $0x199] sm:$0xff] }
  0xf6   : > { %v1381_v58 = vpop.permute.xlu1 %1380  ;;  %v1353_v35 = vpack.c.bf16 %v1337_v32, %v1336_v31 }
  0xf7   : > { %1424 = vst.msk [vmem:[#allocation3 + $0x28] sm:$0xff] %vm1418_vm10, %v1381_v58  ;;  %v1508_v48 = vpop.permute.xlu0 %1507 }
  0xf8   : > { %1008 = vrot.lane.b32.xlu1 %v963_v53, %s4162_s8  ;;  %1552 = vst.msk [vmem:[#allocation3 + $0x20] sm:$0xff] %vm1547_vm11, %v1508_v48 }
  0xf9   : > { %1135 = vrot.lane.b32.xlu0 %v1478_v19, %s4163_s9  ;;  %v1466_v19 = vld [vmem:[#allocation2 + $0x1a2] sm:$0xff] }
  0xfa   : > { %v1510_v34 = vpop.permute.xlu1 %1509  ;;  %v1482_v0 = vpack.c.bf16 %v1466_v19, %v1465_v40 }
  0xfb   : > { %1553 = vst.msk [vmem:[#allocation3 + $0x28] sm:$0xff] %vm1547_vm11, %v1510_v34  ;;  %v608_v60 = vpop.permute.xlu0 %607 }
  0xfc   : > { %1137 = vrot.lane.b32.xlu1 %v1092_v59, %s4163_s9  ;;  %650 = vst.msk [vmem:[#allocation3 + $0x30] sm:$0xff] %vm643_vm4, %v608_v60 }
  0xfd   : > { %1265 = vrot.lane.b32.xlu0 %v4586_v57, %s4164_s13  ;;  %v1480_v57 = vpack.c.bf16 %v1462_v7, %v1461_v5 }
  0xfe   : > { %v610_v36 = vpop.permute.xlu1 %609 }
  0xff   : > { %651 = vst.msk [vmem:[#allocation3 + $0x38] sm:$0xff] %vm643_vm4, %v610_v36  ;;  %v737_v3 = vpop.permute.xlu0 %736  ;;  %v1568_v4 = vld [vmem:[#allocation3 + $0x20] sm:$0xff] }
 0x100   : > { %1267 = vrot.lane.b32.xlu1 %v4600_v6, %s4164_s13  ;;  %779 = vst.msk [vmem:[#allocation3 + $0x30] sm:$0xff] %vm772_vm5, %v737_v3  ;;  %3943 = vmatprep.mubr.msk.bf16.mxu0 %vm1600_vm12, %v1568_v4 }
 0x101   : > { %1394 = vrot.lane.b32.xlu0 %v963_v53, %s4165_s20 }
 0x102   : > { %v739_v8 = vpop.permute.xlu1 %738  ;;  %v1569_v9 = vld [vmem:[#allocation3 + $0x28] sm:$0xff] }
 0x103   : > { %780 = vst.msk [vmem:[#allocation3 + $0x38] sm:$0xff] %vm772_vm5, %v739_v8  ;;  %3944 = vmatmul.mubr.msk.bf16.gmra.mrb[8].mxu0 %vm1600_vm12, %v1569_v9  ;;  %v866_v51 = vpop.permute.xlu0 %865 }
 0x104   : > { %1396 = vrot.lane.b32.xlu1 %v1351_v63, %s4165_s20  ;;  %908 = vst.msk [vmem:[#allocation3 + $0x30] sm:$0xff] %vm901_vm6, %v866_v51 }
 0x105   : > { %1523 = vrot.lane.b32.xlu0 %v1092_v59, %s4166_s14 }
 0x106   : > { %v868_v10 = vpop.permute.xlu1 %867 }
 0x107   : > { %909 = vst.msk [vmem:[#allocation3 + $0x38] sm:$0xff] %vm901_vm6, %v868_v10  ;;  %v995_v11 = vpop.permute.xlu0 %994 }
 0x108   : > { %1525 = vrot.lane.b32.xlu1 %v1480_v57, %s4166_s14  ;;  %1037 = vst.msk [vmem:[#allocation3 + $0x30] sm:$0xff] %vm1030_vm7, %v995_v11 }
 0x109   : > { %623 = vrot.lane.b32.xlu0 %v963_v53, %s4159_s22 }
 0x10a   : > { %v997_v12 = vpop.permute.xlu1 %996 }
 0x10b   : > { %1038 = vst.msk [vmem:[#allocation3 + $0x38] sm:$0xff] %vm1030_vm7, %v997_v12  ;;  %v1124_v14 = vpop.permute.xlu0 %1123 }
 0x10c   : > { %625 = vrot.lane.b32.xlu1 %v1351_v63, %s4159_s22  ;;  %1166 = vst.msk [vmem:[#allocation3 + $0x30] sm:$0xff] %vm1159_vm8, %v1124_v14 }
 0x10d   : > { %752 = vrot.lane.b32.xlu0 %v1092_v59, %s4160_s23 }
 0x10e   : > { %v1126_v16 = vpop.permute.xlu1 %1125 }
 0x10f   : > { %1167 = vst.msk [vmem:[#allocation3 + $0x38] sm:$0xff] %vm1159_vm8, %v1126_v16  ;;  %v1254_v18 = vpop.permute.xlu0 %1253 }
 0x110   : > { %754 = vrot.lane.b32.xlu1 %v1480_v57, %s4160_s23  ;;  %1296 = vst.msk [vmem:[#allocation3 + $0x30] sm:$0xff] %vm1289_vm9, %v1254_v18 }
 0x111   : > { %881 = vrot.lane.b32.xlu0 %v4600_v6, %s4161_s29 }
 0x112   : > { %v1256_v21 = vpop.permute.xlu1 %1255 }
 0x113   : > { %1297 = vst.msk [vmem:[#allocation3 + $0x38] sm:$0xff] %vm1289_vm9, %v1256_v21  ;;  %v1383_v22 = vpop.permute.xlu0 %1382 }
 0x114   : > { %883 = vrot.lane.b32.xlu1 %v4767_v17, %s4161_s29  ;;  %1425 = vst.msk [vmem:[#allocation3 + $0x30] sm:$0xff] %vm1418_vm10, %v1383_v22 }
 0x115   : > { %1010 = vrot.lane.b32.xlu0 %v1351_v63, %s4162_s8 }
 0x116   : > { %v1385_v25 = vpop.permute.xlu1 %1384 }
 0x117   : > { %1426 = vst.msk [vmem:[#allocation3 + $0x38] sm:$0xff] %vm1418_vm10, %v1385_v25  ;;  %v1512_v6 = vpop.permute.xlu0 %1511 }
 0x118   : > { %1012 = vrot.lane.b32.xlu1 %v4775_v2, %s4162_s8  ;;  %1554 = vst.msk [vmem:[#allocation3 + $0x30] sm:$0xff] %vm1547_vm11, %v1512_v6 }
 0x119   : > { %1139 = vrot.lane.b32.xlu0 %v1480_v57, %s4163_s9 }
 0x11a   : > { %v1514_v43 = vpop.permute.xlu1 %1513 }
 0x11b   : > { %1555 = vst.msk [vmem:[#allocation3 + $0x38] sm:$0xff] %vm1547_vm11, %v1514_v43  ;;  %v612_v29 = vpop.permute.xlu0 %611 }
 0x11c   : > { %1141 = vrot.lane.b32.xlu1 %v4782_v26, %s4163_s9  ;;  %652 = vst.msk [vmem:[#allocation3 + $0x40] sm:$0xff] %vm643_vm4, %v612_v29 }
 0x11d   : > { %1269 = vrot.lane.b32.xlu0 %v4767_v17, %s4164_s13 }
 0x11e   : > { %v614_v33 = vpop.permute.xlu1 %613 }
 0x11f   : > { %653 = vst.msk [vmem:[#allocation3 + $0x48] sm:$0xff] %vm643_vm4, %v614_v33  ;;  %v741_v37 = vpop.permute.xlu0 %740  ;;  %v1570_v38 = vld [vmem:[#allocation3 + $0x30] sm:$0xff] }
 0x120   : > { %1271 = vrot.lane.b32.xlu1 %v1224_v27, %s4164_s13  ;;  %781 = vst.msk [vmem:[#allocation3 + $0x40] sm:$0xff] %vm772_vm5, %v741_v37  ;;  %3947 = vmatprep.mubr.msk.bf16.mxu0 %vm1600_vm12, %v1570_v38  ;;  %s3779_s13 = sshll.u32 %s4232_s28, 10  ;;  %s4169_s28 = smov [#allocation6]  }
 0x121   : > { %1398 = vrot.lane.b32.xlu0 %v4775_v2, %s4165_s20  ;;  %s5501_s18 = scalar_lea.hbm %s5555_s7, %s3779_s13  ;;  %s4098_s22 = sshll.u32 %s4169_s28, 4  ;;  %s4099_s22 = int_to_ptr.vmem [resolvable:$false] %s4098_s22 }
 0x122   : > { %v743_v41 = vpop.permute.xlu1 %742  ;;  %v1571_v42 = vld [vmem:[#allocation3 + $0x38] sm:$0xff]  ;;  %s4100_s23 = scalar_lea.vmem %s4099_s22, 2048 }
 0x123   : > { %782 = vst.msk [vmem:[#allocation3 + $0x48] sm:$0xff] %vm772_vm5, %v743_v41  ;;  %3948 = vmatmul.mubr.msk.bf16.gmra.mrb[12].mxu0 %vm1600_vm12, %v1571_v42  ;;  %v870_v30 = vpop.permute.xlu0 %869 }
 0x124   : > { %1400 = vrot.lane.b32.xlu1 %v1353_v35, %s4165_s20  ;;  %910 = vst.msk [vmem:[#allocation3 + $0x40] sm:$0xff] %vm901_vm6, %v870_v30 }
 0x125   : > { %1527 = vrot.lane.b32.xlu0 %v4782_v26, %s4166_s14 }
 0x126   : > { %v872_v46 = vpop.permute.xlu1 %871 }
 0x127   : > { %911 = vst.msk [vmem:[#allocation3 + $0x48] sm:$0xff] %vm901_vm6, %v872_v46  ;;  %v999_v49 = vpop.permute.xlu0 %998 }
 0x128   : > { %1529 = vrot.lane.b32.xlu1 %v1482_v0, %s4166_s14  ;;  %1039 = vst.msk [vmem:[#allocation3 + $0x40] sm:$0xff] %vm1030_vm7, %v999_v49  ;;  %v2003_v49 = vld [vmem:[#allocation4] sm:$0xff] }
 0x12a   : > { %v1001_v53 = vpop.permute.xlu1 %1000 }
 0x12b   : > { %1040 = vst.msk [vmem:[#allocation3 + $0x48] sm:$0xff] %vm1030_vm7, %v1001_v53  ;;  %v1128_v55 = vpop.permute.xlu0 %1127  ;;  %v2035_v53 = vpack.c.bf16 %v2004_v50, %v2003_v49 }
 0x12c   : > { %2131 = vrot.lane.b32.xlu1 %v2099_v47, %s4166_s14  ;;  %1168 = vst.msk [vmem:[#allocation3 + $0x40] sm:$0xff] %vm1159_vm8, %v1128_v55 }
 0x12d   : > { %2051 = vst.msk [vmem:[#allocation5] sm:$0xff] %vm1924_vm13, %v2035_v53 }
 0x12e   : > { %v1130_v56 = vpop.permute.xlu1 %1129 }
 0x12f   : > { %1169 = vst.msk [vmem:[#allocation3 + $0x48] sm:$0xff] %vm1159_vm8, %v1130_v56  ;;  %v1258_v58 = vpop.permute.xlu0 %1257  ;;  %v4956_v56 = vld [vmem:[%s5553_s5] ss:$0 sm:$0xff] }
 0x130   : > { %2260 = vrot.lane.b32.xlu1 %v2228_v54, %s4167_s21  ;;  %1298 = vst.msk [vmem:[#allocation3 + $0x40] sm:$0xff] %vm1289_vm9, %v1258_v58 }
 0x132   : > { %v1260_v59 = vpop.permute.xlu1 %1259 }
 0x133   : > { %1299 = vst.msk [vmem:[#allocation3 + $0x48] sm:$0xff] %vm1289_vm9, %v1260_v59  ;;  %v1387_v48 = vpop.permute.xlu0 %1386 }
 0x134   : > { %1427 = vst.msk [vmem:[#allocation3 + $0x40] sm:$0xff] %vm1418_vm10, %v1387_v48 }
 0x136   : > { %v1389_v34 = vpop.permute.xlu1 %1388 }
 0x137   : > { %1428 = vst.msk [vmem:[#allocation3 + $0x48] sm:$0xff] %vm1418_vm10, %v1389_v34  ;;  %v1516_v60 = vpop.permute.xlu0 %1515  ;;  %v4962_v34 = vld [vmem:[%s5554_s6] ss:$0 sm:$0xff] }
 0x138   : > { %1556 = vst.msk [vmem:[#allocation3 + $0x40] sm:$0xff] %vm1547_vm11, %v1516_v60 }
 0x13a   : > { %v1518_v61 = vpop.permute.xlu1 %1517 }
 0x13b   : > { %1557 = vst.msk [vmem:[#allocation3 + $0x48] sm:$0xff] %vm1547_vm11, %v1518_v61  ;;  %v616_v62 = vpop.permute.xlu0 %615 }
 0x13c   : > { %654 = vst.msk [vmem:[#allocation3 + $0x50] sm:$0xff] %vm643_vm4, %v616_v62 }
 0x13e   : > { %v618_v36 = vpop.permute.xlu1 %617 }
 0x13f   : > { %655 = vst.msk [vmem:[#allocation3 + $0x58] sm:$0xff] %vm643_vm4, %v618_v36  ;;  %v745_v63 = vpop.permute.xlu0 %744  ;;  %v1572_v3 = vld [vmem:[#allocation3 + $0x40] sm:$0xff] }
 0x140   : > { %783 = vst.msk [vmem:[#allocation3 + $0x50] sm:$0xff] %vm772_vm5, %v745_v63  ;;  %3951 = vmatprep.mubr.msk.bf16.mxu0 %vm1600_vm12, %v1572_v3 }
 0x142   : > { %v747_v4 = vpop.permute.xlu1 %746  ;;  %v1573_v5 = vld [vmem:[#allocation3 + $0x48] sm:$0xff] }
 0x143   : > { %784 = vst.msk [vmem:[#allocation3 + $0x58] sm:$0xff] %vm772_vm5, %v747_v4  ;;  %3952 = vmatmul.mubr.msk.bf16.gmra.mrb[16].mxu0 %vm1600_vm12, %v1573_v5  ;;  %v874_v7 = vpop.permute.xlu0 %873 }
 0x144   : > { %912 = vst.msk [vmem:[#allocation3 + $0x50] sm:$0xff] %vm901_vm6, %v874_v7 }
 0x146   : > { %v876_v8 = vpop.permute.xlu1 %875 }
 0x147   : > { %913 = vst.msk [vmem:[#allocation3 + $0x58] sm:$0xff] %vm901_vm6, %v876_v8  ;;  %v1003_v9 = vpop.permute.xlu0 %1002 }
 0x148   : > { %1041 = vst.msk [vmem:[#allocation3 + $0x50] sm:$0xff] %vm1030_vm7, %v1003_v9  ;;  %v4074_v9 = vld [vmem:[%s5552_s4 + $0x40] sm:$0xff]  }
 0x149   : > { %3799 = vmatprep.subr.bf16.mxu0 %v4074_v9  ;;  %4003 = vmatprep.subr.bf16.mxu1 %v4074_v9 }
 0x14a   : > { %v1005_v57 = vpop.permute.xlu1 %1004 }
 0x14b   : > { %1042 = vst.msk [vmem:[#allocation3 + $0x58] sm:$0xff] %vm1030_vm7, %v1005_v57  ;;  %v1132_v51 = vpop.permute.xlu0 %1131 }
 0x14c   : > { %1170 = vst.msk [vmem:[#allocation3 + $0x50] sm:$0xff] %vm1159_vm8, %v1132_v51 }
 0x14e   : > { %v1134_v10 = vpop.permute.xlu1 %1133 }
 0x14f   : > { %1171 = vst.msk [vmem:[#allocation3 + $0x58] sm:$0xff] %vm1159_vm8, %v1134_v10  ;;  %v1262_v11 = vpop.permute.xlu0 %1261  ;;  %v4075_v10 = vld [vmem:[%s5552_s4] sm:$0xff]  }
 0x150   : > { %1300 = vst.msk [vmem:[#allocation3 + $0x50] sm:$0xff] %vm1289_vm9, %v1262_v11  ;;  %3800 = vmatpush3.bf16.msra.mxu0 %v4075_v10  ;;  %4011 = vmatpush3.bf16.msra.mxu1 %v4075_v10 }
 0x152   : > { %v1264_v12 = vpop.permute.xlu1 %1263 }
 0x153   : > { %1301 = vst.msk [vmem:[#allocation3 + $0x58] sm:$0xff] %vm1289_vm9, %v1264_v12  ;;  %v1391_v14 = vpop.permute.xlu0 %1390 }
 0x154   : > { %1429 = vst.msk [vmem:[#allocation3 + $0x50] sm:$0xff] %vm1418_vm10, %v1391_v14 }
 0x156   : > { %v1393_v39 = vpop.permute.xlu1 %1392 }
 0x157   : > { %1430 = vst.msk [vmem:[#allocation3 + $0x58] sm:$0xff] %vm1418_vm10, %v1393_v39  ;;  %v1520_v15 = vpop.permute.xlu0 %1519 }
 0x158   : > { %1558 = vst.msk [vmem:[#allocation3 + $0x50] sm:$0xff] %vm1547_vm11, %v1520_v15 }
 0x15a   : > { %v1522_v16 = vpop.permute.xlu1 %1521 }
 0x15b   : > { %1559 = vst.msk [vmem:[#allocation3 + $0x58] sm:$0xff] %vm1547_vm11, %v1522_v16  ;;  %v620_v17 = vpop.permute.xlu0 %619  ;;  %v4076_v16 = vld [vmem:[%s5552_s4 + $0x48] sm:$0xff]  }
 0x15c   : > { %656 = vst.msk [vmem:[#allocation3 + $0x60] sm:$0xff] %vm643_vm4, %v620_v17  ;;  %v4077_v17 = vld [vmem:[%s5552_s4 + $0x8] sm:$0xff]   ;;  %3801 = vmatprep.subr.bf16.mxu0 %v4076_v16  ;;  %4004 = vmatprep.subr.bf16.mxu1 %v4076_v16 }
 0x15d   : > { %3802 = vmatpush3.bf16.msra.mxu0 %v4077_v17  ;;  %4012 = vmatpush3.bf16.msra.mxu1 %v4077_v17 }
 0x15e   : > { %v622_v18 = vpop.permute.xlu1 %621 }
 0x15f   : > { %657 = vst.msk [vmem:[#allocation3 + $0x68] sm:$0xff] %vm643_vm4, %v622_v18  ;;  %v749_v1 = vpop.permute.xlu0 %748  ;;  %v1574_v20 = vld [vmem:[#allocation3 + $0x50] sm:$0xff]  ;;  %v4078_v18 = vld [vmem:[%s5552_s4 + $0x50] sm:$0xff]  }
 0x160   : > { %785 = vst.msk [vmem:[#allocation3 + $0x60] sm:$0xff] %vm772_vm5, %v749_v1  ;;  %3955 = vmatprep.mubr.msk.bf16.mxu0 %vm1600_vm12, %v1574_v20  ;;  %v4079_v1 = vld [vmem:[%s5552_s4 + $0x10] sm:$0xff]   ;;  %3803 = vmatprep.subr.bf16.mxu0 %v4078_v18 }
 0x161   : > { %4005 = vmatprep.subr.bf16.mxu1 %v4078_v18  ;;  %3804 = vmatpush3.bf16.msra.mxu0 %v4079_v1 }
 0x162   : > { %v751_v21 = vpop.permute.xlu1 %750  ;;  %v1575_v2 = vld [vmem:[#allocation3 + $0x58] sm:$0xff]  ;;  %4013 = vmatpush3.bf16.msra.mxu1 %v4079_v1 }
 0x163   : > { %786 = vst.msk [vmem:[#allocation3 + $0x68] sm:$0xff] %vm772_vm5, %v751_v21  ;;  %3956 = vmatmul.mubr.msk.bf16.gmra.mrb[20].mxu0 %vm1600_vm12, %v1575_v2  ;;  %v878_v22 = vpop.permute.xlu0 %877 }
 0x164   : > { %914 = vst.msk [vmem:[#allocation3 + $0x60] sm:$0xff] %vm901_vm6, %v878_v22 }
 0x166   : > { %v880_v23 = vpop.permute.xlu1 %879 }
 0x167   : > { %915 = vst.msk [vmem:[#allocation3 + $0x68] sm:$0xff] %vm901_vm6, %v880_v23  ;;  %v1007_v24 = vpop.permute.xlu0 %1006 }
 0x168   : > { %1043 = vst.msk [vmem:[#allocation3 + $0x60] sm:$0xff] %vm1030_vm7, %v1007_v24 }
 0x16a   : > { %v1009_v25 = vpop.permute.xlu1 %1008 }
 0x16b   : > { %1044 = vst.msk [vmem:[#allocation3 + $0x68] sm:$0xff] %vm1030_vm7, %v1009_v25  ;;  %v1136_v26 = vpop.permute.xlu0 %1135 }
 0x16c   : > { %1172 = vst.msk [vmem:[#allocation3 + $0x60] sm:$0xff] %vm1159_vm8, %v1136_v26 }
 0x16e   : > { %v1138_v6 = vpop.permute.xlu1 %1137 }
 0x16f   : > { %1173 = vst.msk [vmem:[#allocation3 + $0x68] sm:$0xff] %vm1159_vm8, %v1138_v6  ;;  %v1266_v13 = vpop.permute.xlu0 %1265 }
 0x170   : > { %1302 = vst.msk [vmem:[#allocation3 + $0x60] sm:$0xff] %vm1289_vm9, %v1266_v13 }
 0x172   : > { %v1268_v28 = vpop.permute.xlu1 %1267 }
 0x173   : > { %1303 = vst.msk [vmem:[#allocation3 + $0x68] sm:$0xff] %vm1289_vm9, %v1268_v28  ;;  %v1395_v43 = vpop.permute.xlu0 %1394 }
 0x174   : > { %1431 = vst.msk [vmem:[#allocation3 + $0x60] sm:$0xff] %vm1418_vm10, %v1395_v43 }
 0x176   : > { %v1397_v27 = vpop.permute.xlu1 %1396 }
 0x177   : > { %1432 = vst.msk [vmem:[#allocation3 + $0x68] sm:$0xff] %vm1418_vm10, %v1397_v27  ;;  %v1524_v29 = vpop.permute.xlu0 %1523 }
 0x178   : > { %1560 = vst.msk [vmem:[#allocation3 + $0x60] sm:$0xff] %vm1547_vm11, %v1524_v29  ;;  %v4080_v29 = vld [vmem:[%s5552_s4 + $0x58] sm:$0xff]  }
 0x179   : > { %3805 = vmatprep.subr.bf16.mxu0 %v4080_v29  ;;  %4006 = vmatprep.subr.bf16.mxu1 %v4080_v29 }
 0x17a   : > { %v1526_v31 = vpop.permute.xlu1 %1525 }
 0x17b   : > { %1561 = vst.msk [vmem:[#allocation3 + $0x68] sm:$0xff] %vm1547_vm11, %v1526_v31  ;;  %v624_v32 = vpop.permute.xlu0 %623 }
 0x17c   : > { %658 = vst.msk [vmem:[#allocation3 + $0x70] sm:$0xff] %vm643_vm4, %v624_v32 }
 0x17e   : > { %v626_v33 = vpop.permute.xlu1 %625 }
 0x17f   : > { %659 = vst.msk [vmem:[#allocation3 + $0x78] sm:$0xff] %vm643_vm4, %v626_v33  ;;  %v753_v35 = vpop.permute.xlu0 %752  ;;  %v1576_v37 = vld [vmem:[#allocation3 + $0x60] sm:$0xff]  ;;  %v4081_v33 = vld [vmem:[%s5552_s4 + $0x18] sm:$0xff]  }
 0x180   : > { %787 = vst.msk [vmem:[#allocation3 + $0x70] sm:$0xff] %vm772_vm5, %v753_v35  ;;  %3959 = vmatprep.mubr.msk.bf16.mxu0 %vm1600_vm12, %v1576_v37  ;;  %3806 = vmatpush3.bf16.msra.mxu0 %v4081_v33  ;;  %v4082_v35 = vld [vmem:[%s5552_s4 + $0x60] sm:$0xff]  }
 0x181   : > { %4014 = vmatpush3.bf16.msra.mxu1 %v4081_v33  ;;  %3807 = vmatprep.subr.bf16.mxu0 %v4082_v35 }
 0x182   : > { %v755_v38 = vpop.permute.xlu1 %754  ;;  %v1577_v40 = vld [vmem:[#allocation3 + $0x68] sm:$0xff]  ;;  %4007 = vmatprep.subr.bf16.mxu1 %v4082_v35 }
 0x183   : > { %788 = vst.msk [vmem:[#allocation3 + $0x78] sm:$0xff] %vm772_vm5, %v755_v38  ;;  %3960 = vmatmul.mubr.msk.bf16.gmra.mrb[24].mxu0 %vm1600_vm12, %v1577_v40  ;;  %v882_v19 = vpop.permute.xlu0 %881  ;;  %v4083_v40 = vld [vmem:[%s5552_s4 + $0x20] sm:$0xff]  }
 0x184   : > { %916 = vst.msk [vmem:[#allocation3 + $0x70] sm:$0xff] %vm901_vm6, %v882_v19  ;;  %3808 = vmatpush3.bf16.msra.mxu0 %v4083_v40 }
 0x185   : > { %4015 = vmatpush3.bf16.msra.mxu1 %v4083_v40 }
 0x186   : > { %v884_v41 = vpop.permute.xlu1 %883 }
 0x187   : > { %917 = vst.msk [vmem:[#allocation3 + $0x78] sm:$0xff] %vm901_vm6, %v884_v41  ;;  %v1011_v42 = vpop.permute.xlu0 %1010  ;;  %v4084_v41 = vld [vmem:[%s5552_s4 + $0x68] sm:$0xff]  }
 0x188   : > { %1045 = vst.msk [vmem:[#allocation3 + $0x70] sm:$0xff] %vm1030_vm7, %v1011_v42  ;;  %v4085_v42 = vld [vmem:[%s5552_s4 + $0x28] sm:$0xff]   ;;  %3809 = vmatprep.subr.bf16.mxu0 %v4084_v41  ;;  %4008 = vmatprep.subr.bf16.mxu1 %v4084_v41 }
 0x189   : > { %3810 = vmatpush3.bf16.msra.mxu0 %v4085_v42  ;;  %4016 = vmatpush3.bf16.msra.mxu1 %v4085_v42 }
 0x18a   : > { %v1013_v0 = vpop.permute.xlu1 %1012 }
 0x18b   : > { %1046 = vst.msk [vmem:[#allocation3 + $0x78] sm:$0xff] %vm1030_vm7, %v1013_v0  ;;  %v1140_v30 = vpop.permute.xlu0 %1139 }
 0x18c   : > { %1174 = vst.msk [vmem:[#allocation3 + $0x70] sm:$0xff] %vm1159_vm8, %v1140_v30  ;;  %v4086_v30 = vld [vmem:[%s5552_s4 + $0x70] sm:$0xff]  }
 0x18d   : > { %3811 = vmatprep.subr.bf16.mxu0 %v4086_v30  ;;  %4009 = vmatprep.subr.bf16.mxu1 %v4086_v30 }
 0x18e   : > { %v1142_v44 = vpop.permute.xlu1 %1141 }
 0x18f   : > { %1175 = vst.msk [vmem:[#allocation3 + $0x78] sm:$0xff] %vm1159_vm8, %v1142_v44  ;;  %v1270_v45 = vpop.permute.xlu0 %1269 }
 0x190   : > { %1304 = vst.msk [vmem:[#allocation3 + $0x70] sm:$0xff] %vm1289_vm9, %v1270_v45 }
 0x192   : > { %v1272_v46 = vpop.permute.xlu1 %1271 }
 0x193   : > { %1305 = vst.msk [vmem:[#allocation3 + $0x78] sm:$0xff] %vm1289_vm9, %v1272_v46  ;;  %v1399_v47 = vpop.permute.xlu0 %1398  ;;  %v4087_v46 = vld [vmem:[%s5552_s4 + $0x30] sm:$0xff]  }
 0x194   : > { %1433 = vst.msk [vmem:[#allocation3 + $0x70] sm:$0xff] %vm1418_vm10, %v1399_v47  ;;  %3812 = vmatpush3.bf16.msra.mxu0 %v4087_v46  ;;  %4017 = vmatpush3.bf16.msra.mxu1 %v4087_v46 }
 0x196   : > { %v1401_v52 = vpop.permute.xlu1 %1400 }
 0x197   : > { %1434 = vst.msk [vmem:[#allocation3 + $0x78] sm:$0xff] %vm1418_vm10, %v1401_v52  ;;  %v1528_v54 = vpop.permute.xlu0 %1527  ;;  %v3937_v55 = vpop.f32.mrb[0].mxu0 }
 0x198   : > { %1562 = vst.msk [vmem:[#allocation3 + $0x70] sm:$0xff] %vm1547_vm11, %v1528_v54  ;;  %v1816_v58 = vmax.f32 %v3937_v55, 0.0  ;;  %v1687_v48 = vpop.f32.mrb[1].mxu0 }
 0x199   : > { %v1814_v60 = vmax.f32 %v1687_v48, 0.0  ;;  %v3938_v61 = vpop.f32.mrb[2].mxu0 }
 0x19a   : > { %v1530_v59 = vpop.permute.xlu1 %1529  ;;  %v1855_v62 = vmul.f32 %v4956_v56, %v1816_v58  ;;  %v1817_v36 = vmax.f32 %v3938_v61, 0.0  ;;  %v1690_v63 = vpop.f32.mrb[3].mxu0  ;;  %v4088_v58 = vld [vmem:[%s5552_s4 + $0x78] sm:$0xff]  }
 0x19b   : > { %1563 = vst.msk [vmem:[#allocation3 + $0x78] sm:$0xff] %vm1547_vm11, %v1530_v59  ;;  %v1853_v3 = vmul.f32 %v4956_v56, %v1814_v60  ;;  %v1815_v4 = vmax.f32 %v1690_v63, 0.0  ;;  %v4089_v60 = vld [vmem:[%s5552_s4 + $0x38] sm:$0xff]   ;;  %3813 = vmatprep.subr.bf16.mxu0 %v4088_v58  ;;  %4010 = vmatprep.subr.bf16.mxu1 %v4088_v58 }
 0x19c   : > { %v1894_v5 = vadd.f32 %v4962_v34, %v1855_v62  ;;  %v1856_v7 = vmul.f32 %v4956_v56, %v1817_v36  ;;  %3814 = vmatpush3.bf16.msra.mxu0 %v4089_v60  ;;  %4018 = vmatpush3.bf16.msra.mxu1 %v4089_v60 }
 0x19d   : > { %v1892_v57 = vadd.f32 %v4962_v34, %v1853_v3  ;;  %v1854_v51 = vmul.f32 %v4956_v56, %v1815_v4  ;;  %v5058_v3 = vld [vmem:[%s5552_s4 + $0x80] sm:$0xff]  }
 0x19e   : > { %v2132_v8 = vpop.permute.xlu1 %2131  ;;  %1973 = vst.msk [vmem:[#allocation4 + $0x31] sm:$0xff] %vm1924_vm13, %v1894_v5  ;;  %v1895_v11 = vadd.f32 %v4962_v34, %v1856_v7  ;;  %3967 = vmatprep.subr.bf16.mxu0 %v5058_v3 }
 0x19f   : > { %2180 = vst.msk [vmem:[#allocation5] sm:$0xff] %vm2179_vm0, %v2132_v8  ;;  %v1893_v12 = vadd.f32 %v4962_v34, %v1854_v51  ;;  %v1578_v14 = vld [vmem:[#allocation3 + $0x70] sm:$0xff] }
 0x1a0   : > { %1971 = vst.msk [vmem:[#allocation4 + $0x19] sm:$0xff] %vm1924_vm13, %v1892_v57  ;;  %1974 = vst.msk [vmem:[#allocation4 + $0x39] sm:$0xff] %vm1924_vm13, %v1895_v11  ;;  %3963 = vmatprep.mubr.msk.bf16.mxu0 %vm1600_vm12, %v1578_v14 }
 0x1a1   : > { %1972 = vst.msk [vmem:[#allocation4 + $0x21] sm:$0xff] %vm1924_vm13, %v1893_v12 }
 0x1a2   : > { %v1579_v39 = vld [vmem:[#allocation3 + $0x78] sm:$0xff]  ;;  %v2261_v15 = vpop.permute.xlu1 %2260 }
 0x1a3   : > { %3964 = vmatmul.mubr.msk.bf16.gmra.mrb[28].mxu0 %vm1600_vm12, %v1579_v39  ;;  %2309 = vst.msk [vmem:[#allocation5] sm:$0xff] %vm2308_vm1, %v2261_v15 }
 0x1a5   : > { %v2327_v20 = vld [vmem:[#allocation4 + $0x30] sm:$0xff] }
 0x1a6   : > { %v2071_v21 = vld [vmem:[#allocation4 + $0x31] sm:$0xff] }
 0x1a7   : > { %v2520_v2 = vld [vmem:[#allocation4 + $0x32] sm:$0xff]  ;;  %v2521_v22 = vld [vmem:[#allocation4 + $0x3a] sm:$0xff] }
 0x1a8   : > { %v2328_v23 = vld [vmem:[#allocation4 + $0x38] sm:$0xff]  ;;  %v2551_v24 = vpack.c.bf16 %v2521_v22, %v2520_v2  ;;  %v2070_v43 = vld [vmem:[#allocation4 + $0x21] sm:$0xff] }
 0x1a9   : > { %v2358_v25 = vpack.c.bf16 %v2328_v23, %v2327_v20  ;;  %v2072_v26 = vld [vmem:[#allocation4 + $0x39] sm:$0xff]  ;;  %v2519_v38 = vld [vmem:[#allocation4 + $0x22] sm:$0xff] }
 0x1aa   : > { %v2069_v6 = vld [vmem:[#allocation4 + $0x19] sm:$0xff]  ;;  %v2101_v28 = vpack.c.bf16 %v2072_v26, %v2071_v21  ;;  %2584 = vrot.lane.b32.xlu0 %v2551_v24, %s4166_s14  ;;  %2951 = vst.msk [vmem:[#allocation5 + $0x10] sm:$0xff] %vm1924_vm13, %v2551_v24 }
 0x1ab   : > { %v2325_v13 = vld [vmem:[#allocation4 + $0x18] sm:$0xff]  ;;  %v2326_v27 = vld [vmem:[#allocation4 + $0x20] sm:$0xff]  ;;  %2391 = vrot.lane.b32.xlu1 %v2358_v25, %s4168_s17  ;;  %v2100_v31 = vpack.c.bf16 %v2070_v43, %v2069_v6  ;;  %2053 = vst.msk [vmem:[#allocation5 + $0x30] sm:$0xff] %vm1924_vm13, %v2358_v25 }
 0x1ac   : > { %v5004_v32 = vpack.c.bf16 %v2326_v27, %v2325_v13  ;;  %2503 = vst.msk [vmem:[#allocation5 + $0x20] sm:$0xff] %vm1924_vm13, %v2101_v28  ;;  %v2518_v37 = vld [vmem:[#allocation4 + $0x1a] sm:$0xff] }
 0x1ad   : > { %2502 = vst.msk [vmem:[#allocation5 + $0x8] sm:$0xff] %vm1924_vm13, %v2100_v31  ;;  %v2550_v19 = vpack.c.bf16 %v2519_v38, %v2518_v37 }
 0x1ae   : > { %2052 = vst.msk [vmem:[#allocation5 + $0x18] sm:$0xff] %vm1924_vm13, %v5004_v32  ;;  %2711 = vrot.lane.b32.xlu0 %v2358_v25, %s4167_s21 }
 0x1af   : > { %2135 = vrot.lane.b32.xlu1 %v2101_v28, %s4166_s14 }
 0x1b2   : > { %2582 = vrot.lane.b32.xlu0 %v2550_v19, %s4166_s14 }
 0x1b3   : > { %2264 = vrot.lane.b32.xlu1 %v2551_v24, %s4167_s21 }
 0x1b6   : > { %v3941_v0 = vpop.f32.mrb[4].mxu0 }
 0x1b7   : > { %v1820_v44 = vmax.f32 %v3941_v0, 0.0  ;;  %v1703_v45 = vpop.f32.mrb[5].mxu0  ;;  %2839 = vrot.lane.b32.xlu1 %v2101_v28, %s4168_s17 }
 0x1b8   : > { %v1818_v47 = vmax.f32 %v1703_v45, 0.0  ;;  %v3942_v49 = vpop.f32.mrb[6].mxu0 }
 0x1b9   : > { %v1859_v50 = vmul.f32 %v4956_v56, %v1820_v44  ;;  %v1821_v52 = vmax.f32 %v3942_v49, 0.0  ;;  %v1706_v53 = vpop.f32.mrb[7].mxu0 }
 0x1ba   : > { %v1857_v54 = vmul.f32 %v4956_v56, %v1818_v47  ;;  %v1819_v55 = vmax.f32 %v1706_v53, 0.0 }
 0x1bb   : > { %v1898_v59 = vadd.f32 %v4962_v34, %v1859_v50  ;;  %v1860_v48 = vmul.f32 %v4956_v56, %v1821_v52  ;;  %2133 = vrot.lane.b32.xlu1 %v2100_v31, %s4166_s14 }
 0x1bc   : > { %v1896_v61 = vadd.f32 %v4962_v34, %v1857_v54  ;;  %v1858_v62 = vmul.f32 %v4956_v56, %v1819_v55 }
 0x1bd   : > { %1977 = vst.msk [vmem:[#allocation4 + $0x61] sm:$0xff] %vm1924_vm13, %v1898_v59  ;;  %v1899_v36 = vadd.f32 %v4962_v34, %v1860_v48 }
 0x1be   : > { %1975 = vst.msk [vmem:[#allocation4 + $0x49] sm:$0xff] %vm1924_vm13, %v1896_v61  ;;  %v1897_v63 = vadd.f32 %v4962_v34, %v1858_v62 }
 0x1bf   : > { %1978 = vst.msk [vmem:[#allocation4 + $0x69] sm:$0xff] %vm1924_vm13, %v1899_v36  ;;  %2262 = vrot.lane.b32.xlu1 %v2550_v19, %s4167_s21 }
 0x1c0   : > { %1976 = vst.msk [vmem:[#allocation4 + $0x51] sm:$0xff] %vm1924_vm13, %v1897_v63 }
 0x1c3   : > { %2389 = vrot.lane.b32.xlu1 %v5004_v32, %s4168_s17 }
 0x1c4   : > { %v2651_v4 = vld [vmem:[#allocation4 + $0x60] sm:$0xff] }
 0x1c5   : > { %v2779_v5 = vld [vmem:[#allocation4 + $0x61] sm:$0xff]  ;;  %v2777_v17 = vld [vmem:[#allocation4 + $0x49] sm:$0xff] }
 0x1c6   : > { %v2652_v7 = vld [vmem:[#allocation4 + $0x68] sm:$0xff] }
 0x1c7   : > { %v2780_v8 = vld [vmem:[#allocation4 + $0x69] sm:$0xff]  ;;  %v2906_v10 = vld [vmem:[#allocation4 + $0x52] sm:$0xff]  ;;  %v2681_v11 = vpack.c.bf16 %v2652_v7, %v2651_v4 }
 0x1c8   : > { %v2524_v9 = vld [vmem:[#allocation4 + $0x62] sm:$0xff]  ;;  %v2905_v51 = vld [vmem:[#allocation4 + $0x4a] sm:$0xff]  ;;  %v2809_v12 = vpack.c.bf16 %v2780_v8, %v2779_v5 }
 0x1c9   : > { %v2649_v57 = vld [vmem:[#allocation4 + $0x48] sm:$0xff]  ;;  %v2936_v39 = vpack.c.bf16 %v2906_v10, %v2905_v51  ;;  %v2650_v16 = vld [vmem:[#allocation4 + $0x50] sm:$0xff]  ;;  %2715 = vrot.lane.b32.xlu0 %v2681_v11, %s4167_s21  ;;  %2395 = vrot.lane.b32.xlu1 %v2681_v11, %s4168_s17  ;;  %2055 = vst.msk [vmem:[#allocation5 + $0x60] sm:$0xff] %vm1924_vm13, %v2681_v11 }
 0x1ca   : > { %v2525_v14 = vld [vmem:[#allocation4 + $0x6a] sm:$0xff]  ;;  %v2680_v1 = vpack.c.bf16 %v2650_v16, %v2649_v57  ;;  %2505 = vst.msk [vmem:[#allocation5 + $0x50] sm:$0xff] %vm1924_vm13, %v2809_v12 }
 0x1cb   : > { %v2553_v15 = vpack.c.bf16 %v2525_v14, %v2524_v9  ;;  %v2778_v18 = vld [vmem:[#allocation4 + $0x51] sm:$0xff]  ;;  %2952 = vst.msk [vmem:[#allocation5 + $0x28] sm:$0xff] %vm1924_vm13, %v2936_v39 }
 0x1cc   : > { %v2808_v20 = vpack.c.bf16 %v2778_v18, %v2777_v17  ;;  %2054 = vst.msk [vmem:[#allocation5 + $0x48] sm:$0xff] %vm1924_vm13, %v2680_v1 }
 0x1cd   : > { %2953 = vst.msk [vmem:[#allocation5 + $0x40] sm:$0xff] %vm1924_vm13, %v2553_v15  ;;  %2843 = vrot.lane.b32.xlu0 %v2809_v12, %s4168_s17  ;;  %2139 = vrot.lane.b32.xlu1 %v2809_v12, %s4166_s14 }
 0x1ce   : > { %2504 = vst.msk [vmem:[#allocation5 + $0x38] sm:$0xff] %vm1924_vm13, %v2808_v20 }
 0x1d1   : > { %2588 = vrot.lane.b32.xlu0 %v2553_v15, %s4166_s14  ;;  %2268 = vrot.lane.b32.xlu1 %v2553_v15, %s4167_s21 }
 0x1d5   : > { %2713 = vrot.lane.b32.xlu0 %v2680_v1, %s4167_s21  ;;  %2393 = vrot.lane.b32.xlu1 %v2680_v1, %s4168_s17 }
 0x1d6   : > { %v3945_v21 = vpop.f32.mrb[8].mxu0 }
 0x1d7   : > { %v1824_v2 = vmax.f32 %v3945_v21, 0.0  ;;  %v1719_v22 = vpop.f32.mrb[9].mxu0 }
 0x1d8   : > { %v1822_v23 = vmax.f32 %v1719_v22, 0.0  ;;  %v3946_v24 = vpop.f32.mrb[10].mxu0 }
 0x1d9   : > { %v1863_v25 = vmul.f32 %v4956_v56, %v1824_v2  ;;  %v1825_v26 = vmax.f32 %v3946_v24, 0.0  ;;  %2841 = vrot.lane.b32.xlu0 %v2808_v20, %s4168_s17  ;;  %2137 = vrot.lane.b32.xlu1 %v2808_v20, %s4166_s14  ;;  %v1722_v6 = vpop.f32.mrb[11].mxu0 }
 0x1da   : > { %v1861_v13 = vmul.f32 %v4956_v56, %v1822_v23  ;;  %v1823_v28 = vmax.f32 %v1722_v6, 0.0 }
 0x1db   : > { %v1902_v43 = vadd.f32 %v4962_v34, %v1863_v25  ;;  %v1864_v27 = vmul.f32 %v4956_v56, %v1825_v26 }
 0x1dc   : > { %v1900_v29 = vadd.f32 %v4962_v34, %v1861_v13  ;;  %v1862_v31 = vmul.f32 %v4956_v56, %v1823_v28 }
 0x1dd   : > { %1981 = vst.msk [vmem:[#allocation4 + $0x91] sm:$0xff] %vm1924_vm13, %v1902_v43  ;;  %v1903_v32 = vadd.f32 %v4962_v34, %v1864_v27  ;;  %2586 = vrot.lane.b32.xlu0 %v2936_v39, %s4166_s14  ;;  %2266 = vrot.lane.b32.xlu1 %v2936_v39, %s4167_s21 }
 0x1de   : > { %1979 = vst.msk [vmem:[#allocation4 + $0x79] sm:$0xff] %vm1924_vm13, %v1900_v29  ;;  %v1901_v33 = vadd.f32 %v4962_v34, %v1862_v31 }
 0x1df   : > { %1982 = vst.msk [vmem:[#allocation4 + $0x99] sm:$0xff] %vm1924_vm13, %v1903_v32 }
 0x1e0   : > { %1980 = vst.msk [vmem:[#allocation4 + $0x81] sm:$0xff] %vm1924_vm13, %v1901_v33 }
 0x1e4   : > { %v2655_v35 = vld [vmem:[#allocation4 + $0x90] sm:$0xff] }
 0x1e5   : > { %v2783_v38 = vld [vmem:[#allocation4 + $0x91] sm:$0xff]  ;;  %v2462_v52 = vld [vmem:[#allocation4 + $0x79] sm:$0xff] }
 0x1e6   : > { %v2656_v37 = vld [vmem:[#allocation4 + $0x98] sm:$0xff] }
 0x1e7   : > { %v2528_v40 = vld [vmem:[#allocation4 + $0x92] sm:$0xff]  ;;  %v2683_v19 = vpack.c.bf16 %v2656_v37, %v2655_v35  ;;  %v2529_v42 = vld [vmem:[#allocation4 + $0x9a] sm:$0xff]  ;;  %v2527_v45 = vld [vmem:[#allocation4 + $0x82] sm:$0xff] }
 0x1e8   : > { %v2784_v41 = vld [vmem:[#allocation4 + $0x99] sm:$0xff]  ;;  %v2555_v30 = vpack.c.bf16 %v2529_v42, %v2528_v40  ;;  %v2463_v53 = vld [vmem:[#allocation4 + $0x81] sm:$0xff] }
 0x1e9   : > { %v2013_v0 = vld [vmem:[#allocation4 + $0x78] sm:$0xff]  ;;  %2719 = vrot.lane.b32.xlu0 %v2683_v19, %s4167_s21  ;;  %2399 = vrot.lane.b32.xlu1 %v2683_v19, %s4168_s17  ;;  %2057 = vst.msk [vmem:[#allocation5 + $0x90] sm:$0xff] %vm1924_vm13, %v2683_v19  ;;  %v2014_v50 = vld [vmem:[#allocation4 + $0x80] sm:$0xff]  ;;  %v2490_v55 = vpack.c.bf16 %v2463_v53, %v2462_v52  ;;  %v2811_v58 = vpack.c.bf16 %v2784_v41, %v2783_v38 }
 0x1ea   : > { %v2526_v44 = vld [vmem:[#allocation4 + $0x7a] sm:$0xff]  ;;  %2955 = vst.msk [vmem:[#allocation5 + $0x70] sm:$0xff] %vm1924_vm13, %v2555_v30  ;;  %v2040_v54 = vpack.c.bf16 %v2014_v50, %v2013_v0 }
 0x1eb   : > { %v2465_v46 = vld [vmem:[#allocation4 + $0x99] sm:$0xff]  ;;  %v2554_v47 = vpack.c.bf16 %v2527_v45, %v2526_v44  ;;  %2506 = vst.msk [vmem:[#allocation5 + $0x68] sm:$0xff] %vm1924_vm13, %v2490_v55  ;;  %v2782_v61 = vld [vmem:[#allocation4 + $0x81] sm:$0xff] }
 0x1ec   : > { %v2491_v49 = vpack.c.bf16 %v2465_v46, %v2783_v38  ;;  %2056 = vst.msk [vmem:[#allocation5 + $0x78] sm:$0xff] %vm1924_vm13, %v2040_v54  ;;  %v2654_v59 = vld [vmem:[#allocation4 + $0x80] sm:$0xff]  ;;  %v2653_v48 = vld [vmem:[#allocation4 + $0x78] sm:$0xff] }
 0x1ed   : > { %2954 = vst.msk [vmem:[#allocation5 + $0x58] sm:$0xff] %vm1924_vm13, %v2554_v47  ;;  %2847 = vrot.lane.b32.xlu0 %v2811_v58, %s4168_s17  ;;  %2143 = vrot.lane.b32.xlu1 %v2811_v58, %s4166_s14  ;;  %v2682_v60 = vpack.c.bf16 %v2654_v59, %v2653_v48  ;;  %v2781_v36 = vld [vmem:[#allocation4 + $0x79] sm:$0xff] }
 0x1ee   : > { %2507 = vst.msk [vmem:[#allocation5 + $0x80] sm:$0xff] %vm1924_vm13, %v2491_v49  ;;  %v2810_v5 = vpack.c.bf16 %v2782_v61, %v2781_v36 }
 0x1f1   : > { %2592 = vrot.lane.b32.xlu0 %v2555_v30, %s4166_s14  ;;  %2272 = vrot.lane.b32.xlu1 %v2555_v30, %s4167_s21 }
 0x1f5   : > { %2717 = vrot.lane.b32.xlu0 %v2682_v60, %s4167_s21  ;;  %2397 = vrot.lane.b32.xlu1 %v2682_v60, %s4168_s17 }
 0x1f6   : > { %v3949_v62 = vpop.f32.mrb[12].mxu0 }
 0x1f7   : > { %v1828_v63 = vmax.f32 %v3949_v62, 0.0  ;;  %v1735_v4 = vpop.f32.mrb[13].mxu0 }
 0x1f8   : > { %v1826_v7 = vmax.f32 %v1735_v4, 0.0  ;;  %v3950_v8 = vpop.f32.mrb[14].mxu0 }
 0x1f9   : > { %v1867_v9 = vmul.f32 %v4956_v56, %v1828_v63  ;;  %v1829_v57 = vmax.f32 %v3950_v8, 0.0  ;;  %2845 = vrot.lane.b32.xlu0 %v2810_v5, %s4168_s17  ;;  %2141 = vrot.lane.b32.xlu1 %v2810_v5, %s4166_s14  ;;  %v1738_v51 = vpop.f32.mrb[15].mxu0 }
 0x1fa   : > { %v1865_v10 = vmul.f32 %v4956_v56, %v1826_v7  ;;  %v1827_v11 = vmax.f32 %v1738_v51, 0.0 }
 0x1fb   : > { %v1906_v12 = vadd.f32 %v4962_v34, %v1867_v9  ;;  %v1868_v14 = vmul.f32 %v4956_v56, %v1829_v57 }
 0x1fc   : > { %v1904_v39 = vadd.f32 %v4962_v34, %v1865_v10  ;;  %v1866_v15 = vmul.f32 %v4956_v56, %v1827_v11 }
 0x1fd   : > { %1985 = vst.msk [vmem:[#allocation4 + $0xc1] sm:$0xff] %vm1924_vm13, %v1906_v12  ;;  %v1907_v16 = vadd.f32 %v4962_v34, %v1868_v14  ;;  %2590 = vrot.lane.b32.xlu0 %v2554_v47, %s4166_s14  ;;  %2270 = vrot.lane.b32.xlu1 %v2554_v47, %s4167_s21 }
 0x1fe   : > { %1983 = vst.msk [vmem:[#allocation4 + $0xa9] sm:$0xff] %vm1924_vm13, %v1904_v39  ;;  %v1905_v17 = vadd.f32 %v4962_v34, %v1866_v15 }
 0x1ff   : > { %1986 = vst.msk [vmem:[#allocation4 + $0xc9] sm:$0xff] %vm1924_vm13, %v1907_v16 }
 0x200   : > { %1984 = vst.msk [vmem:[#allocation4 + $0xb1] sm:$0xff] %vm1924_vm13, %v1905_v17 }
 0x204   : > { %v2659_v18 = vld [vmem:[#allocation4 + $0xc0] sm:$0xff] }
 0x205   : > { %v2019_v21 = vld [vmem:[#allocation4 + $0xc0] sm:$0xff]  ;;  %v2466_v29 = vld [vmem:[#allocation4 + $0xa9] sm:$0xff] }
 0x206   : > { %v2660_v1 = vld [vmem:[#allocation4 + $0xc8] sm:$0xff] }
 0x207   : > { %v2532_v20 = vld [vmem:[#allocation4 + $0xc2] sm:$0xff]  ;;  %v2685_v2 = vpack.c.bf16 %v2660_v1, %v2659_v18  ;;  %v2533_v23 = vld [vmem:[#allocation4 + $0xca] sm:$0xff]  ;;  %v2211_v6 = vld [vmem:[#allocation4 + $0xb2] sm:$0xff] }
 0x208   : > { %v2788_v22 = vld [vmem:[#allocation4 + $0xc9] sm:$0xff]  ;;  %v2468_v24 = vld [vmem:[#allocation4 + $0xc1] sm:$0xff]  ;;  %v2557_v25 = vpack.c.bf16 %v2533_v23, %v2532_v20  ;;  %v2467_v31 = vld [vmem:[#allocation4 + $0xb1] sm:$0xff] }
 0x209   : > { %v2210_v26 = vld [vmem:[#allocation4 + $0xaa] sm:$0xff]  ;;  %2723 = vrot.lane.b32.xlu0 %v2685_v2, %s4167_s21  ;;  %2403 = vrot.lane.b32.xlu1 %v2685_v2, %s4168_s17  ;;  %v2787_v32 = vld [vmem:[#allocation4 + $0xc1] sm:$0xff]  ;;  %v2492_v35 = vpack.c.bf16 %v2467_v31, %v2466_v29 }
 0x20a   : > { %v2020_v13 = vld [vmem:[#allocation4 + $0xc8] sm:$0xff]  ;;  %v2235_v28 = vpack.c.bf16 %v2211_v6, %v2210_v26  ;;  %2957 = vst.msk [vmem:[#allocation5 + $0xa0] sm:$0xff] %vm1924_vm13, %v2557_v25  ;;  %v2018_v38 = vld [vmem:[#allocation4 + $0xb0] sm:$0xff]  ;;  %v2813_v40 = vpack.c.bf16 %v2788_v22, %v2787_v32 }
 0x20b   : > { %v2043_v43 = vpack.c.bf16 %v2020_v13, %v2019_v21  ;;  %v2469_v27 = vld [vmem:[#allocation4 + $0xc9] sm:$0xff]  ;;  %2508 = vst.msk [vmem:[#allocation5 + $0x98] sm:$0xff] %vm1924_vm13, %v2492_v35  ;;  %v2786_v30 = vld [vmem:[#allocation4 + $0xb1] sm:$0xff] }
 0x20c   : > { %v2493_v33 = vpack.c.bf16 %v2469_v27, %v2468_v24  ;;  %v2017_v37 = vld [vmem:[#allocation4 + $0xa8] sm:$0xff]  ;;  %2956 = vst.msk [vmem:[#allocation5 + $0x88] sm:$0xff] %vm1924_vm13, %v2235_v28  ;;  %v2658_v41 = vld [vmem:[#allocation4 + $0xb0] sm:$0xff] }
 0x20d   : > { %2059 = vst.msk [vmem:[#allocation5 + $0xc0] sm:$0xff] %vm1924_vm13, %v2043_v43  ;;  %v2042_v19 = vpack.c.bf16 %v2018_v38, %v2017_v37  ;;  %2851 = vrot.lane.b32.xlu0 %v2813_v40, %s4168_s17  ;;  %2147 = vrot.lane.b32.xlu1 %v2813_v40, %s4166_s14  ;;  %v2657_v42 = vld [vmem:[#allocation4 + $0xa8] sm:$0xff] }
 0x20e   : > { %2509 = vst.msk [vmem:[#allocation5 + $0xb0] sm:$0xff] %vm1924_vm13, %v2493_v33  ;;  %v2684_v0 = vpack.c.bf16 %v2658_v41, %v2657_v42  ;;  %v2785_v45 = vld [vmem:[#allocation4 + $0xa9] sm:$0xff] }
 0x20f   : > { %2058 = vst.msk [vmem:[#allocation5 + $0xa8] sm:$0xff] %vm1924_vm13, %v2042_v19  ;;  %v2812_v49 = vpack.c.bf16 %v2786_v30, %v2785_v45 }
 0x211   : > { %2596 = vrot.lane.b32.xlu0 %v2557_v25, %s4166_s14  ;;  %2276 = vrot.lane.b32.xlu1 %v2557_v25, %s4167_s21 }
 0x215   : > { %2721 = vrot.lane.b32.xlu0 %v2684_v0, %s4167_s21  ;;  %2401 = vrot.lane.b32.xlu1 %v2684_v0, %s4168_s17 }
 0x216   : > { %v3953_v44 = vpop.f32.mrb[16].mxu0 }
 0x217   : > { %v1832_v46 = vmax.f32 %v3953_v44, 0.0  ;;  %v1751_v47 = vpop.f32.mrb[17].mxu0 }
 0x218   : > { %v1830_v50 = vmax.f32 %v1751_v47, 0.0  ;;  %v3954_v52 = vpop.f32.mrb[18].mxu0 }
 0x219   : > { %v1871_v53 = vmul.f32 %v4956_v56, %v1832_v46  ;;  %v1833_v54 = vmax.f32 %v3954_v52, 0.0  ;;  %2849 = vrot.lane.b32.xlu0 %v2812_v49, %s4168_s17  ;;  %2274 = vrot.lane.b32.xlu1 %v2235_v28, %s4167_s21  ;;  %v1754_v55 = vpop.f32.mrb[19].mxu0 }
 0x21a   : > { %v1869_v58 = vmul.f32 %v4956_v56, %v1830_v50  ;;  %v1831_v59 = vmax.f32 %v1754_v55, 0.0 }
 0x21b   : > { %v1910_v48 = vadd.f32 %v4962_v34, %v1871_v53  ;;  %v1872_v60 = vmul.f32 %v4956_v56, %v1833_v54 }
 0x21c   : > { %v1908_v61 = vadd.f32 %v4962_v34, %v1869_v58  ;;  %v1870_v62 = vmul.f32 %v4956_v56, %v1831_v59  ;;  %v2585_v4 = vpop.permute.xlu0 %2584 }
 0x21d   : > { %1989 = vst.msk [vmem:[#allocation4 + $0xf1] sm:$0xff] %vm1924_vm13, %v1910_v48  ;;  %v1911_v36 = vadd.f32 %v4962_v34, %v1872_v60  ;;  %2594 = vrot.lane.b32.xlu0 %v2235_v28, %s4166_s14  ;;  %v2392_v5 = vpop.permute.xlu1 %2391  ;;  %v4091_v48 = vld [vmem:[%s5552_s4 + $0x88] sm:$0xff]  }
 0x21e   : > { %1987 = vst.msk [vmem:[#allocation4 + $0xd9] sm:$0xff] %vm1924_vm13, %v1908_v61  ;;  %v1909_v63 = vadd.f32 %v4962_v34, %v1870_v62 }
 0x21f   : > { %1990 = vst.msk [vmem:[#allocation4 + $0xf9] sm:$0xff] %vm1924_vm13, %v1911_v36 }
 0x220   : > { %2631 = vst.msk [vmem:[#allocation5 + $0x20] sm:$0xff] %vm2179_vm0, %v2585_v4  ;;  %v2712_v7 = vpop.permute.xlu0 %2711 }
 0x221   : > { %1988 = vst.msk [vmem:[#allocation4 + $0xe1] sm:$0xff] %vm1924_vm13, %v1909_v63  ;;  %2145 = vrot.lane.b32.xlu0 %v2812_v49, %s4166_s14  ;;  %v2136_v8 = vpop.permute.xlu1 %2135  ;;  %v2969_v63 = vld [vmem:[#allocation5 + $0x10] sm:$0xff] }
 0x222   : > { %2182 = vst.msk [vmem:[#allocation5 + $0x30] sm:$0xff] %vm2179_vm0, %v2136_v8 }
 0x224   : > { %v2663_v9 = vld [vmem:[#allocation4 + $0xf0] sm:$0xff]  ;;  %v2583_v51 = vpop.permute.xlu0 %2582 }
 0x225   : > { %v2265_v57 = vpop.permute.xlu1 %2264  ;;  %v2789_v12 = vld [vmem:[#allocation4 + $0xd9] sm:$0xff]  ;;  %v2023_v14 = vld [vmem:[#allocation4 + $0xf0] sm:$0xff]  ;;  %2630 = vst.msk [vmem:[#allocation5 + $0x8] sm:$0xff] %vm2179_vm0, %v2583_v51 }
 0x226   : > { %v2664_v10 = vld [vmem:[#allocation4 + $0xf8] sm:$0xff]  ;;  %2311 = vst.msk [vmem:[#allocation5 + $0x30] sm:$0xff] %vm2308_vm1, %v2265_v57  ;;  %2759 = vst.msk [vmem:[#allocation5 + $0x8] sm:$0xff] %vm2308_vm1, %v2712_v7 }
 0x227   : > { %v2536_v11 = vld [vmem:[#allocation4 + $0xf2] sm:$0xff]  ;;  %v2687_v39 = vpack.c.bf16 %v2664_v10, %v2663_v9  ;;  %v2537_v16 = vld [vmem:[#allocation4 + $0xfa] sm:$0xff] }
 0x228   : > { %v2792_v15 = vld [vmem:[#allocation4 + $0xf9] sm:$0xff]  ;;  %v2790_v17 = vld [vmem:[#allocation4 + $0xe1] sm:$0xff]  ;;  %v2559_v18 = vpack.c.bf16 %v2537_v16, %v2536_v11  ;;  %v2472_v24 = vld [vmem:[#allocation4 + $0xf1] sm:$0xff] }
 0x229   : > { %v2814_v1 = vpack.c.bf16 %v2790_v17, %v2789_v12  ;;  %v2534_v20 = vld [vmem:[#allocation4 + $0xda] sm:$0xff]  ;;  %v2535_v21 = vld [vmem:[#allocation4 + $0xe2] sm:$0xff]  ;;  %2727 = vrot.lane.b32.xlu0 %v2687_v39, %s4167_s21  ;;  %2407 = vrot.lane.b32.xlu1 %v2687_v39, %s4168_s17  ;;  %v2840_v26 = vpop.permute.xlu1 %2839  ;;  %v2791_v6 = vld [vmem:[#allocation4 + $0xf1] sm:$0xff] }
 0x22a   : > { %v2024_v2 = vld [vmem:[#allocation4 + $0xf8] sm:$0xff]  ;;  %v2558_v22 = vpack.c.bf16 %v2535_v21, %v2534_v20  ;;  %2959 = vst.msk [vmem:[#allocation5 + $0xd0] sm:$0xff] %vm1924_vm13, %v2559_v18  ;;  %v2022_v43 = vld [vmem:[#allocation4 + $0xe0] sm:$0xff]  ;;  %v2815_v27 = vpack.c.bf16 %v2792_v15, %v2791_v6  ;;  %v2975_v9 = vld [vmem:[#allocation5 + $0x40] sm:$0xff] }
 0x22b   : > { %v2045_v23 = vpack.c.bf16 %v2024_v2, %v2023_v14  ;;  %v2473_v25 = vld [vmem:[#allocation4 + $0xf9] sm:$0xff]  ;;  %2510 = vst.msk [vmem:[#allocation5 + $0xc8] sm:$0xff] %vm1924_vm13, %v2814_v1  ;;  %v2978_v6 = vld [vmem:[#allocation5 + $0x58] sm:$0xff] }
 0x22c   : > { %v2495_v13 = vpack.c.bf16 %v2473_v25, %v2472_v24  ;;  %v2021_v28 = vld [vmem:[#allocation4 + $0xd8] sm:$0xff]  ;;  %2887 = vst.msk [vmem:[#allocation5 + $0x8] sm:$0xff] %vm2437_vm2, %v2840_v26  ;;  %v2662_v32 = vld [vmem:[#allocation4 + $0xe0] sm:$0xff] }
 0x22d   : > { %2958 = vst.msk [vmem:[#allocation5 + $0xb8] sm:$0xff] %vm1924_vm13, %v2558_v22  ;;  %2061 = vst.msk [vmem:[#allocation5 + $0xf0] sm:$0xff] %vm1924_vm13, %v2045_v23  ;;  %v2044_v29 = vpack.c.bf16 %v2022_v43, %v2021_v28  ;;  %2855 = vrot.lane.b32.xlu0 %v2815_v27, %s4168_s17  ;;  %2151 = vrot.lane.b32.xlu1 %v2815_v27, %s4166_s14  ;;  %v2134_v31 = vpop.permute.xlu1 %2133  ;;  %v2661_v37 = vld [vmem:[#allocation4 + $0xd8] sm:$0xff]  ;;  %v2981_v43 = vld [vmem:[#allocation5 + $0x70] sm:$0xff] }
 0x22e   : > { %2511 = vst.msk [vmem:[#allocation5 + $0xe0] sm:$0xff] %vm1924_vm13, %v2495_v13  ;;  %v2686_v38 = vpack.c.bf16 %v2662_v32, %v2661_v37  ;;  %v2972_v7 = vld [vmem:[#allocation5 + $0x28] sm:$0xff]  ;;  %v2987_v37 = vld [vmem:[#allocation5 + $0xa0] sm:$0xff] }
 0x22f   : > { %2060 = vst.msk [vmem:[#allocation5 + $0xd8] sm:$0xff] %vm1924_vm13, %v2044_v29  ;;  %v2984_v32 = vld [vmem:[#allocation5 + $0x88] sm:$0xff] }
 0x230   : > { %2181 = vst.msk [vmem:[#allocation5 + $0x18] sm:$0xff] %vm2179_vm0, %v2134_v31 }
 0x231   : > { %2600 = vrot.lane.b32.xlu0 %v2559_v18, %s4166_s14  ;;  %2280 = vrot.lane.b32.xlu1 %v2559_v18, %s4167_s21  ;;  %v2263_v33 = vpop.permute.xlu1 %2262 }
 0x232   : > { %2310 = vst.msk [vmem:[#allocation5 + $0x18] sm:$0xff] %vm2308_vm1, %v2263_v33 }
 0x233   : > { %v2968_v35 = vld [vmem:[#allocation5 + $0x8] sm:$0xff]  ;;  %2439 = vst.msk [vmem:[#allocation5 + $0x18] sm:$0xff] %vm2437_vm2, %v2392_v5 }
 0x234   : > { %3239 = vmatprep.mubr.bf16.mxu0 %v2968_v35 }
 0x235   : > { %2725 = vrot.lane.b32.xlu0 %v2686_v38, %s4167_s21  ;;  %2405 = vrot.lane.b32.xlu1 %v2686_v38, %s4168_s17  ;;  %v2390_v40 = vpop.permute.xlu1 %2389 }
 0x236   : > { %v3957_v19 = vpop.f32.mrb[20].mxu0  ;;  %2438 = vst.msk [vmem:[#allocation5] sm:$0xff] %vm2437_vm2, %v2390_v40 }
 0x237   : > { %v1836_v41 = vmax.f32 %v3957_v19, 0.0  ;;  %v1767_v42 = vpop.f32.mrb[21].mxu0 }
 0x238   : > { %v1834_v0 = vmax.f32 %v1767_v42, 0.0  ;;  %v3958_v30 = vpop.f32.mrb[22].mxu0 }
 0x239   : > { %v1875_v44 = vmul.f32 %v4956_v56, %v1836_v41  ;;  %v1837_v45 = vmax.f32 %v3958_v30, 0.0  ;;  %2853 = vrot.lane.b32.xlu0 %v2814_v1, %s4168_s17  ;;  %2149 = vrot.lane.b32.xlu1 %v2814_v1, %s4166_s14  ;;  %v1770_v46 = vpop.f32.mrb[23].mxu0 }
 0x23a   : > { %v1873_v47 = vmul.f32 %v4956_v56, %v1834_v0  ;;  %v1835_v49 = vmax.f32 %v1770_v46, 0.0  ;;  %v2970_v29 = vld [vmem:[#allocation5 + $0x18] sm:$0xff] }
 0x23b   : > { %v1914_v50 = vadd.f32 %v4962_v34, %v1875_v44  ;;  %v1876_v52 = vmul.f32 %v4956_v56, %v1837_v45  ;;  %v5186_v53 = vpop.permute.xlu0 %2715  ;;  %v5188_v54 = vpop.permute.xlu1 %2395 }
 0x23c   : > { %v1912_v55 = vadd.f32 %v4962_v34, %v1873_v47  ;;  %v1874_v58 = vmul.f32 %v4956_v56, %v1835_v49 }
 0x23d   : > { %1993 = vst.msk [vmem:[#allocation4 + $0x121] sm:$0xff] %vm1924_vm13, %v1914_v50  ;;  %v1915_v59 = vadd.f32 %v4962_v34, %v1876_v52  ;;  %2598 = vrot.lane.b32.xlu0 %v2558_v22, %s4166_s14  ;;  %2278 = vrot.lane.b32.xlu1 %v2558_v22, %s4167_s21  ;;  %v2967_v61 = vld [vmem:[#allocation5] sm:$0xff] }
 0x23e   : > { %1991 = vst.msk [vmem:[#allocation4 + $0x109] sm:$0xff] %vm1924_vm13, %v1912_v55  ;;  %v1913_v60 = vadd.f32 %v4962_v34, %v1874_v58  ;;  %3240 = vmatmul.mubr.bf16.vlgmr.msra.gmra.mrb[32].mxu0 %v2967_v61  ;;  %v5259_v52 = vld [vmem:[%s5553_s5] ss:$0 sm:$0xff] }
 0x23f   : > { %1994 = vst.msk [vmem:[#allocation4 + $0x129] sm:$0xff] %vm1924_vm13, %v1915_v59  ;;  %v5202_v62 = vpop.permute.xlu0 %2843  ;;  %v2140_v36 = vpop.permute.xlu1 %2139  ;;  %3968 = vmatpush3.bf16.msra.mxu0 %v5058_v3  ;;  %3971 = vmatprep.mubr.msk.bf16.mxu0 %vm1924_vm13, %v2969_v63  ;;  %v2990_v59 = vld [vmem:[#allocation5 + $0xb8] sm:$0xff] }
 0x240   : > { %1992 = vst.msk [vmem:[#allocation4 + $0x111] sm:$0xff] %vm1924_vm13, %v1913_v60  ;;  %3969 = vmatprep.subr.bf16.mxu0 %v4091_v48  ;;  %v2993_v60 = vld [vmem:[#allocation5 + $0xd0] sm:$0xff] }
 0x241   : > { %2184 = vst.msk [vmem:[#allocation5 + $0x60] sm:$0xff] %vm2179_vm0, %v2140_v36 }
 0x243   : > { %v2589_v4 = vpop.permute.xlu0 %2588  ;;  %v2269_v5 = vpop.permute.xlu1 %2268  ;;  %3970 = vmatpush3.bf16.msra.mxu0 %v4091_v48 }
 0x244   : > { %2633 = vst.msk [vmem:[#allocation5 + $0x50] sm:$0xff] %vm2179_vm0, %v2589_v4  ;;  %v2667_v8 = vld [vmem:[#allocation4 + $0x120] sm:$0xff] }
 0x245   : > { %2313 = vst.msk [vmem:[#allocation5 + $0x60] sm:$0xff] %vm2308_vm1, %v2269_v5  ;;  %v2795_v57 = vld [vmem:[#allocation4 + $0x121] sm:$0xff]  ;;  %v2793_v10 = vld [vmem:[#allocation4 + $0x109] sm:$0xff] }
 0x246   : > { %v2665_v51 = vld [vmem:[#allocation4 + $0x108] sm:$0xff]  ;;  %3972 = vmatmul.mubr.msk.bf16.vlgmr.msra.gmra.mrb[36].mxu0 %vm1924_vm13, %v2972_v7 }
 0x247   : > { %v2668_v11 = vld [vmem:[#allocation4 + $0x128] sm:$0xff]  ;;  %v2714_v3 = vpop.permute.xlu0 %2713  ;;  %v2394_v39 = vpop.permute.xlu1 %2393  ;;  %v2666_v18 = vld [vmem:[#allocation4 + $0x110] sm:$0xff]  ;;  %3975 = vmatprep.mubr.msk.bf16.mxu0 %vm1924_vm13, %v2975_v9 }
 0x248   : > { %v2796_v12 = vld [vmem:[#allocation4 + $0x129] sm:$0xff]  ;;  %v2689_v15 = vpack.c.bf16 %v2668_v11, %v2667_v8  ;;  %v2794_v1 = vld [vmem:[#allocation4 + $0x111] sm:$0xff]  ;;  %2760 = vst.msk [vmem:[#allocation5 + $0x20] sm:$0xff] %vm2308_vm1, %v2714_v3  ;;  %v2688_v21 = vpack.c.bf16 %v2666_v18, %v2665_v51 }
 0x249   : > { %v2540_v14 = vld [vmem:[#allocation4 + $0x122] sm:$0xff]  ;;  %v2817_v16 = vpack.c.bf16 %v2796_v12, %v2795_v57  ;;  %v2541_v17 = vld [vmem:[#allocation4 + $0x12a] sm:$0xff]  ;;  %2440 = vst.msk [vmem:[#allocation5 + $0x30] sm:$0xff] %vm2437_vm2, %v2394_v39  ;;  %v2816_v2 = vpack.c.bf16 %v2794_v1, %v2793_v10  ;;  %v2539_v23 = vld [vmem:[#allocation4 + $0x112] sm:$0xff] }
 0x24a   : > { %v2561_v20 = vpack.c.bf16 %v2541_v17, %v2540_v14  ;;  %v2538_v22 = vld [vmem:[#allocation4 + $0x10a] sm:$0xff]  ;;  %2731 = vrot.lane.b32.xlu0 %v2689_v15, %s4167_s21  ;;  %2411 = vrot.lane.b32.xlu1 %v2689_v15, %s4168_s17  ;;  %2063 = vst.msk [vmem:[#allocation5 + $0x120] sm:$0xff] %vm1924_vm13, %v2689_v15  ;;  %2062 = vst.msk [vmem:[#allocation5 + $0x108] sm:$0xff] %vm1924_vm13, %v2688_v21 }
 0x24b   : > { %v5216_v24 = vpack.c.bf16 %v2539_v23, %v2538_v22  ;;  %2513 = vst.msk [vmem:[#allocation5 + $0x110] sm:$0xff] %vm1924_vm13, %v2817_v16  ;;  %2512 = vst.msk [vmem:[#allocation5 + $0xf8] sm:$0xff] %vm1924_vm13, %v2816_v2  ;;  %v2842_v25 = vpop.permute.xlu0 %2841  ;;  %v2138_v26 = vpop.permute.xlu1 %2137 }
 0x24c   : > { %2961 = vst.msk [vmem:[#allocation5 + $0x100] sm:$0xff] %vm1924_vm13, %v2561_v20 }
 0x24d   : > { %2960 = vst.msk [vmem:[#allocation5 + $0xe8] sm:$0xff] %vm1924_vm13, %v5216_v24 }
 0x24e   : > { %2888 = vst.msk [vmem:[#allocation5 + $0x20] sm:$0xff] %vm2437_vm2, %v2842_v25  ;;  %2859 = vrot.lane.b32.xlu0 %v2817_v16, %s4168_s17  ;;  %2155 = vrot.lane.b32.xlu1 %v2817_v16, %s4166_s14 }
 0x24f   : > { %2183 = vst.msk [vmem:[#allocation5 + $0x48] sm:$0xff] %vm2179_vm0, %v2138_v26  ;;  %v2587_v13 = vpop.permute.xlu0 %2586  ;;  %v2267_v28 = vpop.permute.xlu1 %2266  ;;  %3976 = vmatmul.mubr.msk.bf16.gmra.mrb[40].mxu0 %vm1924_vm13, %v2978_v6 }
 0x250   : > { %2632 = vst.msk [vmem:[#allocation5 + $0x38] sm:$0xff] %vm2179_vm0, %v2587_v13  ;;  %3979 = vmatprep.mubr.msk.bf16.mxu0 %vm1924_vm13, %v2981_v43 }
 0x251   : > { %2312 = vst.msk [vmem:[#allocation5 + $0x48] sm:$0xff] %vm2308_vm1, %v2267_v28  ;;  %2761 = vst.msk [vmem:[#allocation5 + $0x38] sm:$0xff] %vm2308_vm1, %v5186_v53 }
 0x252   : > { %2441 = vst.msk [vmem:[#allocation5 + $0x48] sm:$0xff] %vm2437_vm2, %v5188_v54  ;;  %2604 = vrot.lane.b32.xlu0 %v2561_v20, %s4166_s14  ;;  %2284 = vrot.lane.b32.xlu1 %v2561_v20, %s4167_s21  ;;  %2889 = vst.msk [vmem:[#allocation5 + $0x38] sm:$0xff] %vm2437_vm2, %v5202_v62  ;;  %v2973_v54 = vld [vmem:[#allocation5 + $0x30] sm:$0xff] }
 0x253   : > { %v2999_v63 = vld [vmem:[#allocation5 + $0x100] sm:$0xff] }
 0x254   : > { %v2996_v36 = vld [vmem:[#allocation5 + $0xe8] sm:$0xff] }
 0x255   : > { %v2971_v27 = vld [vmem:[#allocation5 + $0x20] sm:$0xff] }
 0x256   : > { %3247 = vmatprep.mubr.bf16.mxu1 %v2971_v27  ;;  %2729 = vrot.lane.b32.xlu0 %v2688_v21, %s4167_s21  ;;  %v3961_v31 = vpop.f32.mrb[24].mxu0 }
 0x257   : > { %3248 = vmatmul.mubr.bf16.vlgmr.msra.gmra.mrb[0].mxu1 %v2970_v29  ;;  %2409 = vrot.lane.b32.xlu1 %v2688_v21, %s4168_s17  ;;  %v1840_v33 = vmax.f32 %v3961_v31, 0.0  ;;  %v1783_v35 = vpop.f32.mrb[25].mxu0 }
 0x258   : > { %3980 = vmatmul.mubr.msk.bf16.gmra.mrb[44].mxu0 %vm1924_vm13, %v2984_v32  ;;  %v1838_v38 = vmax.f32 %v1783_v35, 0.0  ;;  %v3962_v40 = vpop.f32.mrb[26].mxu0 }
 0x259   : > { %3983 = vmatprep.mubr.msk.bf16.mxu0 %vm1924_vm13, %v2987_v37  ;;  %v1879_v19 = vmul.f32 %v4956_v56, %v1840_v33  ;;  %v1841_v41 = vmax.f32 %v3962_v40, 0.0  ;;  %v1786_v42 = vpop.f32.mrb[27].mxu0  ;;  %v2974_v0 = vld [vmem:[#allocation5 + $0x38] sm:$0xff]  ;;  %v2976_v13 = vld [vmem:[#allocation5 + $0x48] sm:$0xff] }
 0x25a   : > { %2857 = vrot.lane.b32.xlu0 %v2816_v2, %s4168_s17  ;;  %v1877_v30 = vmul.f32 %v4956_v56, %v1838_v38  ;;  %v1839_v44 = vmax.f32 %v1786_v42, 0.0  ;;  %3255 = vmatprep.mubr.bf16.mxu1 %v2974_v0 }
 0x25b   : > { %2153 = vrot.lane.b32.xlu1 %v2816_v2, %s4166_s14  ;;  %v1918_v45 = vadd.f32 %v4962_v34, %v1879_v19  ;;  %v1880_v46 = vmul.f32 %v4956_v56, %v1841_v41  ;;  %v5251_v47 = vpop.permute.xlu0 %2719  ;;  %v5253_v49 = vpop.permute.xlu1 %2399  ;;  %v5270_v56 = vld [vmem:[%s5554_s6] ss:$0 sm:$0xff] }
 0x25c   : > { %v1916_v50 = vadd.f32 %v4962_v34, %v1877_v30  ;;  %v1878_v53 = vmul.f32 %v5259_v52, %v1839_v44 }
 0x25d   : > { %1997 = vst.msk [vmem:[#allocation4 + $0x151] sm:$0xff] %vm1924_vm13, %v1918_v45  ;;  %v1919_v55 = vadd.f32 %v4962_v34, %v1880_v46 }
 0x25e   : > { %2602 = vrot.lane.b32.xlu0 %v5216_v24, %s4166_s14  ;;  %1995 = vst.msk [vmem:[#allocation4 + $0x139] sm:$0xff] %vm1924_vm13, %v1916_v50  ;;  %v1917_v58 = vadd.f32 %v5270_v56, %v1878_v53 }
 0x25f   : > { %3256 = vmatmul.mubr.bf16.gmra.mrb[4].mxu1 %v2973_v54  ;;  %2282 = vrot.lane.b32.xlu1 %v5216_v24, %s4167_s21  ;;  %1998 = vst.msk [vmem:[#allocation4 + $0x159] sm:$0xff] %vm1924_vm13, %v1919_v55  ;;  %v2848_v34 = vpop.permute.xlu0 %2847  ;;  %v2144_v48 = vpop.permute.xlu1 %2143 }
 0x260   : > { %3984 = vmatmul.mubr.msk.bf16.gmra.mrb[48].mxu0 %vm1924_vm13, %v2990_v59  ;;  %1996 = vst.msk [vmem:[#allocation4 + $0x141] sm:$0xff] %vm1924_vm13, %v1917_v58 }
 0x261   : > { %2186 = vst.msk [vmem:[#allocation5 + $0x90] sm:$0xff] %vm2179_vm0, %v2144_v48  ;;  %3987 = vmatprep.mubr.msk.bf16.mxu0 %vm1924_vm13, %v2993_v60 }
 0x263   : > { %v2593_v61 = vpop.permute.xlu0 %2592  ;;  %v2273_v62 = vpop.permute.xlu1 %2272 }
 0x264   : > { %2635 = vst.msk [vmem:[#allocation5 + $0x80] sm:$0xff] %vm2179_vm0, %v2593_v61  ;;  %v2671_v4 = vld [vmem:[#allocation4 + $0x150] sm:$0xff] }
 0x265   : > { %2315 = vst.msk [vmem:[#allocation5 + $0x90] sm:$0xff] %vm2308_vm1, %v2273_v62  ;;  %v2799_v5 = vld [vmem:[#allocation4 + $0x151] sm:$0xff]  ;;  %v2093_v18 = vld [vmem:[#allocation4 + $0x139] sm:$0xff] }
 0x266   : > { %v2349_v7 = vld [vmem:[#allocation4 + $0x138] sm:$0xff] }
 0x267   : > { %v2672_v8 = vld [vmem:[#allocation4 + $0x158] sm:$0xff]  ;;  %v2718_v51 = vpop.permute.xlu0 %2717  ;;  %v2398_v10 = vpop.permute.xlu1 %2397  ;;  %v2350_v3 = vld [vmem:[#allocation4 + $0x140] sm:$0xff] }
 0x268   : > { %v2800_v9 = vld [vmem:[#allocation4 + $0x159] sm:$0xff]  ;;  %3988 = vmatmul.mubr.msk.bf16.gmra.mrb[52].mxu0 %vm1924_vm13, %v2996_v36  ;;  %v2691_v11 = vpack.c.bf16 %v2672_v8, %v2671_v4  ;;  %2762 = vst.msk [vmem:[#allocation5 + $0x50] sm:$0xff] %vm2308_vm1, %v2718_v51  ;;  %v2369_v16 = vpack.c.bf16 %v2350_v3, %v2349_v7  ;;  %v2926_v17 = vld [vmem:[#allocation4 + $0x142] sm:$0xff] }
 0x269   : > { %v2544_v57 = vld [vmem:[#allocation4 + $0x152] sm:$0xff]  ;;  %v2819_v12 = vpack.c.bf16 %v2800_v9, %v2799_v5  ;;  %v2545_v14 = vld [vmem:[#allocation4 + $0x15a] sm:$0xff]  ;;  %2442 = vst.msk [vmem:[#allocation5 + $0x60] sm:$0xff] %vm2437_vm2, %v2398_v10  ;;  %3991 = vmatprep.mubr.msk.bf16.mxu0 %vm1924_vm13, %v2999_v63 }
 0x26a   : > { %v2925_v39 = vld [vmem:[#allocation4 + $0x13a] sm:$0xff]  ;;  %v5286_v15 = vpack.c.bf16 %v2545_v14, %v2544_v57  ;;  %2735 = vrot.lane.b32.xlu0 %v2691_v11, %s4167_s21  ;;  %2415 = vrot.lane.b32.xlu1 %v2691_v11, %s4168_s17  ;;  %2065 = vst.msk [vmem:[#allocation5 + $0x150] sm:$0xff] %vm1924_vm13, %v2691_v11  ;;  %2064 = vst.msk [vmem:[#allocation5 + $0x138] sm:$0xff] %vm1924_vm13, %v2369_v16 }
 0x26b   : > { %v2094_v1 = vld [vmem:[#allocation4 + $0x141] sm:$0xff]  ;;  %v2946_v20 = vpack.c.bf16 %v2926_v17, %v2925_v39  ;;  %2515 = vst.msk [vmem:[#allocation5 + $0x140] sm:$0xff] %vm1924_vm13, %v2819_v12  ;;  %v2846_v2 = vpop.permute.xlu0 %2845  ;;  %v2142_v22 = vpop.permute.xlu1 %2141 }
 0x26c   : > { %v2112_v21 = vpack.c.bf16 %v2094_v1, %v2093_v18  ;;  %2963 = vst.msk [vmem:[#allocation5 + $0x130] sm:$0xff] %vm1924_vm13, %v5286_v15  ;;  %v2933_v3 = vld [vmem:[#allocation4 + $0x19a] sm:$0xff]  ;;  %v2934_v17 = vld [vmem:[#allocation4 + $0x1a2] sm:$0xff] }
 0x26d   : > { %2962 = vst.msk [vmem:[#allocation5 + $0x118] sm:$0xff] %vm1924_vm13, %v2946_v20 }
 0x26e   : > { %2514 = vst.msk [vmem:[#allocation5 + $0x128] sm:$0xff] %vm1924_vm13, %v2112_v21  ;;  %2863 = vrot.lane.b32.xlu0 %v2819_v12, %s4168_s17  ;;  %2159 = vrot.lane.b32.xlu1 %v2819_v12, %s4166_s14 }
 0x26f   : > { %2890 = vst.msk [vmem:[#allocation5 + $0x50] sm:$0xff] %vm2437_vm2, %v2846_v2  ;;  %v2591_v23 = vpop.permute.xlu0 %2590  ;;  %v2271_v24 = vpop.permute.xlu1 %2270  ;;  %v2677_v2 = vld [vmem:[#allocation4 + $0x198] sm:$0xff] }
 0x270   : > { %2185 = vst.msk [vmem:[#allocation5 + $0x78] sm:$0xff] %vm2179_vm0, %v2142_v22  ;;  %2634 = vst.msk [vmem:[#allocation5 + $0x68] sm:$0xff] %vm2179_vm0, %v2591_v23  ;;  %v2979_v45 = vld [vmem:[#allocation5 + $0x60] sm:$0xff]  ;;  %v2678_v22 = vld [vmem:[#allocation4 + $0x1a0] sm:$0xff] }
 0x271   : > { %2314 = vst.msk [vmem:[#allocation5 + $0x78] sm:$0xff] %vm2308_vm1, %v2271_v24  ;;  %2763 = vst.msk [vmem:[#allocation5 + $0x68] sm:$0xff] %vm2308_vm1, %v5251_v47 }
 0x272   : > { %2443 = vst.msk [vmem:[#allocation5 + $0x78] sm:$0xff] %vm2437_vm2, %v5253_v49  ;;  %2608 = vrot.lane.b32.xlu0 %v5286_v15, %s4166_s14  ;;  %2413 = vrot.lane.b32.xlu1 %v2369_v16, %s4168_s17  ;;  %2891 = vst.msk [vmem:[#allocation5 + $0x68] sm:$0xff] %vm2437_vm2, %v2848_v34 }
 0x273   : > { %v3005_v26 = vld [vmem:[#allocation5 + $0x130] sm:$0xff] }
 0x274   : > { %v3002_v25 = vld [vmem:[#allocation5 + $0x118] sm:$0xff] }
 0x275   : > { %3992 = vmatmul.mubr.msk.bf16.gmra.mrb[56].mxu0 %vm1924_vm13, %v3002_v25 }
 0x276   : > { %v2977_v6 = vld [vmem:[#allocation5 + $0x50] sm:$0xff]  ;;  %3995 = vmatprep.mubr.msk.bf16.mxu0 %vm1924_vm13, %v3005_v26  ;;  %2733 = vrot.lane.b32.xlu0 %v2369_v16, %s4167_s21  ;;  %v3965_v28 = vpop.f32.mrb[28].mxu0  ;;  %v2694_v26 = vpack.c.bf16 %v2678_v22, %v2677_v2 }
 0x277   : > { %3263 = vmatprep.mubr.bf16.mxu1 %v2977_v6  ;;  %2157 = vrot.lane.b32.xlu1 %v2112_v21, %s4166_s14  ;;  %v1844_v43 = vmax.f32 %v3965_v28, 0.0  ;;  %v1799_v27 = vpop.f32.mrb[29].mxu0  ;;  %v2806_v28 = vld [vmem:[#allocation4 + $0x1a1] sm:$0xff] }
 0x278   : > { %3264 = vmatmul.mubr.bf16.gmra.mrb[8].mxu1 %v2976_v13  ;;  %v1842_v29 = vmax.f32 %v1799_v27, 0.0  ;;  %v3966_v31 = vpop.f32.mrb[30].mxu0  ;;  %v2805_v13 = vld [vmem:[#allocation4 + $0x199] sm:$0xff] }
 0x279   : > { %v1883_v32 = vmul.f32 %v5259_v52, %v1844_v43  ;;  %v1845_v33 = vmax.f32 %v3966_v31, 0.0  ;;  %v1802_v35 = vpop.f32.mrb[31].mxu0  ;;  %v2980_v37 = vld [vmem:[#allocation5 + $0x68] sm:$0xff]  ;;  %v2982_v1 = vld [vmem:[#allocation5 + $0x78] sm:$0xff] }
 0x27a   : > { %2861 = vrot.lane.b32.xlu0 %v2112_v21, %s4168_s17  ;;  %v1881_v38 = vmul.f32 %v5259_v52, %v1842_v29  ;;  %v1843_v40 = vmax.f32 %v1802_v35, 0.0  ;;  %3271 = vmatprep.mubr.bf16.mxu1 %v2980_v37  ;;  %v2822_v29 = vpack.c.bf16 %v2806_v28, %v2805_v13 }
 0x27b   : > { %2286 = vrot.lane.b32.xlu1 %v2946_v20, %s4167_s21  ;;  %v1922_v19 = vadd.f32 %v5270_v56, %v1883_v32  ;;  %v1884_v41 = vmul.f32 %v5259_v52, %v1845_v33  ;;  %v2724_v42 = vpop.permute.xlu0 %2723  ;;  %v5321_v0 = vpop.permute.xlu1 %2403 }
 0x27c   : > { %v1920_v30 = vadd.f32 %v5270_v56, %v1881_v38  ;;  %v1882_v44 = vmul.f32 %v5259_v52, %v1843_v40 }
 0x27d   : > { %2001 = vst.msk [vmem:[#allocation4 + $0x181] sm:$0xff] %vm1924_vm13, %v1922_v19  ;;  %v1923_v46 = vadd.f32 %v5270_v56, %v1884_v41 }
 0x27e   : > { %2606 = vrot.lane.b32.xlu0 %v2946_v20, %s4166_s14  ;;  %1999 = vst.msk [vmem:[#allocation4 + $0x169] sm:$0xff] %vm1924_vm13, %v1920_v30  ;;  %v1921_v47 = vadd.f32 %v5270_v56, %v1882_v44  ;;  %v2950_v20 = vpack.c.bf16 %v2934_v17, %v2933_v3 }
 0x27f   : > { %2288 = vrot.lane.b32.xlu1 %v5286_v15, %s4167_s21  ;;  %2002 = vst.msk [vmem:[#allocation4 + $0x189] sm:$0xff] %vm1924_vm13, %v1923_v46  ;;  %v2852_v49 = vpop.permute.xlu0 %2851  ;;  %v2148_v50 = vpop.permute.xlu1 %2147 }
 0x280   : > { %3272 = vmatmul.mubr.bf16.gmra.mrb[12].mxu1 %v2979_v45  ;;  %2000 = vst.msk [vmem:[#allocation4 + $0x171] sm:$0xff] %vm1924_vm13, %v1921_v47  ;;  %2966 = vst.msk [vmem:[#allocation5 + $0x178] sm:$0xff] %vm1924_vm13, %v2950_v20 }
 0x281   : > { %2188 = vst.msk [vmem:[#allocation5 + $0xc0] sm:$0xff] %vm2179_vm0, %v2148_v50 }
 0x283   : > { %v2597_v52 = vpop.permute.xlu0 %2596  ;;  %v2277_v53 = vpop.permute.xlu1 %2276 }
 0x284   : > { %2637 = vst.msk [vmem:[#allocation5 + $0xb0] sm:$0xff] %vm2179_vm0, %v2597_v52  ;;  %v2675_v54 = vld [vmem:[#allocation4 + $0x180] sm:$0xff] }
 0x285   : > { %2317 = vst.msk [vmem:[#allocation5 + $0xc0] sm:$0xff] %vm2308_vm1, %v2277_v53  ;;  %v2353_v55 = vld [vmem:[#allocation4 + $0x168] sm:$0xff] }
 0x286   : > { %v2803_v56 = vld [vmem:[#allocation4 + $0x181] sm:$0xff]  ;;  %v2097_v58 = vld [vmem:[#allocation4 + $0x169] sm:$0xff] }
 0x287   : > { %v2676_v59 = vld [vmem:[#allocation4 + $0x188] sm:$0xff]  ;;  %v2722_v60 = vpop.permute.xlu0 %2721  ;;  %v2402_v61 = vpop.permute.xlu1 %2401  ;;  %v2354_v36 = vld [vmem:[#allocation4 + $0x170] sm:$0xff] }
 0x288   : > { %v2804_v34 = vld [vmem:[#allocation4 + $0x189] sm:$0xff]  ;;  %v2693_v62 = vpack.c.bf16 %v2676_v59, %v2675_v54  ;;  %v2098_v4 = vld [vmem:[#allocation4 + $0x171] sm:$0xff]  ;;  %2764 = vst.msk [vmem:[#allocation5 + $0x80] sm:$0xff] %vm2308_vm1, %v2722_v60  ;;  %v2371_v7 = vpack.c.bf16 %v2354_v36, %v2353_v55 }
 0x289   : > { %v2931_v48 = vld [vmem:[#allocation4 + $0x182] sm:$0xff]  ;;  %v2821_v63 = vpack.c.bf16 %v2804_v34, %v2803_v56  ;;  %v2929_v5 = vld [vmem:[#allocation4 + $0x16a] sm:$0xff]  ;;  %2444 = vst.msk [vmem:[#allocation5 + $0x90] sm:$0xff] %vm2437_vm2, %v2402_v61  ;;  %v2114_v8 = vpack.c.bf16 %v2098_v4, %v2097_v58  ;;  %v2930_v9 = vld [vmem:[#allocation4 + $0x172] sm:$0xff] }
 0x28a   : > { %v2932_v57 = vld [vmem:[#allocation4 + $0x18a] sm:$0xff]  ;;  %2739 = vrot.lane.b32.xlu0 %v2693_v62, %s4167_s21  ;;  %v2948_v51 = vpack.c.bf16 %v2930_v9, %v2929_v5  ;;  %2417 = vrot.lane.b32.xlu1 %v2371_v7, %s4168_s17  ;;  %2066 = vst.msk [vmem:[#allocation5 + $0x168] sm:$0xff] %vm1924_vm13, %v2371_v7 }
 0x28b   : > { %v2949_v10 = vpack.c.bf16 %v2932_v57, %v2931_v48  ;;  %2517 = vst.msk [vmem:[#allocation5 + $0x170] sm:$0xff] %vm1924_vm13, %v2821_v63  ;;  %2516 = vst.msk [vmem:[#allocation5 + $0x158] sm:$0xff] %vm1924_vm13, %v2114_v8  ;;  %v2850_v11 = vpop.permute.xlu0 %2849  ;;  %v2275_v18 = vpop.permute.xlu1 %2274  ;;  %v3014_v6 = vld [vmem:[#allocation5 + $0x178] sm:$0xff] }
 0x28c   : > { %2964 = vst.msk [vmem:[#allocation5 + $0x148] sm:$0xff] %vm1924_vm13, %v2948_v51 }
 0x28d   : > { %2965 = vst.msk [vmem:[#allocation5 + $0x160] sm:$0xff] %vm1924_vm13, %v2949_v10 }
 0x28e   : > { %2892 = vst.msk [vmem:[#allocation5 + $0x80] sm:$0xff] %vm2437_vm2, %v2850_v11  ;;  %2867 = vrot.lane.b32.xlu0 %v2821_v63, %s4168_s17  ;;  %2161 = vrot.lane.b32.xlu1 %v2114_v8, %s4166_s14 }
 0x28f   : > { %v2595_v12 = vpop.permute.xlu0 %2594 }
 0x290   : > { %2636 = vst.msk [vmem:[#allocation5 + $0x98] sm:$0xff] %vm2179_vm0, %v2595_v12  ;;  %v2985_v25 = vld [vmem:[#allocation5 + $0x90] sm:$0xff] }
 0x291   : > { %2765 = vst.msk [vmem:[#allocation5 + $0x98] sm:$0xff] %vm2308_vm1, %v2724_v42 }
 0x292   : > { %2737 = vrot.lane.b32.xlu0 %v2371_v7, %s4167_s21  ;;  %2893 = vst.msk [vmem:[#allocation5 + $0x98] sm:$0xff] %vm2437_vm2, %v2852_v49  ;;  %2290 = vrot.lane.b32.xlu1 %v2948_v51, %s4167_s21 }
 0x293   : > { %v3008_v14 = vld [vmem:[#allocation5 + $0x148] sm:$0xff]  ;;  %v2146_v39 = vpop.permute.xlu0 %2145 }
 0x294   : > { %3996 = vmatmul.mubr.msk.bf16.gmra.mrb[60].mxu0 %vm1924_vm13, %v3008_v14  ;;  %v3011_v15 = vld [vmem:[#allocation5 + $0x160] sm:$0xff]  ;;  %2187 = vst.msk [vmem:[#allocation5 + $0xa8] sm:$0xff] %vm2179_vm0, %v2146_v39 }
 0x295   : > { %v2983_v16 = vld [vmem:[#allocation5 + $0x80] sm:$0xff]  ;;  %3999 = vmatprep.mubr.msk.bf16.mxu0 %vm1924_vm13, %v3011_v15  ;;  %2316 = vst.msk [vmem:[#allocation5 + $0xa8] sm:$0xff] %vm2308_vm1, %v2275_v18 }
 0x296   : > { %3279 = vmatprep.mubr.bf16.mxu1 %v2983_v16  ;;  %2865 = vrot.lane.b32.xlu0 %v2114_v8, %s4168_s17  ;;  %2445 = vst.msk [vmem:[#allocation5 + $0xa8] sm:$0xff] %vm2437_vm2, %v5321_v0 }
 0x297   : > { %3280 = vmatmul.mubr.bf16.gmra.mrb[16].mxu1 %v2982_v1  ;;  %2419 = vrot.lane.b32.xlu1 %v2693_v62, %s4168_s17 }
 0x299   : > { %v2986_v21 = vld [vmem:[#allocation5 + $0x98] sm:$0xff] }
 0x29a   : > { %2610 = vrot.lane.b32.xlu0 %v2948_v51, %s4166_s14  ;;  %3287 = vmatprep.mubr.bf16.mxu1 %v2986_v21 }
 0x29b   : > { %v2728_v23 = vpop.permute.xlu0 %2727  ;;  %v2408_v24 = vpop.permute.xlu1 %2407 }
 0x29c   : > { %4000 = vmatmul.mubr.msk.bf16.gmra.mrb[64].mxu0 %vm1924_vm13, %v3014_v6 }
 0x29d   : > { %v2988_v42 = vld [vmem:[#allocation5 + $0xa8] sm:$0xff] }
 0x29e   : > { %2612 = vrot.lane.b32.xlu0 %v2949_v10, %s4166_s14  ;;  %s269_s14 = sand.u32 1, %s4148_s25  }
 0x29f   : > { %3288 = vmatmul.mubr.bf16.gmra.mrb[20].mxu1 %v2985_v25  ;;  %v2856_v43 = vpop.permute.xlu0 %2855  ;;  %v2152_v27 = vpop.permute.xlu1 %2151  ;;  %s5506_s19 = scalar_lea.sflag [#allocation7], %s269_s14 }
 0x2a0   : > { %2190 = vst.msk [vmem:[#allocation5 + $0xf0] sm:$0xff] %vm2179_vm0, %v2152_v27 }
 0x2a2   : > { %2741 = vrot.lane.b32.xlu0 %v2694_v26, %s4167_s21  ;;  %s3713_s21 = sshll.u32 %s269_s14, 6 }
 0x2a3   : > { %v2601_v31 = vpop.permute.xlu0 %2600  ;;  %v2281_v32 = vpop.permute.xlu1 %2280 }
 0x2a4   : > { %2639 = vst.msk [vmem:[#allocation5 + $0xe0] sm:$0xff] %vm2179_vm0, %v2601_v31 }
 0x2a5   : > { %2319 = vst.msk [vmem:[#allocation5 + $0xf0] sm:$0xff] %vm2308_vm1, %v2281_v32 }
 0x2a6   : > { %2869 = vrot.lane.b32.xlu0 %v2822_v29, %s4168_s17  ;;  %s5479_s17 = scalar_lea.vmem [#allocation6], %s3713_s21 }
 0x2a7   : > { %v2726_v33 = vpop.permute.xlu0 %2725  ;;  %v2406_v35 = vpop.permute.xlu1 %2405  ;;  %s3647_s9 = sshll.u32 %s5479_s17, 4  ;;  %s5496_s9 = int_to_ptr.vmem [resolvable:$true] %s3647_s9 }
 0x2a8   : > { %2766 = vst.msk [vmem:[#allocation5 + $0xb0] sm:$0xff] %vm2308_vm1, %v2726_v33  ;;  %s4094_s20 = scalar_lea.vmem %s5496_s9, 1024  ;;  %p4101_p0 = scmp.lt.s32.totalorder %s5496_s9, %s4099_s22 }
 0x2a9   : > { %2446 = vst.msk [vmem:[#allocation5 + $0xc0] sm:$0xff] %vm2437_vm2, %v2406_v35  ;;  %p4095_p11 = scmp.ne.s32.totalorder %s5496_s9, %s4094_s20  ;;  %p4102_p1 = scmp.lt.s32.totalorder %s4100_s23, %s4094_s20 }
 0x2ab   : > { %v2854_v37 = vpop.permute.xlu0 %2853  ;;  %v2150_v38 = vpop.permute.xlu1 %2149  ;;  %p4096_p12 = pnand %p4095_p11, %p4249_p5  ;;  %p4103_p2 = por %p4102_p1, %p4101_p0 }
 0x2ac   : > { %2894 = vst.msk [vmem:[#allocation5 + $0xb0] sm:$0xff] %vm2437_vm2, %v2854_v37 }
 0x2ad   : > { %2189 = vst.msk [vmem:[#allocation5 + $0xd8] sm:$0xff] %vm2179_vm0, %v2150_v38  ;;  %p4097_p13 = pneg %p4096_p12 }
 0x2af   : > { %v2599_v40 = vpop.permute.xlu0 %2598  ;;  %v2279_v19 = vpop.permute.xlu1 %2278  ;;  %p4104_p3 = pnand %p4103_p2, %p4097_p13 }
 0x2b0   : > { %2638 = vst.msk [vmem:[#allocation5 + $0xc8] sm:$0xff] %vm2179_vm0, %v2599_v40  ;;  %v2991_v45 = vld [vmem:[#allocation5 + $0xc0] sm:$0xff] }
 0x2b1   : > { %2318 = vst.msk [vmem:[#allocation5 + $0xd8] sm:$0xff] %vm2308_vm1, %v2279_v19  ;;  %2767 = vst.msk [vmem:[#allocation5 + $0xc8] sm:$0xff] %vm2308_vm1, %v2728_v23 }
 0x2b2   : > { %2447 = vst.msk [vmem:[#allocation5 + $0xd8] sm:$0xff] %vm2437_vm2, %v2408_v24  ;;  %2895 = vst.msk [vmem:[#allocation5 + $0xc8] sm:$0xff] %vm2437_vm2, %v2856_v43 }
 0x2b3   : > { %v2989_v41 = vld [vmem:[#allocation5 + $0xb0] sm:$0xff] }
 0x2b4   : > { %3295 = vmatprep.mubr.bf16.mxu1 %v2989_v41 }
 0x2b5   : > { %3296 = vmatmul.mubr.bf16.gmra.mrb[24].mxu1 %v2988_v42 }
 0x2b9   : > { %v2992_v0 = vld [vmem:[#allocation5 + $0xc8] sm:$0xff]  ;;  %v2994_v34 = vld [vmem:[#allocation5 + $0xd8] sm:$0xff] }
 0x2ba   : > { %3303 = vmatprep.mubr.bf16.mxu1 %v2992_v0 }
 0x2bc   : > { %v2732_v30 = vpop.permute.xlu0 %2731  ;;  %v2412_v44 = vpop.permute.xlu1 %2411 }
 0x2bd   : > { %3304 = vmatmul.mubr.bf16.gmra.mrb[28].mxu1 %v2991_v45 }
 0x2c0   : > { %v2860_v46 = vpop.permute.xlu0 %2859  ;;  %v2156_v47 = vpop.permute.xlu1 %2155 }
 0x2c1   : > { %2192 = vst.msk [vmem:[#allocation5 + $0x120] sm:$0xff] %vm2179_vm0, %v2156_v47 }
 0x2c4   : > { %v2605_v49 = vpop.permute.xlu0 %2604  ;;  %v2285_v50 = vpop.permute.xlu1 %2284 }
 0x2c5   : > { %2641 = vst.msk [vmem:[#allocation5 + $0x110] sm:$0xff] %vm2179_vm0, %v2605_v49 }
 0x2c6   : > { %2321 = vst.msk [vmem:[#allocation5 + $0x120] sm:$0xff] %vm2308_vm1, %v2285_v50 }
 0x2c8   : > { %v2730_v52 = vpop.permute.xlu0 %2729 }
 0x2c9   : > { %2768 = vst.msk [vmem:[#allocation5 + $0xe0] sm:$0xff] %vm2308_vm1, %v2730_v52  ;;  %v2410_v53 = vpop.permute.xlu1 %2409 }
 0x2ca   : > { %2448 = vst.msk [vmem:[#allocation5 + $0xf0] sm:$0xff] %vm2437_vm2, %v2410_v53 }
 0x2cc   : > { %v2858_v54 = vpop.permute.xlu0 %2857 }
 0x2cd   : > { %2896 = vst.msk [vmem:[#allocation5 + $0xe0] sm:$0xff] %vm2437_vm2, %v2858_v54  ;;  %v2154_v55 = vpop.permute.xlu1 %2153 }
 0x2ce   : > { %2191 = vst.msk [vmem:[#allocation5 + $0x108] sm:$0xff] %vm2179_vm0, %v2154_v55 }
 0x2d0   : > { %v2603_v56 = vpop.permute.xlu0 %2602 }
 0x2d1   : > { %2640 = vst.msk [vmem:[#allocation5 + $0xf8] sm:$0xff] %vm2179_vm0, %v2603_v56  ;;  %v2283_v58 = vpop.permute.xlu1 %2282  ;;  %v2997_v62 = vld [vmem:[#allocation5 + $0xf0] sm:$0xff] }
 0x2d2   : > { %2769 = vst.msk [vmem:[#allocation5 + $0xf8] sm:$0xff] %vm2308_vm1, %v2732_v30  ;;  %2320 = vst.msk [vmem:[#allocation5 + $0x108] sm:$0xff] %vm2308_vm1, %v2283_v58 }
 0x2d3   : > { %2897 = vst.msk [vmem:[#allocation5 + $0xf8] sm:$0xff] %vm2437_vm2, %v2860_v46  ;;  %2449 = vst.msk [vmem:[#allocation5 + $0x108] sm:$0xff] %vm2437_vm2, %v2412_v44 }
 0x2d4   : > { %v2995_v59 = vld [vmem:[#allocation5 + $0xe0] sm:$0xff] }
 0x2d5   : > { %3311 = vmatprep.mubr.bf16.mxu1 %v2995_v59 }
 0x2d6   : > { %3312 = vmatmul.mubr.bf16.gmra.mrb[32].mxu1 %v2994_v34 }
 0x2da   : > { %v2998_v48 = vld [vmem:[#allocation5 + $0xf8] sm:$0xff]  ;;  %v3000_v12 = vld [vmem:[#allocation5 + $0x108] sm:$0xff] }
 0x2db   : > { %3319 = vmatprep.mubr.bf16.mxu1 %v2998_v48 }
 0x2dc   : > { %v2736_v60 = vpop.permute.xlu0 %2735  ;;  %v2416_v61 = vpop.permute.xlu1 %2415 }
 0x2de   : > { %3320 = vmatmul.mubr.bf16.gmra.mrb[36].mxu1 %v2997_v62 }
 0x2e0   : > { %v2864_v36 = vpop.permute.xlu0 %2863  ;;  %v2160_v63 = vpop.permute.xlu1 %2159 }
 0x2e1   : > { %2194 = vst.msk [vmem:[#allocation5 + $0x150] sm:$0xff] %vm2179_vm0, %v2160_v63 }
 0x2e4   : > { %v2609_v4 = vpop.permute.xlu0 %2608  ;;  %v2414_v5 = vpop.permute.xlu1 %2413 }
 0x2e5   : > { %2643 = vst.msk [vmem:[#allocation5 + $0x140] sm:$0xff] %vm2179_vm0, %v2609_v4 }
 0x2e6   : > { %2450 = vst.msk [vmem:[#allocation5 + $0x120] sm:$0xff] %vm2437_vm2, %v2414_v5 }
 0x2e8   : > { %v2734_v7 = vpop.permute.xlu0 %2733 }
 0x2e9   : > { %2770 = vst.msk [vmem:[#allocation5 + $0x110] sm:$0xff] %vm2308_vm1, %v2734_v7  ;;  %v2158_v8 = vpop.permute.xlu1 %2157 }
 0x2ea   : > { %2193 = vst.msk [vmem:[#allocation5 + $0x138] sm:$0xff] %vm2179_vm0, %v2158_v8 }
 0x2ec   : > { %v2862_v9 = vpop.permute.xlu0 %2861 }
 0x2ed   : > { %2898 = vst.msk [vmem:[#allocation5 + $0x110] sm:$0xff] %vm2437_vm2, %v2862_v9  ;;  %v2287_v57 = vpop.permute.xlu1 %2286  ;;  %v3003_v15 = vld [vmem:[#allocation5 + $0x120] sm:$0xff] }
 0x2ee   : > { %2322 = vst.msk [vmem:[#allocation5 + $0x138] sm:$0xff] %vm2308_vm1, %v2287_v57 }
 0x2ef   : > { %2451 = vst.msk [vmem:[#allocation5 + $0x138] sm:$0xff] %vm2437_vm2, %v2416_v61 }
 0x2f0   : > { %v2607_v51 = vpop.permute.xlu0 %2606 }
 0x2f1   : > { %2642 = vst.msk [vmem:[#allocation5 + $0x128] sm:$0xff] %vm2179_vm0, %v2607_v51  ;;  %v2289_v10 = vpop.permute.xlu1 %2288 }
 0x2f2   : > { %2771 = vst.msk [vmem:[#allocation5 + $0x128] sm:$0xff] %vm2308_vm1, %v2736_v60  ;;  %2323 = vst.msk [vmem:[#allocation5 + $0x150] sm:$0xff] %vm2308_vm1, %v2289_v10 }
 0x2f3   : > { %2899 = vst.msk [vmem:[#allocation5 + $0x128] sm:$0xff] %vm2437_vm2, %v2864_v36 }
 0x2f4   : > { %v3001_v11 = vld [vmem:[#allocation5 + $0x110] sm:$0xff] }
 0x2f5   : > { %3327 = vmatprep.mubr.bf16.mxu1 %v3001_v11 }
 0x2f6   : > { %3328 = vmatmul.mubr.bf16.gmra.mrb[40].mxu1 %v3000_v12  ;;  %v3006_v24 = vld [vmem:[#allocation5 + $0x138] sm:$0xff] }
 0x2fa   : > { %v3004_v14 = vld [vmem:[#allocation5 + $0x128] sm:$0xff] }
 0x2fb   : > { %3335 = vmatprep.mubr.bf16.mxu1 %v3004_v14 }
 0x2fc   : > { %v2740_v3 = vpop.permute.xlu0 %2739  ;;  %v2418_v39 = vpop.permute.xlu1 %2417 }
 0x2fd   : > { %2452 = vst.msk [vmem:[#allocation5 + $0x150] sm:$0xff] %vm2437_vm2, %v2418_v39 }
 0x2fe   : > { %3336 = vmatmul.mubr.bf16.gmra.mrb[44].mxu1 %v3003_v15 }
 0x300   : > { %v2868_v16 = vpop.permute.xlu0 %2867  ;;  %v2162_v17 = vpop.permute.xlu1 %2161 }
 0x301   : > { %2195 = vst.msk [vmem:[#allocation5 + $0x168] sm:$0xff] %vm2179_vm0, %v2162_v17 }
 0x304   : > { %v2738_v18 = vpop.permute.xlu0 %2737  ;;  %v2291_v1 = vpop.permute.xlu1 %2290  ;;  %v3009_v32 = vld [vmem:[#allocation5 + $0x150] sm:$0xff] }
 0x305   : > { %2772 = vst.msk [vmem:[#allocation5 + $0x140] sm:$0xff] %vm2308_vm1, %v2738_v18  ;;  %2324 = vst.msk [vmem:[#allocation5 + $0x168] sm:$0xff] %vm2308_vm1, %v2291_v1 }
 0x308   : > { %v2866_v20 = vpop.permute.xlu0 %2865 }
 0x309   : > { %2900 = vst.msk [vmem:[#allocation5 + $0x140] sm:$0xff] %vm2437_vm2, %v2866_v20  ;;  %v2420_v21 = vpop.permute.xlu1 %2419 }
 0x30a   : > { %2453 = vst.msk [vmem:[#allocation5 + $0x168] sm:$0xff] %vm2437_vm2, %v2420_v21 }
 0x30c   : > { %v2611_v2 = vpop.permute.xlu0 %2610 }
 0x30d   : > { %2644 = vst.msk [vmem:[#allocation5 + $0x158] sm:$0xff] %vm2179_vm0, %v2611_v2 }
 0x30e   : > { %2773 = vst.msk [vmem:[#allocation5 + $0x158] sm:$0xff] %vm2308_vm1, %v2740_v3 }
 0x30f   : > { %2901 = vst.msk [vmem:[#allocation5 + $0x158] sm:$0xff] %vm2437_vm2, %v2868_v16 }
 0x310   : > { %v2613_v22 = vpop.permute.xlu0 %2612  ;;  %v3007_v23 = vld [vmem:[#allocation5 + $0x140] sm:$0xff] }
 0x311   : > { %2645 = vst.msk [vmem:[#allocation5 + $0x170] sm:$0xff] %vm2179_vm0, %v2613_v22  ;;  %3343 = vmatprep.mubr.bf16.mxu1 %v3007_v23  ;;  %v3815_v25 = vpop.f32.mrb[32].mxu0  ;;  %v3012_v0 = vld [vmem:[#allocation5 + $0x168] sm:$0xff] }
 0x312   : > { %3344 = vmatmul.mubr.bf16.gmra.mrb[48].mxu1 %v3006_v24  ;;  %v3816_v26 = vpop.f32.mrb[33].mxu0 }
 0x313   : > { %v3817_v13 = vadd.f32 %v3816_v26, %v3815_v25  ;;  %v3818_v28 = vpop.f32.mrb[34].mxu0 }
 0x314   : > { %v2742_v6 = vpop.permute.xlu0 %2741  ;;  %v3819_v43 = vpop.f32.mrb[35].mxu0 }
 0x315   : > { %2774 = vst.msk [vmem:[#allocation5 + $0x170] sm:$0xff] %vm2308_vm1, %v2742_v6  ;;  %v3820_v29 = vadd.f32 %v3819_v43, %v3818_v28 }
 0x316   : > { %v3010_v27 = vld [vmem:[#allocation5 + $0x158] sm:$0xff] }
 0x317   : > { %3351 = vmatprep.mubr.bf16.mxu1 %v3010_v27 }
 0x318   : > { %v2870_v31 = vpop.permute.xlu0 %2869 }
 0x319   : > { %2902 = vst.msk [vmem:[#allocation5 + $0x170] sm:$0xff] %vm2437_vm2, %v2870_v31  ;;  %v3973_v33 = vpop.f32.mrb[36].mxu0 }
 0x31a   : > { %3352 = vmatmul.mubr.bf16.gmra.mrb[52].mxu1 %v3009_v32  ;;  %v3402_v35 = vpop.f32.mrb[37].mxu0 }
 0x31b   : > { %v3403_v37 = vadd.f32 %v3817_v13, %v3402_v35  ;;  %v3974_v38 = vpop.f32.mrb[38].mxu0 }
 0x31c   : > { %v3405_v40 = vpop.f32.mrb[39].mxu0 }
 0x31d   : > { %v3529_v19 = vmax.f32 %v3403_v37, 0.0  ;;  %v3406_v41 = vadd.f32 %v3820_v29, %v3405_v40 }
 0x31f   : > { %3561 = vxpose.xlu0.b32.start [1/16] (narrow) %v3529_v19, 32  ;;  %v3530_v30 = vmax.f32 %v3406_v41, 0.0 }
 0x320   : > { %v3013_v42 = vld [vmem:[#allocation5 + $0x170] sm:$0xff] }
 0x321   : > { %3359 = vmatprep.mubr.bf16.mxu1 %v3013_v42 }
 0x322   : > { %3360 = vmatmul.mubr.bf16.gmra.mrb[56].mxu1 %v3012_v0  ;;  %v3977_v44 = vpop.f32.mrb[40].mxu0 }
 0x323   : > { %v3418_v45 = vpop.f32.mrb[41].mxu0  ;;  %3562 = vxpose.xlu0.b32.cont [2/16] (narrow) %v3530_v30, 32 }
 0x324   : > { %v3978_v46 = vpop.f32.mrb[42].mxu0 }
 0x325   : > { %v3421_v47 = vpop.f32.mrb[43].mxu0 }
 0x32a   : > { %v3821_v49 = vpop.f32.mrb[0].mxu1 }
 0x32b   : > { %v3822_v50 = vpop.f32.mrb[1].mxu1  ;;  %v5416_v54 = vpop.f32.mrb[44].mxu0 }
 0x32c   : > { %v3823_v52 = vadd.f32 %v3822_v50, %v3821_v49  ;;  %v3824_v53 = vpop.f32.mrb[2].mxu1  ;;  %v3434_v56 = vpop.f32.mrb[45].mxu0 }
 0x32d   : > { %v3825_v55 = vpop.f32.mrb[3].mxu1  ;;  %v5418_v34 = vpop.f32.mrb[46].mxu0 }
 0x32e   : > { %v3411_v58 = vadd.f32 %v3973_v33, %v3823_v52  ;;  %v3826_v59 = vadd.f32 %v3825_v55, %v3824_v53  ;;  %v3437_v48 = vpop.f32.mrb[47].mxu0 }
 0x330   : > { %v3531_v60 = vmax.f32 %v3411_v58, 0.0  ;;  %v3414_v61 = vadd.f32 %v3974_v38, %v3826_v59 }
 0x332   : > { %v3827_v62 = vpop.f32.mrb[4].mxu1  ;;  %3563 = vxpose.xlu0.b32.cont [3/16] (narrow) %v3531_v60, 32  ;;  %v3532_v63 = vmax.f32 %v3414_v61, 0.0 }
 0x333   : > { %v3828_v36 = vpop.f32.mrb[5].mxu1  ;;  %v5420_v7 = vpop.f32.mrb[48].mxu0 }
 0x334   : > { %v3829_v4 = vadd.f32 %v3828_v36, %v3827_v62  ;;  %v3830_v5 = vpop.f32.mrb[6].mxu1  ;;  %v5422_v9 = vpop.f32.mrb[49].mxu0 }
 0x335   : > { %v3831_v8 = vpop.f32.mrb[7].mxu1  ;;  %v5424_v10 = vpop.f32.mrb[50].mxu0 }
 0x336   : > { %v3419_v57 = vadd.f32 %v3829_v4, %v3418_v45  ;;  %v3832_v51 = vadd.f32 %v3831_v8, %v3830_v5  ;;  %3564 = vxpose.xlu0.b32.cont [4/16] (narrow) %v3532_v63, 32  ;;  %v5426_v11 = vpop.f32.mrb[51].mxu0 }
 0x338   : > { %v3533_v12 = vmax.f32 %v3419_v57, 0.0  ;;  %v3422_v14 = vadd.f32 %v3832_v51, %v3421_v47 }
 0x33a   : > { %3565 = vxpose.xlu0.b32.cont [5/16] (narrow) %v3533_v12, 32  ;;  %v3534_v3 = vmax.f32 %v3422_v14, 0.0 }
 0x33b   : > { %v5428_v39 = vpop.f32.mrb[52].mxu0 }
 0x33c   : > { %v5430_v15 = vpop.f32.mrb[53].mxu0 }
 0x33d   : > { %v5432_v16 = vpop.f32.mrb[54].mxu0 }
 0x33e   : > { %3566 = vxpose.xlu0.b32.cont [6/16] (narrow) %v3534_v3, 32  ;;  %v5434_v17 = vpop.f32.mrb[55].mxu0 }
 0x348   : > { %v5436_v18 = vpop.f32.mrb[56].mxu0 }
 0x349   : > { %v5438_v1 = vpop.f32.mrb[57].mxu0 }
 0x34a   : > { %v5440_v20 = vpop.f32.mrb[58].mxu0 }
 0x34b   : > { %v3833_v21 = vpop.f32.mrb[8].mxu1  ;;  %v5442_v2 = vpop.f32.mrb[59].mxu0 }
 0x34c   : > { %v3834_v22 = vpop.f32.mrb[9].mxu1 }
 0x34d   : > { %v3835_v23 = vadd.f32 %v3834_v22, %v3833_v21  ;;  %v3836_v24 = vpop.f32.mrb[10].mxu1 }
 0x34e   : > { %v3837_v25 = vpop.f32.mrb[11].mxu1 }
 0x34f   : > { %v3427_v26 = vadd.f32 %v3977_v44, %v3835_v23  ;;  %v3838_v6 = vadd.f32 %v3837_v25, %v3836_v24 }
 0x351   : > { %v3535_v13 = vmax.f32 %v3427_v26, 0.0  ;;  %v3430_v28 = vadd.f32 %v3978_v46, %v3838_v6 }
 0x353   : > { %v3839_v43 = vpop.f32.mrb[12].mxu1  ;;  %3567 = vxpose.xlu0.b32.cont [7/16] (narrow) %v3535_v13, 32  ;;  %v3536_v29 = vmax.f32 %v3430_v28, 0.0 }
 0x354   : > { %v3840_v27 = vpop.f32.mrb[13].mxu1 }
 0x355   : > { %v3841_v31 = vadd.f32 %v3840_v27, %v3839_v43  ;;  %v3842_v32 = vpop.f32.mrb[14].mxu1 }
 0x356   : > { %v3843_v33 = vpop.f32.mrb[15].mxu1 }
 0x357   : > { %v3435_v35 = vadd.f32 %v3841_v31, %v3434_v56  ;;  %v3844_v37 = vadd.f32 %v3843_v33, %v3842_v32  ;;  %3568 = vxpose.xlu0.b32.cont [8/16] (narrow) %v3536_v29, 32 }
 0x359   : > { %v3537_v38 = vmax.f32 %v3435_v35, 0.0  ;;  %v3438_v40 = vadd.f32 %v3844_v37, %v3437_v48 }
 0x35b   : > { %3569 = vxpose.xlu0.b32.cont [9/16] (narrow) %v3537_v38, 32  ;;  %v3538_v19 = vmax.f32 %v3438_v40, 0.0 }
 0x35f   : > { %3570 = vxpose.xlu0.b32.cont [10/16] (narrow) %v3538_v19, 32 }
 0x367   : > { %v5444_v41 = vpop.f32.mrb[60].mxu0 }
 0x368   : > { %v5446_v42 = vpop.f32.mrb[61].mxu0 }
 0x369   : > { %v5448_v0 = vpop.f32.mrb[62].mxu0 }
 0x36a   : > { %v3845_v30 = vpop.f32.mrb[16].mxu1  ;;  %v5450_v44 = vpop.f32.mrb[63].mxu0 }
 0x36b   : > { %v3846_v45 = vpop.f32.mrb[17].mxu1 }
 0x36c   : > { %v3847_v46 = vadd.f32 %v3846_v45, %v3845_v30  ;;  %v3848_v47 = vpop.f32.mrb[18].mxu1 }
 0x36d   : > { %v3849_v49 = vpop.f32.mrb[19].mxu1 }
 0x36e   : > { %v3443_v50 = vadd.f32 %v5416_v54, %v3847_v46  ;;  %v3850_v52 = vadd.f32 %v3849_v49, %v3848_v47 }
 0x36f   : > { %v5454_v59 = vpop.f32.mrb[64].mxu0 }
 0x370   : > { %v3539_v53 = vmax.f32 %v3443_v50, 0.0  ;;  %v3446_v55 = vadd.f32 %v5418_v34, %v3850_v52  ;;  %v5456_v62 = vpop.f32.mrb[65].mxu0 }
 0x371   : > { %v5458_v63 = vpop.f32.mrb[66].mxu0 }
 0x372   : > { %v3851_v56 = vpop.f32.mrb[20].mxu1  ;;  %3571 = vxpose.xlu0.b32.cont [11/16] (narrow) %v3539_v53, 32  ;;  %v3540_v48 = vmax.f32 %v3446_v55, 0.0  ;;  %v5461_v5 = vpop.f32.mrb[67].mxu0 }
 0x373   : > { %v3852_v58 = vpop.f32.mrb[21].mxu1 }
 0x374   : > { %v3853_v60 = vadd.f32 %v3852_v58, %v3851_v56  ;;  %v3854_v61 = vpop.f32.mrb[22].mxu1 }
 0x375   : > { %v3855_v36 = vpop.f32.mrb[23].mxu1 }
 0x376   : > { %v3451_v4 = vadd.f32 %v3853_v60, %v5422_v9  ;;  %v3856_v54 = vadd.f32 %v3855_v36, %v3854_v61  ;;  %3572 = vxpose.xlu0.b32.cont [12/16] (narrow) %v3540_v48, 32 }
 0x378   : > { %v3541_v34 = vmax.f32 %v3451_v4, 0.0  ;;  %v3454_v8 = vadd.f32 %v3856_v54, %v5426_v11 }
 0x37a   : > { %3573 = vxpose.xlu0.b32.cont [13/16] (narrow) %v3541_v34, 32  ;;  %v3542_v57 = vmax.f32 %v3454_v8, 0.0 }
 0x37e   : > { %3574 = vxpose.xlu0.b32.cont [14/16] (narrow) %v3542_v57, 32 }
 0x388   : > { %v3857_v51 = vpop.f32.mrb[24].mxu1 }
 0x389   : > { %v3858_v12 = vpop.f32.mrb[25].mxu1 }
 0x38a   : > { %v3859_v14 = vadd.f32 %v3858_v12, %v3857_v51  ;;  %v3860_v3 = vpop.f32.mrb[26].mxu1 }
 0x38b   : > { %v3861_v21 = vpop.f32.mrb[27].mxu1 }
 0x38c   : > { %v3459_v22 = vadd.f32 %v5420_v7, %v3859_v14  ;;  %v3862_v23 = vadd.f32 %v3861_v21, %v3860_v3 }
 0x38e   : > { %v3543_v24 = vmax.f32 %v3459_v22, 0.0  ;;  %v3462_v9 = vadd.f32 %v5424_v10, %v3862_v23 }
 0x390   : > { %v3863_v25 = vpop.f32.mrb[28].mxu1  ;;  %3575 = vxpose.xlu0.b32.cont [15/16] (narrow) %v3543_v24, 32  ;;  %v3544_v6 = vmax.f32 %v3462_v9, 0.0 }
 0x391   : > { %v3864_v26 = vpop.f32.mrb[29].mxu1 }
 0x392   : > { %v3865_v13 = vadd.f32 %v3864_v26, %v3863_v25  ;;  %v3866_v11 = vpop.f32.mrb[30].mxu1 }
 0x393   : > { %v3867_v28 = vpop.f32.mrb[31].mxu1 }
 0x394   : > { %v3467_v43 = vadd.f32 %v3865_v13, %v5430_v15  ;;  %v3868_v27 = vadd.f32 %v3867_v28, %v3866_v11  ;;  %3576 = vxpose.xlu0.b32.end [16/16] (narrow) %v3544_v6, 32 }
 0x396   : > { %v3545_v29 = vmax.f32 %v3467_v43, 0.0  ;;  %v3470_v31 = vadd.f32 %v3868_v27, %v5434_v17 }
 0x398   : > { %3593 = vxpose.xlu1.b32.start [1/16] (narrow) %v3545_v29, 32  ;;  %v3546_v7 = vmax.f32 %v3470_v31, 0.0 }
 0x39c   : > { %3594 = vxpose.xlu1.b32.cont [2/16] (narrow) %v3546_v7, 32 }
 0x3a9   : > { %v3869_v32 = vpop.f32.mrb[32].mxu1 }
 0x3aa   : > { %v3870_v33 = vpop.f32.mrb[33].mxu1 }
 0x3ab   : > { %v3871_v10 = vadd.f32 %v3870_v33, %v3869_v32  ;;  %v3872_v35 = vpop.f32.mrb[34].mxu1 }
 0x3ac   : > { %v3873_v37 = vpop.f32.mrb[35].mxu1 }
 0x3ad   : > { %v3475_v38 = vadd.f32 %v5428_v39, %v3871_v10  ;;  %v3874_v40 = vadd.f32 %v3873_v37, %v3872_v35 }
 0x3af   : > { %v3547_v19 = vmax.f32 %v3475_v38, 0.0  ;;  %v3478_v30 = vadd.f32 %v5432_v16, %v3874_v40 }
 0x3b1   : > { %v3875_v15 = vpop.f32.mrb[36].mxu1  ;;  %3595 = vxpose.xlu1.b32.cont [3/16] (narrow) %v3547_v19, 32  ;;  %v3548_v46 = vmax.f32 %v3478_v30, 0.0 }
 0x3b2   : > { %v3876_v45 = vpop.f32.mrb[37].mxu1 }
 0x3b3   : > { %v3877_v47 = vadd.f32 %v3876_v45, %v3875_v15  ;;  %v3878_v17 = vpop.f32.mrb[38].mxu1 }
 0x3b4   : > { %v3879_v49 = vpop.f32.mrb[39].mxu1 }
 0x3b5   : > { %v3483_v50 = vadd.f32 %v3877_v47, %v5438_v1  ;;  %v3880_v52 = vadd.f32 %v3879_v49, %v3878_v17  ;;  %3596 = vxpose.xlu1.b32.cont [4/16] (narrow) %v3548_v46, 32 }
 0x3b7   : > { %v3549_v53 = vmax.f32 %v3483_v50, 0.0  ;;  %v3486_v55 = vadd.f32 %v3880_v52, %v5442_v2 }
 0x3b9   : > { %3597 = vxpose.xlu1.b32.cont [5/16] (narrow) %v3549_v53, 32  ;;  %v3550_v39 = vmax.f32 %v3486_v55, 0.0 }
 0x3bd   : > { %3598 = vxpose.xlu1.b32.cont [6/16] (narrow) %v3550_v39, 32 }
 0x3c9   : > { %v3881_v56 = vpop.f32.mrb[40].mxu1 }
 0x3ca   : > { %v3882_v16 = vpop.f32.mrb[41].mxu1 }
 0x3cb   : > { %v3883_v58 = vadd.f32 %v3882_v16, %v3881_v56  ;;  %v3884_v48 = vpop.f32.mrb[42].mxu1 }
 0x3cc   : > { %v3885_v60 = vpop.f32.mrb[43].mxu1 }
 0x3cd   : > { %v3491_v61 = vadd.f32 %v5436_v18, %v3883_v58  ;;  %v3886_v36 = vadd.f32 %v3885_v60, %v3884_v48 }
 0x3cf   : > { %v3551_v4 = vmax.f32 %v3491_v61, 0.0  ;;  %v3494_v1 = vadd.f32 %v5440_v20, %v3886_v36 }
 0x3d1   : > { %v3887_v54 = vpop.f32.mrb[44].mxu1  ;;  %3599 = vxpose.xlu1.b32.cont [7/16] (narrow) %v3551_v4, 32  ;;  %v3552_v2 = vmax.f32 %v3494_v1, 0.0 }
 0x3d2   : > { %v3888_v34 = vpop.f32.mrb[45].mxu1 }
 0x3d3   : > { %v3889_v8 = vadd.f32 %v3888_v34, %v3887_v54  ;;  %v3890_v57 = vpop.f32.mrb[46].mxu1 }
 0x3d4   : > { %v3891_v51 = vpop.f32.mrb[47].mxu1 }
 0x3d5   : > { %v3499_v12 = vadd.f32 %v3889_v8, %v5446_v42  ;;  %v3892_v14 = vadd.f32 %v3891_v51, %v3890_v57  ;;  %3600 = vxpose.xlu1.b32.cont [8/16] (narrow) %v3552_v2, 32 }
 0x3d7   : > { %v3553_v3 = vmax.f32 %v3499_v12, 0.0  ;;  %v3502_v18 = vadd.f32 %v3892_v14, %v5450_v44 }
 0x3d8   : > { %v3577_v21 = vpop.trf.xlu0 }
 0x3d9   : > { %3601 = vxpose.xlu1.b32.cont [9/16] (narrow) %v3553_v3, 32  ;;  %3625 = vst [vmem:[%s5479_s17] sm:$0xff] %v3577_v21  ;;  %v3554_v20 = vmax.f32 %v3502_v18, 0.0 }
 0x3dc   : > { %v3578_v22 = vpop.trf.xlu0 }
 0x3dd   : > { %3602 = vxpose.xlu1.b32.cont [10/16] (narrow) %v3554_v20, 32  ;;  %3627 = vst [vmem:[%s5479_s17 + $0x10] sm:$0xff] %v3578_v22 }
 0x3e0   : > { %v3579_v23 = vpop.trf.xlu0 }
 0x3e1   : > { %3629 = vst [vmem:[%s5479_s17 + $0x20] sm:$0xff] %v3579_v23 }
 0x3e4   : > { %v3580_v24 = vpop.trf.xlu0 }
 0x3e5   : > { %v3893_v42 = vpop.f32.mrb[48].mxu1  ;;  %3631 = vst [vmem:[%s5479_s17 + $0x30] sm:$0xff] %v3580_v24 }
 0x3e6   : > { %v3894_v9 = vpop.f32.mrb[49].mxu1 }
 0x3e7   : > { %v3895_v44 = vadd.f32 %v3894_v9, %v3893_v42  ;;  %v3896_v25 = vpop.f32.mrb[50].mxu1 }
 0x3e8   : > { %v3897_v26 = vpop.f32.mrb[51].mxu1 }
 0x3e9   : > { %v3507_v6 = vadd.f32 %v5444_v41, %v3895_v44  ;;  %v3898_v13 = vadd.f32 %v3897_v26, %v3896_v25 }
 0x3eb   : > { %v3555_v11 = vmax.f32 %v3507_v6, 0.0  ;;  %v3510_v28 = vadd.f32 %v5448_v0, %v3898_v13 }
 0x3ed   : > { %v3899_v43 = vpop.f32.mrb[52].mxu1  ;;  %3603 = vxpose.xlu1.b32.cont [11/16] (narrow) %v3555_v11, 32  ;;  %v3556_v29 = vmax.f32 %v3510_v28, 0.0 }
 0x3ee   : > { %v3900_v27 = vpop.f32.mrb[53].mxu1 }
 0x3ef   : > { %v3901_v31 = vadd.f32 %v3900_v27, %v3899_v43  ;;  %v3902_v7 = vpop.f32.mrb[54].mxu1 }
 0x3f0   : > { %v3903_v32 = vpop.f32.mrb[55].mxu1 }
 0x3f1   : > { %v3515_v33 = vadd.f32 %v3901_v31, %v5456_v62  ;;  %v3904_v10 = vadd.f32 %v3903_v32, %v3902_v7  ;;  %3604 = vxpose.xlu1.b32.cont [12/16] (narrow) %v3556_v29, 32 }
 0x3f3   : > { %v3557_v35 = vmax.f32 %v3515_v33, 0.0  ;;  %v3518_v37 = vadd.f32 %v3904_v10, %v5461_v5 }
 0x3f5   : > { %3605 = vxpose.xlu1.b32.cont [13/16] (narrow) %v3557_v35, 32  ;;  %v3905_v41 = vpop.f32.mrb[56].mxu1  ;;  %v3558_v0 = vmax.f32 %v3518_v37, 0.0 }
 0x3f6   : > { %v3906_v38 = vpop.f32.mrb[57].mxu1 }
 0x3f7   : > { %v3907_v40 = vadd.f32 %v3906_v38, %v3905_v41  ;;  %v3908_v19 = vpop.f32.mrb[58].mxu1 }
 0x3f8   : > { %v3909_v30 = vpop.f32.mrb[59].mxu1 }
 0x3f9   : > { %v3523_v15 = vadd.f32 %v5454_v59, %v3907_v40  ;;  %v3910_v62 = vadd.f32 %v3909_v30, %v3908_v19  ;;  %3606 = vxpose.xlu1.b32.cont [14/16] (narrow) %v3558_v0, 32 }
 0x3fb   : > { %v3559_v45 = vmax.f32 %v3523_v15, 0.0  ;;  %v3526_v5 = vadd.f32 %v5458_v63, %v3910_v62 }
 0x3fd   : > { %3607 = vxpose.xlu1.b32.cont [15/16] (narrow) %v3559_v45, 32  ;;  %v3560_v46 = vmax.f32 %v3526_v5, 0.0 }
 0x401   : > { %3608 = vxpose.xlu1.b32.end [16/16] (narrow) %v3560_v46, 32 }
 0x445   : > { %v3609_v47 = vpop.trf.xlu1 }
 0x446   : > { %3626 = vst [vmem:[%s5479_s17 + $0x8] sm:$0xff] %v3609_v47 }
 0x449   : > { %v3610_v17 = vpop.trf.xlu1 }
 0x44a   : > { %3628 = vst [vmem:[%s5479_s17 + $0x18] sm:$0xff] %v3610_v17 }
 0x44d   : > { %v3611_v49 = vpop.trf.xlu1 }
 0x44e   : > { %3630 = vst [vmem:[%s5479_s17 + $0x28] sm:$0xff] %v3611_v49 }
 0x451   : > { %v3612_v59 = vpop.trf.xlu1 }
 0x452   : > { %3632 = vst [vmem:[%s5479_s17 + $0x38] sm:$0xff] %v3612_v59 }
 0x453   : > { %4107 = shalt.err (!%p4104_p3)
}
 0x454   : > { %s4108_s29 = scalar_lea.hbm %s5501_s18, 1024  ;;  %s4112_s17 = scalar_lea.hbm %s5555_s7, 2048 }
 0x455   : > { %p4109_p4 = scmp.ne.s32.totalorder %s5501_s18, %s4108_s29  ;;  %p4113_p9 = scmp.lt.u32.totalorder %s5501_s18, %s5555_s7 }
 0x456   : > { %p4114_p10 = scmp.lt.u32.totalorder %s4112_s17, %s4108_s29  ;;  %p4116_p12 = scmp.lt.u32.totalorder %s4108_s29, %s5501_s18 }
 0x457   : > { %p4110_p7 = pnand %p4109_p4, %p4249_p5 }
 0x458   : > { %p4115_p11 = por %p4114_p10, %p4113_p9 }
 0x459   : > { %p4111_p8 = pneg %p4110_p7 }
 0x45a   : > { %p4117_p13 = por %p4116_p12, %p4115_p11 }
 0x45c   : > { %p4118_p0 = pnand %p4117_p13, %p4111_p8 }
 0x45e   : > { %4121 = shalt.err (!%p4118_p0)
}
 0x45f   : > { %s4170_s16 = smov 256  }
 0x460   : > { %4020 = dma.vmem_to_hbm [thread:$0]  (%p4249_p5), %s5496_s9, 1024, %s5501_s18, %s5506_s19, %s4170_s16, %s4170_s16, %s4162_s8  }
 0x461 PF: > { %p4026_p1 = scmp.ge.s32.totalorder %s4156_s27, 2  ;;  %s3662_s20 = sand.u32 1, %s4144_s24  }
 0x462   : > { %s3663_s28 = scalar_lea.sflag [#allocation7], %s3662_s20 }
 0x463   : > { %p4023_p2 = pnand %p4026_p1, %p4253_p6 }
 0x465   : > { %4139 = dma.done.wait (!%p4023_p2), %s3663_s28, 1024  }
 0x466   : > { %4141 = vsyncadd (!%p4023_p2), %s3663_s28, 4294966272  ;;  %p17_p3 = scmp.ge.s32.totalorder %s4236_s30, 4   ;;  %s5558_s24 = smov %s4148_s25 }
 0x467   : > { %s5559_s25 = smov %s4152_s26  ;;  %s5560_s26 = smov %s4247_s10 }
 0x468   : > { %s5561_s27 = smov %s4236_s30  ;;  %19 = sbr.rel (!%p17_p3) target bundleno = 3 (0x3), region = 89 }
 0x46f   :  { %3668 = vsyncpa [#allocation7], 1 }
 0x470   :  { %3670 = vsyncpa [#allocation7 + $0x1], 1 }

</bundles_post_ra>
